<compile_context>
chip_gen: v7x
topology: tpu7x:2x2x1
jax: 0.10.0
libtpu: 0.0.40
codegen_flags: <defaults>
</compile_context>

<pallas_src>
import jax
import jax.numpy as jnp
from jax.experimental import pallas as pl
from jax.experimental.pallas import tpu as pltpu


# ------------------------------- fused kernel --------------------------------

def _make_fused_kernel(num_layers):
    """Kernel refs layout:
       [x, (w_ihT, w_hhT, bias) * num_layers, fc_wT, fc_b]  (inputs)
       [out]                                                 (output)
       [seq_k for k in 0..num_layers-2]                      (VMEM scratch)"""

    def kernel(*refs):
        x_ref = refs[0]
        layer_refs = [refs[1 + 3 * k: 4 + 3 * k] for k in range(num_layers)]
        fcw_ref = refs[1 + 3 * num_layers]
        fcb_ref = refs[2 + 3 * num_layers]
        out_ref = refs[3 + 3 * num_layers]
        seq_refs = list(refs[4 + 3 * num_layers:])

        B, T, D0 = x_ref.shape

        def lstm_layer(x2d, wihT_ref, whhT_ref, b_ref, out_seq_ref):
            """x2d: (B*T, D_in) batch-major rows (row = b*T + t)."""
            H = whhT_ref.shape[0]
            whhT = whhT_ref[...]                                  # (H, 4H) resident

            # Hoisted input projection over ALL timesteps (one wide MXU pass),
            # bias folded in once.
            p = (jnp.dot(x2d, wihT_ref[...],
                         preferred_element_type=jnp.float32)
                 + b_ref[...]).reshape(B, T, 4 * H)               # (B, T, 4H)

            h = jnp.zeros((B, H), jnp.float32)
            c = jnp.zeros((B, H), jnp.float32)
            for t in range(T):                                    # fully unrolled
                gates = p[:, t, :] + jnp.dot(
                    h, whhT, preferred_element_type=jnp.float32)  # (B, 4H)
                i = jax.nn.sigmoid(gates[:, 0 * H:1 * H])
                f = jax.nn.sigmoid(gates[:, 1 * H:2 * H])
                g = jnp.tanh(gates[:, 2 * H:3 * H])
                o = jax.nn.sigmoid(gates[:, 3 * H:4 * H])
                c = f * c + i * g
                h = o * jnp.tanh(c)
                if out_seq_ref is not None:
                    # ReLU'd output sequence feeds the NEXT layer (recurrence uses raw h)
                    out_seq_ref[:, t, :] = jnp.maximum(h, 0.0)
            return jnp.maximum(h, 0.0)                            # relu(h_T)

        cur2d = x_ref[...].reshape(B * T, D0)
        last = None
        for k in range(num_layers):
            wihT_ref, whhT_ref, b_ref = layer_refs[k]
            if k < num_layers - 1:
                lstm_layer(cur2d, wihT_ref, whhT_ref, b_ref, seq_refs[k])
                Hk = whhT_ref.shape[0]
                cur2d = seq_refs[k][...].reshape(B * T, Hk)
            else:
                last = lstm_layer(cur2d, wihT_ref, whhT_ref, b_ref, None)

        # FC head on the last timestep, fused into the same kernel (single store).
        out_ref[...] = (jnp.dot(last, fcw_ref[...],
                                preferred_element_type=jnp.float32)
                        + fcb_ref[...])

    return kernel


def _full_spec(shape):
    n = len(shape)
    return pl.BlockSpec(shape, lambda *_: (0,) * n)


def lstm_regressor_forward(x, layer_params, fc_wT, fc_b):
    """x: (B, T, input_size) batch_first.
       layer_params: list of (w_ihT (D_in,4H), w_hhT (H,4H), bias (1,4H)) per layer.
       fc_wT: (H_last, 1), fc_b: (1, 1)."""
    B, T, D = x.shape
    num_layers = len(layer_params)
    hidden_sizes = [whhT.shape[0] for (_, whhT, _) in layer_params]
    O = fc_wT.shape[1]

    inputs = [x]
    in_specs = [_full_spec((B, T, D))]
    for (wihT, whhT, bias) in layer_params:
        inputs += [wihT, whhT, bias]
        in_specs += [_full_spec(wihT.shape),
                     _full_spec(whhT.shape),
                     _full_spec(bias.shape)]
    inputs += [fc_wT, fc_b]
    in_specs += [_full_spec(fc_wT.shape), _full_spec(fc_b.shape)]

    return pl.pallas_call(
        _make_fused_kernel(num_layers),
        out_shape=jax.ShapeDtypeStruct((B, O), jnp.float32),
        in_specs=in_specs,
        out_specs=_full_spec((B, O)),
        # Inter-layer ReLU'd hidden sequences stay in VMEM (never touch HBM).
        scratch_shapes=[pltpu.VMEM((B, T, H), jnp.float32)
                        for H in hidden_sizes[:-1]],
    )(*inputs)


# --------------------------- params (PyTorch-style) ---------------------------

def init_params(key, input_size, hidden_sizes):
    """uniform(-1/sqrt(H), 1/sqrt(H)); weights stored pre-transposed, biases folded."""
    layer_params = []
    d_in = input_size
    for H in hidden_sizes:
        bound = 1.0 / (H ** 0.5)
        key, k1, k2, k3, k4 = jax.random.split(key, 5)
        w_ih = jax.random.uniform(k1, (4 * H, d_in), jnp.float32, -bound, bound)
        w_hh = jax.random.uniform(k2, (4 * H, H), jnp.float32, -bound, bound)
        b_ih = jax.random.uniform(k3, (4 * H,), jnp.float32, -bound, bound)
        b_hh = jax.random.uniform(k4, (4 * H,), jnp.float32, -bound, bound)
        layer_params.append((w_ih.T, w_hh.T, (b_ih + b_hh).reshape(1, 4 * H)))
        d_in = H
    H_last = hidden_sizes[-1]
    bound = 1.0 / (H_last ** 0.5)
    key, kw, kb = jax.random.split(key, 3)
    fc_w = jax.random.uniform(kw, (1, H_last), jnp.float32, -bound, bound)
    fc_b = jax.random.uniform(kb, (1,), jnp.float32, -bound, bound)
    return key, layer_params, fc_w.T, fc_b.reshape(1, 1)


# ----------------------------- pure-JAX reference -----------------------------

def _forward_ref(x, layer_params, fc_wT, fc_b):
    hp = jax.lax.Precision.HIGHEST
    B, T, _ = x.shape
    h_seq = x
    for (wihT, whhT, bias) in layer_params:
        H = whhT.shape[0]
        h = jnp.zeros((B, H), jnp.float32)
        c = jnp.zeros((B, H), jnp.float32)
        outs = []
        for t in range(T):
            gates = (jnp.dot(h_seq[:, t, :], wihT, precision=hp)
                     + jnp.dot(h, whhT, precision=hp) + bias)
            i = jax.nn.sigmoid(gates[:, :H])
            f = jax.nn.sigmoid(gates[:, H:2 * H])
            g = jnp.tanh(gates[:, 2 * H:3 * H])
            o = jax.nn.sigmoid(gates[:, 3 * H:])
            c = f * c + i * g
            h = o * jnp.tanh(c)
            outs.append(jnp.maximum(h, 0.0))          # relu; dropout = eval no-op
        h_seq = jnp.stack(outs, axis=1)               # (B, T, H)
    return jnp.dot(h_seq[:, -1, :], fc_wT, precision=hp) + fc_b


# ------------------------------------ main ------------------------------------

if __name__ == "__main__":
    batch, seq = 2, 8
    input_size = 8
    hidden_sizes = (32, 32, 16, 16)    # the 4 LSTM hidden sizes

    key = jax.random.PRNGKey(0)
    key, kx = jax.random.split(key)
    x = jax.random.normal(kx, (batch, seq, input_size), jnp.float32)

    key, layer_params, fc_wT, fc_b = init_params(key, input_size, hidden_sizes)

    out = lstm_regressor_forward(x, layer_params, fc_wT, fc_b)
    out = jax.block_until_ready(out)

    ref = _forward_ref(x, layer_params, fc_wT, fc_b)
    max_diff = float(jnp.max(jnp.abs(out - ref)))
    assert out.shape == (batch, 1), out.shape
    # 5e-3 accounts for MXU f32 multi-pass rounding differences between the Pallas
    # kernel and the HIGHEST-precision XLA reference at these shapes.
    assert max_diff < 5e-3, f"mismatch vs JAX reference: {max_diff}"

    print("KERNEL_OK")
</pallas_src>

<mosaic_0001>
module attributes {stable_mosaic.version = 11 : i64} {
  func.func @kernel(%arg0: memref<2x8x8xf32, #tpu.memory_space<vmem>>, %arg1: memref<8x128xf32, #tpu.memory_space<vmem>>, %arg2: memref<32x128xf32, #tpu.memory_space<vmem>>, %arg3: memref<1x128xf32, #tpu.memory_space<vmem>>, %arg4: memref<32x128xf32, #tpu.memory_space<vmem>>, %arg5: memref<32x128xf32, #tpu.memory_space<vmem>>, %arg6: memref<1x128xf32, #tpu.memory_space<vmem>>, %arg7: memref<32x64xf32, #tpu.memory_space<vmem>>, %arg8: memref<16x64xf32, #tpu.memory_space<vmem>>, %arg9: memref<1x64xf32, #tpu.memory_space<vmem>>, %arg10: memref<16x64xf32, #tpu.memory_space<vmem>>, %arg11: memref<16x64xf32, #tpu.memory_space<vmem>>, %arg12: memref<1x64xf32, #tpu.memory_space<vmem>>, %arg13: memref<16x1xf32, #tpu.memory_space<vmem>>, %arg14: memref<1x1xf32, #tpu.memory_space<vmem>>, %arg15: memref<2x1xf32, #tpu.memory_space<vmem>>, %arg16: memref<2x8x32xf32, #tpu.memory_space<vmem>>, %arg17: memref<2x8x32xf32, #tpu.memory_space<vmem>>, %arg18: memref<2x8x16xf32, #tpu.memory_space<vmem>>) attributes {dimension_semantics = [], scalar_prefetch = 0 : i64, scratch_operands = 3 : i64, tpu.core_type = #tpu.core_type<tc>} {
    %c0 = arith.constant 0 : index
    %c0_0 = arith.constant 0 : index
    %c0_1 = arith.constant 0 : index
    %0 = vector.load %arg0[%c0, %c0_0, %c0_1] : memref<2x8x8xf32, #tpu.memory_space<vmem>>, vector<2x8x8xf32>
    %1 = vector.shape_cast %0 : vector<2x8x8xf32> to vector<16x8xf32>
    %c0_2 = arith.constant 0 : index
    %c0_3 = arith.constant 0 : index
    %2 = vector.load %arg2[%c0_2, %c0_3] : memref<32x128xf32, #tpu.memory_space<vmem>>, vector<32x128xf32>
    %c0_4 = arith.constant 0 : index
    %c0_5 = arith.constant 0 : index
    %3 = vector.load %arg1[%c0_4, %c0_5] : memref<8x128xf32, #tpu.memory_space<vmem>>, vector<8x128xf32>
    %cst = arith.constant dense<0.000000e+00> : vector<16x128xf32>
    %4 = tpu.matmul %1, %3, %cst {dimension_numbers = #tpu.dot_dimension_numbers<[1], [0], [0], [1], [0, 0, 1, 1], [], []>} : vector<16x8xf32>, vector<8x128xf32>, vector<16x128xf32> -> vector<16x128xf32>
    %c0_6 = arith.constant 0 : index
    %c0_7 = arith.constant 0 : index
    %5 = vector.load %arg3[%c0_6, %c0_7] : memref<1x128xf32, #tpu.memory_space<vmem>>, vector<1x128xf32>
    %6 = vector.broadcast %5 : vector<1x128xf32> to vector<16x128xf32>
    %7 = arith.addf %4, %6 : vector<16x128xf32>
    %8 = vector.shape_cast %7 : vector<16x128xf32> to vector<2x8x128xf32>
    %cst_8 = arith.constant 0.000000e+00 : f32
    %9 = vector.broadcast %cst_8 : f32 to vector<2x32xf32>
    %cst_9 = arith.constant 0.000000e+00 : f32
    %10 = vector.broadcast %cst_9 : f32 to vector<2x32xf32>
    %11 = vector.extract_strided_slice %8 {offsets = [0, 0, 0], sizes = [2, 1, 128], strides = [1, 1, 1]} : vector<2x8x128xf32> to vector<2x1x128xf32>
    %12 = vector.shape_cast %11 : vector<2x1x128xf32> to vector<2x128xf32>
    %cst_10 = arith.constant dense<0.000000e+00> : vector<2x128xf32>
    %13 = tpu.matmul %9, %2, %cst_10 {dimension_numbers = #tpu.dot_dimension_numbers<[1], [0], [0], [1], [0, 0, 1, 1], [], []>} : vector<2x32xf32>, vector<32x128xf32>, vector<2x128xf32> -> vector<2x128xf32>
    %14 = arith.addf %12, %13 : vector<2x128xf32>
    %15 = vector.extract_strided_slice %14 {offsets = [0, 0], sizes = [2, 32], strides = [1, 1]} : vector<2x128xf32> to vector<2x32xf32>
    %16 = arith.negf %15 : vector<2x32xf32>
    %17 = math.exp %16 : vector<2x32xf32>
    %cst_11 = arith.constant 1.000000e+00 : f32
    %18 = vector.broadcast %cst_11 : f32 to vector<2x32xf32>
    %19 = arith.addf %18, %17 : vector<2x32xf32>
    %20 = arith.divf %18, %19 : vector<2x32xf32>
    %21 = vector.extract_strided_slice %14 {offsets = [0, 32], sizes = [2, 32], strides = [1, 1]} : vector<2x128xf32> to vector<2x32xf32>
    %22 = arith.negf %21 : vector<2x32xf32>
    %23 = math.exp %22 : vector<2x32xf32>
    %cst_12 = arith.constant 1.000000e+00 : f32
    %24 = vector.broadcast %cst_12 : f32 to vector<2x32xf32>
    %25 = arith.addf %24, %23 : vector<2x32xf32>
    %26 = arith.divf %24, %25 : vector<2x32xf32>
    %27 = vector.extract_strided_slice %14 {offsets = [0, 64], sizes = [2, 32], strides = [1, 1]} : vector<2x128xf32> to vector<2x32xf32>
    %28 = math.tanh %27 : vector<2x32xf32>
    %29 = vector.extract_strided_slice %14 {offsets = [0, 96], sizes = [2, 32], strides = [1, 1]} : vector<2x128xf32> to vector<2x32xf32>
    %30 = arith.negf %29 : vector<2x32xf32>
    %31 = math.exp %30 : vector<2x32xf32>
    %cst_13 = arith.constant 1.000000e+00 : f32
    %32 = vector.broadcast %cst_13 : f32 to vector<2x32xf32>
    %33 = arith.addf %32, %31 : vector<2x32xf32>
    %34 = arith.divf %32, %33 : vector<2x32xf32>
    %35 = arith.mulf %26, %10 : vector<2x32xf32>
    %36 = arith.mulf %20, %28 : vector<2x32xf32>
    %37 = arith.addf %35, %36 : vector<2x32xf32>
    %38 = math.tanh %37 : vector<2x32xf32>
    %39 = arith.mulf %34, %38 : vector<2x32xf32>
    %cst_14 = arith.constant 0.000000e+00 : f32
    %40 = vector.broadcast %cst_14 : f32 to vector<2x32xf32>
    %41 = arith.maximumf %39, %40 : vector<2x32xf32>
    %c0_15 = arith.constant 0 : index
    %c0_16 = arith.constant 0 : index
    %c0_17 = arith.constant 0 : index
    %42 = vector.load %arg16[%c0_15, %c0_16, %c0_17] : memref<2x8x32xf32, #tpu.memory_space<vmem>>, vector<2x1x32xf32>
    %43 = vector.shape_cast %42 : vector<2x1x32xf32> to vector<2x32xf32>
    %44 = vector.shape_cast %41 : vector<2x32xf32> to vector<2x1x32xf32>
    tpu.vector_store %arg16[%c0_15, %c0_16, %c0_17], %44 {strides = array<i32>} : memref<2x8x32xf32, #tpu.memory_space<vmem>>, vector<2x1x32xf32>,
    %45 = vector.extract_strided_slice %8 {offsets = [0, 1, 0], sizes = [2, 1, 128], strides = [1, 1, 1]} : vector<2x8x128xf32> to vector<2x1x128xf32>
    %46 = vector.shape_cast %45 : vector<2x1x128xf32> to vector<2x128xf32>
    %cst_18 = arith.constant dense<0.000000e+00> : vector<2x128xf32>
    %47 = tpu.matmul %39, %2, %cst_18 {dimension_numbers = #tpu.dot_dimension_numbers<[1], [0], [0], [1], [0, 0, 1, 1], [], []>} : vector<2x32xf32>, vector<32x128xf32>, vector<2x128xf32> -> vector<2x128xf32>
    %48 = arith.addf %46, %47 : vector<2x128xf32>
    %49 = vector.extract_strided_slice %48 {offsets = [0, 0], sizes = [2, 32], strides = [1, 1]} : vector<2x128xf32> to vector<2x32xf32>
    %50 = arith.negf %49 : vector<2x32xf32>
    %51 = math.exp %50 : vector<2x32xf32>
    %cst_19 = arith.constant 1.000000e+00 : f32
    %52 = vector.broadcast %cst_19 : f32 to vector<2x32xf32>
    %53 = arith.addf %52, %51 : vector<2x32xf32>
    %54 = arith.divf %52, %53 : vector<2x32xf32>
    %55 = vector.extract_strided_slice %48 {offsets = [0, 32], sizes = [2, 32], strides = [1, 1]} : vector<2x128xf32> to vector<2x32xf32>
    %56 = arith.negf %55 : vector<2x32xf32>
    %57 = math.exp %56 : vector<2x32xf32>
    %cst_20 = arith.constant 1.000000e+00 : f32
    %58 = vector.broadcast %cst_20 : f32 to vector<2x32xf32>
    %59 = arith.addf %58, %57 : vector<2x32xf32>
    %60 = arith.divf %58, %59 : vector<2x32xf32>
    %61 = vector.extract_strided_slice %48 {offsets = [0, 64], sizes = [2, 32], strides = [1, 1]} : vector<2x128xf32> to vector<2x32xf32>
    %62 = math.tanh %61 : vector<2x32xf32>
    %63 = vector.extract_strided_slice %48 {offsets = [0, 96], sizes = [2, 32], strides = [1, 1]} : vector<2x128xf32> to vector<2x32xf32>
    %64 = arith.negf %63 : vector<2x32xf32>
    %65 = math.exp %64 : vector<2x32xf32>
    %cst_21 = arith.constant 1.000000e+00 : f32
    %66 = vector.broadcast %cst_21 : f32 to vector<2x32xf32>
    %67 = arith.addf %66, %65 : vector<2x32xf32>
    %68 = arith.divf %66, %67 : vector<2x32xf32>
    %69 = arith.mulf %60, %37 : vector<2x32xf32>
    %70 = arith.mulf %54, %62 : vector<2x32xf32>
    %71 = arith.addf %69, %70 : vector<2x32xf32>
    %72 = math.tanh %71 : vector<2x32xf32>
    %73 = arith.mulf %68, %72 : vector<2x32xf32>
    %cst_22 = arith.constant 0.000000e+00 : f32
    %74 = vector.broadcast %cst_22 : f32 to vector<2x32xf32>
    %75 = arith.maximumf %73, %74 : vector<2x32xf32>
    %c0_23 = arith.constant 0 : index
    %c1 = arith.constant 1 : index
    %c0_24 = arith.constant 0 : index
    %76 = vector.load %arg16[%c0_23, %c1, %c0_24] : memref<2x8x32xf32, #tpu.memory_space<vmem>>, vector<2x1x32xf32>
    %77 = vector.shape_cast %76 : vector<2x1x32xf32> to vector<2x32xf32>
    %78 = vector.shape_cast %75 : vector<2x32xf32> to vector<2x1x32xf32>
    tpu.vector_store %arg16[%c0_23, %c1, %c0_24], %78 {strides = array<i32>} : memref<2x8x32xf32, #tpu.memory_space<vmem>>, vector<2x1x32xf32>,
    %79 = vector.extract_strided_slice %8 {offsets = [0, 2, 0], sizes = [2, 1, 128], strides = [1, 1, 1]} : vector<2x8x128xf32> to vector<2x1x128xf32>
    %80 = vector.shape_cast %79 : vector<2x1x128xf32> to vector<2x128xf32>
    %cst_25 = arith.constant dense<0.000000e+00> : vector<2x128xf32>
    %81 = tpu.matmul %73, %2, %cst_25 {dimension_numbers = #tpu.dot_dimension_numbers<[1], [0], [0], [1], [0, 0, 1, 1], [], []>} : vector<2x32xf32>, vector<32x128xf32>, vector<2x128xf32> -> vector<2x128xf32>
    %82 = arith.addf %80, %81 : vector<2x128xf32>
    %83 = vector.extract_strided_slice %82 {offsets = [0, 0], sizes = [2, 32], strides = [1, 1]} : vector<2x128xf32> to vector<2x32xf32>
    %84 = arith.negf %83 : vector<2x32xf32>
    %85 = math.exp %84 : vector<2x32xf32>
    %cst_26 = arith.constant 1.000000e+00 : f32
    %86 = vector.broadcast %cst_26 : f32 to vector<2x32xf32>
    %87 = arith.addf %86, %85 : vector<2x32xf32>
    %88 = arith.divf %86, %87 : vector<2x32xf32>
    %89 = vector.extract_strided_slice %82 {offsets = [0, 32], sizes = [2, 32], strides = [1, 1]} : vector<2x128xf32> to vector<2x32xf32>
    %90 = arith.negf %89 : vector<2x32xf32>
    %91 = math.exp %90 : vector<2x32xf32>
    %cst_27 = arith.constant 1.000000e+00 : f32
    %92 = vector.broadcast %cst_27 : f32 to vector<2x32xf32>
    %93 = arith.addf %92, %91 : vector<2x32xf32>
    %94 = arith.divf %92, %93 : vector<2x32xf32>
    %95 = vector.extract_strided_slice %82 {offsets = [0, 64], sizes = [2, 32], strides = [1, 1]} : vector<2x128xf32> to vector<2x32xf32>
    %96 = math.tanh %95 : vector<2x32xf32>
    %97 = vector.extract_strided_slice %82 {offsets = [0, 96], sizes = [2, 32], strides = [1, 1]} : vector<2x128xf32> to vector<2x32xf32>
    %98 = arith.negf %97 : vector<2x32xf32>
    %99 = math.exp %98 : vector<2x32xf32>
    %cst_28 = arith.constant 1.000000e+00 : f32
    %100 = vector.broadcast %cst_28 : f32 to vector<2x32xf32>
    %101 = arith.addf %100, %99 : vector<2x32xf32>
    %102 = arith.divf %100, %101 : vector<2x32xf32>
    %103 = arith.mulf %94, %71 : vector<2x32xf32>
    %104 = arith.mulf %88, %96 : vector<2x32xf32>
    %105 = arith.addf %103, %104 : vector<2x32xf32>
    %106 = math.tanh %105 : vector<2x32xf32>
    %107 = arith.mulf %102, %106 : vector<2x32xf32>
    %cst_29 = arith.constant 0.000000e+00 : f32
    %108 = vector.broadcast %cst_29 : f32 to vector<2x32xf32>
    %109 = arith.maximumf %107, %108 : vector<2x32xf32>
    %c0_30 = arith.constant 0 : index
    %c2 = arith.constant 2 : index
    %c0_31 = arith.constant 0 : index
    %110 = vector.load %arg16[%c0_30, %c2, %c0_31] : memref<2x8x32xf32, #tpu.memory_space<vmem>>, vector<2x1x32xf32>
    %111 = vector.shape_cast %110 : vector<2x1x32xf32> to vector<2x32xf32>
    %112 = vector.shape_cast %109 : vector<2x32xf32> to vector<2x1x32xf32>
    tpu.vector_store %arg16[%c0_30, %c2, %c0_31], %112 {strides = array<i32>} : memref<2x8x32xf32, #tpu.memory_space<vmem>>, vector<2x1x32xf32>,
    %113 = vector.extract_strided_slice %8 {offsets = [0, 3, 0], sizes = [2, 1, 128], strides = [1, 1, 1]} : vector<2x8x128xf32> to vector<2x1x128xf32>
    %114 = vector.shape_cast %113 : vector<2x1x128xf32> to vector<2x128xf32>
    %cst_32 = arith.constant dense<0.000000e+00> : vector<2x128xf32>
    %115 = tpu.matmul %107, %2, %cst_32 {dimension_numbers = #tpu.dot_dimension_numbers<[1], [0], [0], [1], [0, 0, 1, 1], [], []>} : vector<2x32xf32>, vector<32x128xf32>, vector<2x128xf32> -> vector<2x128xf32>
    %116 = arith.addf %114, %115 : vector<2x128xf32>
    %117 = vector.extract_strided_slice %116 {offsets = [0, 0], sizes = [2, 32], strides = [1, 1]} : vector<2x128xf32> to vector<2x32xf32>
    %118 = arith.negf %117 : vector<2x32xf32>
    %119 = math.exp %118 : vector<2x32xf32>
    %cst_33 = arith.constant 1.000000e+00 : f32
    %120 = vector.broadcast %cst_33 : f32 to vector<2x32xf32>
    %121 = arith.addf %120, %119 : vector<2x32xf32>
    %122 = arith.divf %120, %121 : vector<2x32xf32>
    %123 = vector.extract_strided_slice %116 {offsets = [0, 32], sizes = [2, 32], strides = [1, 1]} : vector<2x128xf32> to vector<2x32xf32>
    %124 = arith.negf %123 : vector<2x32xf32>
    %125 = math.exp %124 : vector<2x32xf32>
    %cst_34 = arith.constant 1.000000e+00 : f32
    %126 = vector.broadcast %cst_34 : f32 to vector<2x32xf32>
    %127 = arith.addf %126, %125 : vector<2x32xf32>
    %128 = arith.divf %126, %127 : vector<2x32xf32>
    %129 = vector.extract_strided_slice %116 {offsets = [0, 64], sizes = [2, 32], strides = [1, 1]} : vector<2x128xf32> to vector<2x32xf32>
    %130 = math.tanh %129 : vector<2x32xf32>
    %131 = vector.extract_strided_slice %116 {offsets = [0, 96], sizes = [2, 32], strides = [1, 1]} : vector<2x128xf32> to vector<2x32xf32>
    %132 = arith.negf %131 : vector<2x32xf32>
    %133 = math.exp %132 : vector<2x32xf32>
    %cst_35 = arith.constant 1.000000e+00 : f32
    %134 = vector.broadcast %cst_35 : f32 to vector<2x32xf32>
    %135 = arith.addf %134, %133 : vector<2x32xf32>
    %136 = arith.divf %134, %135 : vector<2x32xf32>
    %137 = arith.mulf %128, %105 : vector<2x32xf32>
    %138 = arith.mulf %122, %130 : vector<2x32xf32>
    %139 = arith.addf %137, %138 : vector<2x32xf32>
    %140 = math.tanh %139 : vector<2x32xf32>
    %141 = arith.mulf %136, %140 : vector<2x32xf32>
    %cst_36 = arith.constant 0.000000e+00 : f32
    %142 = vector.broadcast %cst_36 : f32 to vector<2x32xf32>
    %143 = arith.maximumf %141, %142 : vector<2x32xf32>
    %c0_37 = arith.constant 0 : index
    %c3 = arith.constant 3 : index
    %c0_38 = arith.constant 0 : index
    %144 = vector.load %arg16[%c0_37, %c3, %c0_38] : memref<2x8x32xf32, #tpu.memory_space<vmem>>, vector<2x1x32xf32>
    %145 = vector.shape_cast %144 : vector<2x1x32xf32> to vector<2x32xf32>
    %146 = vector.shape_cast %143 : vector<2x32xf32> to vector<2x1x32xf32>
    tpu.vector_store %arg16[%c0_37, %c3, %c0_38], %146 {strides = array<i32>} : memref<2x8x32xf32, #tpu.memory_space<vmem>>, vector<2x1x32xf32>,
    %147 = vector.extract_strided_slice %8 {offsets = [0, 4, 0], sizes = [2, 1, 128], strides = [1, 1, 1]} : vector<2x8x128xf32> to vector<2x1x128xf32>
    %148 = vector.shape_cast %147 : vector<2x1x128xf32> to vector<2x128xf32>
    %cst_39 = arith.constant dense<0.000000e+00> : vector<2x128xf32>
    %149 = tpu.matmul %141, %2, %cst_39 {dimension_numbers = #tpu.dot_dimension_numbers<[1], [0], [0], [1], [0, 0, 1, 1], [], []>} : vector<2x32xf32>, vector<32x128xf32>, vector<2x128xf32> -> vector<2x128xf32>
    %150 = arith.addf %148, %149 : vector<2x128xf32>
    %151 = vector.extract_strided_slice %150 {offsets = [0, 0], sizes = [2, 32], strides = [1, 1]} : vector<2x128xf32> to vector<2x32xf32>
    %152 = arith.negf %151 : vector<2x32xf32>
    %153 = math.exp %152 : vector<2x32xf32>
    %cst_40 = arith.constant 1.000000e+00 : f32
    %154 = vector.broadcast %cst_40 : f32 to vector<2x32xf32>
    %155 = arith.addf %154, %153 : vector<2x32xf32>
    %156 = arith.divf %154, %155 : vector<2x32xf32>
    %157 = vector.extract_strided_slice %150 {offsets = [0, 32], sizes = [2, 32], strides = [1, 1]} : vector<2x128xf32> to vector<2x32xf32>
    %158 = arith.negf %157 : vector<2x32xf32>
    %159 = math.exp %158 : vector<2x32xf32>
    %cst_41 = arith.constant 1.000000e+00 : f32
    %160 = vector.broadcast %cst_41 : f32 to vector<2x32xf32>
    %161 = arith.addf %160, %159 : vector<2x32xf32>
    %162 = arith.divf %160, %161 : vector<2x32xf32>
    %163 = vector.extract_strided_slice %150 {offsets = [0, 64], sizes = [2, 32], strides = [1, 1]} : vector<2x128xf32> to vector<2x32xf32>
    %164 = math.tanh %163 : vector<2x32xf32>
    %165 = vector.extract_strided_slice %150 {offsets = [0, 96], sizes = [2, 32], strides = [1, 1]} : vector<2x128xf32> to vector<2x32xf32>
    %166 = arith.negf %165 : vector<2x32xf32>
    %167 = math.exp %166 : vector<2x32xf32>
    %cst_42 = arith.constant 1.000000e+00 : f32
    %168 = vector.broadcast %cst_42 : f32 to vector<2x32xf32>
    %169 = arith.addf %168, %167 : vector<2x32xf32>
    %170 = arith.divf %168, %169 : vector<2x32xf32>
    %171 = arith.mulf %162, %139 : vector<2x32xf32>
    %172 = arith.mulf %156, %164 : vector<2x32xf32>
    %173 = arith.addf %171, %172 : vector<2x32xf32>
    %174 = math.tanh %173 : vector<2x32xf32>
    %175 = arith.mulf %170, %174 : vector<2x32xf32>
    %cst_43 = arith.constant 0.000000e+00 : f32
    %176 = vector.broadcast %cst_43 : f32 to vector<2x32xf32>
    %177 = arith.maximumf %175, %176 : vector<2x32xf32>
    %c0_44 = arith.constant 0 : index
    %c4 = arith.constant 4 : index
    %c0_45 = arith.constant 0 : index
    %178 = vector.load %arg16[%c0_44, %c4, %c0_45] : memref<2x8x32xf32, #tpu.memory_space<vmem>>, vector<2x1x32xf32>
    %179 = vector.shape_cast %178 : vector<2x1x32xf32> to vector<2x32xf32>
    %180 = vector.shape_cast %177 : vector<2x32xf32> to vector<2x1x32xf32>
    tpu.vector_store %arg16[%c0_44, %c4, %c0_45], %180 {strides = array<i32>} : memref<2x8x32xf32, #tpu.memory_space<vmem>>, vector<2x1x32xf32>,
    %181 = vector.extract_strided_slice %8 {offsets = [0, 5, 0], sizes = [2, 1, 128], strides = [1, 1, 1]} : vector<2x8x128xf32> to vector<2x1x128xf32>
    %182 = vector.shape_cast %181 : vector<2x1x128xf32> to vector<2x128xf32>
    %cst_46 = arith.constant dense<0.000000e+00> : vector<2x128xf32>
    %183 = tpu.matmul %175, %2, %cst_46 {dimension_numbers = #tpu.dot_dimension_numbers<[1], [0], [0], [1], [0, 0, 1, 1], [], []>} : vector<2x32xf32>, vector<32x128xf32>, vector<2x128xf32> -> vector<2x128xf32>
    %184 = arith.addf %182, %183 : vector<2x128xf32>
    %185 = vector.extract_strided_slice %184 {offsets = [0, 0], sizes = [2, 32], strides = [1, 1]} : vector<2x128xf32> to vector<2x32xf32>
    %186 = arith.negf %185 : vector<2x32xf32>
    %187 = math.exp %186 : vector<2x32xf32>
    %cst_47 = arith.constant 1.000000e+00 : f32
    %188 = vector.broadcast %cst_47 : f32 to vector<2x32xf32>
    %189 = arith.addf %188, %187 : vector<2x32xf32>
    %190 = arith.divf %188, %189 : vector<2x32xf32>
    %191 = vector.extract_strided_slice %184 {offsets = [0, 32], sizes = [2, 32], strides = [1, 1]} : vector<2x128xf32> to vector<2x32xf32>
    %192 = arith.negf %191 : vector<2x32xf32>
    %193 = math.exp %192 : vector<2x32xf32>
    %cst_48 = arith.constant 1.000000e+00 : f32
    %194 = vector.broadcast %cst_48 : f32 to vector<2x32xf32>
    %195 = arith.addf %194, %193 : vector<2x32xf32>
    %196 = arith.divf %194, %195 : vector<2x32xf32>
    %197 = vector.extract_strided_slice %184 {offsets = [0, 64], sizes = [2, 32], strides = [1, 1]} : vector<2x128xf32> to vector<2x32xf32>
    %198 = math.tanh %197 : vector<2x32xf32>
    %199 = vector.extract_strided_slice %184 {offsets = [0, 96], sizes = [2, 32], strides = [1, 1]} : vector<2x128xf32> to vector<2x32xf32>
    %200 = arith.negf %199 : vector<2x32xf32>
    %201 = math.exp %200 : vector<2x32xf32>
    %cst_49 = arith.constant 1.000000e+00 : f32
    %202 = vector.broadcast %cst_49 : f32 to vector<2x32xf32>
    %203 = arith.addf %202, %201 : vector<2x32xf32>
    %204 = arith.divf %202, %203 : vector<2x32xf32>
    %205 = arith.mulf %196, %173 : vector<2x32xf32>
    %206 = arith.mulf %190, %198 : vector<2x32xf32>
    %207 = arith.addf %205, %206 : vector<2x32xf32>
    %208 = math.tanh %207 : vector<2x32xf32>
    %209 = arith.mulf %204, %208 : vector<2x32xf32>
    %cst_50 = arith.constant 0.000000e+00 : f32
    %210 = vector.broadcast %cst_50 : f32 to vector<2x32xf32>
    %211 = arith.maximumf %209, %210 : vector<2x32xf32>
    %c0_51 = arith.constant 0 : index
    %c5 = arith.constant 5 : index
    %c0_52 = arith.constant 0 : index
    %212 = vector.load %arg16[%c0_51, %c5, %c0_52] : memref<2x8x32xf32, #tpu.memory_space<vmem>>, vector<2x1x32xf32>
    %213 = vector.shape_cast %212 : vector<2x1x32xf32> to vector<2x32xf32>
    %214 = vector.shape_cast %211 : vector<2x32xf32> to vector<2x1x32xf32>
    tpu.vector_store %arg16[%c0_51, %c5, %c0_52], %214 {strides = array<i32>} : memref<2x8x32xf32, #tpu.memory_space<vmem>>, vector<2x1x32xf32>,
    %215 = vector.extract_strided_slice %8 {offsets = [0, 6, 0], sizes = [2, 1, 128], strides = [1, 1, 1]} : vector<2x8x128xf32> to vector<2x1x128xf32>
    %216 = vector.shape_cast %215 : vector<2x1x128xf32> to vector<2x128xf32>
    %cst_53 = arith.constant dense<0.000000e+00> : vector<2x128xf32>
    %217 = tpu.matmul %209, %2, %cst_53 {dimension_numbers = #tpu.dot_dimension_numbers<[1], [0], [0], [1], [0, 0, 1, 1], [], []>} : vector<2x32xf32>, vector<32x128xf32>, vector<2x128xf32> -> vector<2x128xf32>
    %218 = arith.addf %216, %217 : vector<2x128xf32>
    %219 = vector.extract_strided_slice %218 {offsets = [0, 0], sizes = [2, 32], strides = [1, 1]} : vector<2x128xf32> to vector<2x32xf32>
    %220 = arith.negf %219 : vector<2x32xf32>
    %221 = math.exp %220 : vector<2x32xf32>
    %cst_54 = arith.constant 1.000000e+00 : f32
    %222 = vector.broadcast %cst_54 : f32 to vector<2x32xf32>
    %223 = arith.addf %222, %221 : vector<2x32xf32>
    %224 = arith.divf %222, %223 : vector<2x32xf32>
    %225 = vector.extract_strided_slice %218 {offsets = [0, 32], sizes = [2, 32], strides = [1, 1]} : vector<2x128xf32> to vector<2x32xf32>
    %226 = arith.negf %225 : vector<2x32xf32>
    %227 = math.exp %226 : vector<2x32xf32>
    %cst_55 = arith.constant 1.000000e+00 : f32
    %228 = vector.broadcast %cst_55 : f32 to vector<2x32xf32>
    %229 = arith.addf %228, %227 : vector<2x32xf32>
    %230 = arith.divf %228, %229 : vector<2x32xf32>
    %231 = vector.extract_strided_slice %218 {offsets = [0, 64], sizes = [2, 32], strides = [1, 1]} : vector<2x128xf32> to vector<2x32xf32>
    %232 = math.tanh %231 : vector<2x32xf32>
    %233 = vector.extract_strided_slice %218 {offsets = [0, 96], sizes = [2, 32], strides = [1, 1]} : vector<2x128xf32> to vector<2x32xf32>
    %234 = arith.negf %233 : vector<2x32xf32>
    %235 = math.exp %234 : vector<2x32xf32>
    %cst_56 = arith.constant 1.000000e+00 : f32
    %236 = vector.broadcast %cst_56 : f32 to vector<2x32xf32>
    %237 = arith.addf %236, %235 : vector<2x32xf32>
    %238 = arith.divf %236, %237 : vector<2x32xf32>
    %239 = arith.mulf %230, %207 : vector<2x32xf32>
    %240 = arith.mulf %224, %232 : vector<2x32xf32>
    %241 = arith.addf %239, %240 : vector<2x32xf32>
    %242 = math.tanh %241 : vector<2x32xf32>
    %243 = arith.mulf %238, %242 : vector<2x32xf32>
    %cst_57 = arith.constant 0.000000e+00 : f32
    %244 = vector.broadcast %cst_57 : f32 to vector<2x32xf32>
    %245 = arith.maximumf %243, %244 : vector<2x32xf32>
    %c0_58 = arith.constant 0 : index
    %c6 = arith.constant 6 : index
    %c0_59 = arith.constant 0 : index
    %246 = vector.load %arg16[%c0_58, %c6, %c0_59] : memref<2x8x32xf32, #tpu.memory_space<vmem>>, vector<2x1x32xf32>
    %247 = vector.shape_cast %246 : vector<2x1x32xf32> to vector<2x32xf32>
    %248 = vector.shape_cast %245 : vector<2x32xf32> to vector<2x1x32xf32>
    tpu.vector_store %arg16[%c0_58, %c6, %c0_59], %248 {strides = array<i32>} : memref<2x8x32xf32, #tpu.memory_space<vmem>>, vector<2x1x32xf32>,
    %249 = vector.extract_strided_slice %8 {offsets = [0, 7, 0], sizes = [2, 1, 128], strides = [1, 1, 1]} : vector<2x8x128xf32> to vector<2x1x128xf32>
    %250 = vector.shape_cast %249 : vector<2x1x128xf32> to vector<2x128xf32>
    %cst_60 = arith.constant dense<0.000000e+00> : vector<2x128xf32>
    %251 = tpu.matmul %243, %2, %cst_60 {dimension_numbers = #tpu.dot_dimension_numbers<[1], [0], [0], [1], [0, 0, 1, 1], [], []>} : vector<2x32xf32>, vector<32x128xf32>, vector<2x128xf32> -> vector<2x128xf32>
    %252 = arith.addf %250, %251 : vector<2x128xf32>
    %253 = vector.extract_strided_slice %252 {offsets = [0, 0], sizes = [2, 32], strides = [1, 1]} : vector<2x128xf32> to vector<2x32xf32>
    %254 = arith.negf %253 : vector<2x32xf32>
    %255 = math.exp %254 : vector<2x32xf32>
    %cst_61 = arith.constant 1.000000e+00 : f32
    %256 = vector.broadcast %cst_61 : f32 to vector<2x32xf32>
    %257 = arith.addf %256, %255 : vector<2x32xf32>
    %258 = arith.divf %256, %257 : vector<2x32xf32>
    %259 = vector.extract_strided_slice %252 {offsets = [0, 32], sizes = [2, 32], strides = [1, 1]} : vector<2x128xf32> to vector<2x32xf32>
    %260 = arith.negf %259 : vector<2x32xf32>
    %261 = math.exp %260 : vector<2x32xf32>
    %cst_62 = arith.constant 1.000000e+00 : f32
    %262 = vector.broadcast %cst_62 : f32 to vector<2x32xf32>
    %263 = arith.addf %262, %261 : vector<2x32xf32>
    %264 = arith.divf %262, %263 : vector<2x32xf32>
    %265 = vector.extract_strided_slice %252 {offsets = [0, 64], sizes = [2, 32], strides = [1, 1]} : vector<2x128xf32> to vector<2x32xf32>
    %266 = math.tanh %265 : vector<2x32xf32>
    %267 = vector.extract_strided_slice %252 {offsets = [0, 96], sizes = [2, 32], strides = [1, 1]} : vector<2x128xf32> to vector<2x32xf32>
    %268 = arith.negf %267 : vector<2x32xf32>
    %269 = math.exp %268 : vector<2x32xf32>
    %cst_63 = arith.constant 1.000000e+00 : f32
    %270 = vector.broadcast %cst_63 : f32 to vector<2x32xf32>
    %271 = arith.addf %270, %269 : vector<2x32xf32>
    %272 = arith.divf %270, %271 : vector<2x32xf32>
    %273 = arith.mulf %264, %241 : vector<2x32xf32>
    %274 = arith.mulf %258, %266 : vector<2x32xf32>
    %275 = arith.addf %273, %274 : vector<2x32xf32>
    %276 = math.tanh %275 : vector<2x32xf32>
    %277 = arith.mulf %272, %276 : vector<2x32xf32>
    %cst_64 = arith.constant 0.000000e+00 : f32
    %278 = vector.broadcast %cst_64 : f32 to vector<2x32xf32>
    %279 = arith.maximumf %277, %278 : vector<2x32xf32>
    %c0_65 = arith.constant 0 : index
    %c7 = arith.constant 7 : index
    %c0_66 = arith.constant 0 : index
    %280 = vector.load %arg16[%c0_65, %c7, %c0_66] : memref<2x8x32xf32, #tpu.memory_space<vmem>>, vector<2x1x32xf32>
    %281 = vector.shape_cast %280 : vector<2x1x32xf32> to vector<2x32xf32>
    %282 = vector.shape_cast %279 : vector<2x32xf32> to vector<2x1x32xf32>
    tpu.vector_store %arg16[%c0_65, %c7, %c0_66], %282 {strides = array<i32>} : memref<2x8x32xf32, #tpu.memory_space<vmem>>, vector<2x1x32xf32>,
    %c0_67 = arith.constant 0 : index
    %c0_68 = arith.constant 0 : index
    %c0_69 = arith.constant 0 : index
    %283 = vector.load %arg16[%c0_67, %c0_68, %c0_69] : memref<2x8x32xf32, #tpu.memory_space<vmem>>, vector<2x8x32xf32>
    %284 = vector.shape_cast %283 : vector<2x8x32xf32> to vector<16x32xf32>
    %c0_70 = arith.constant 0 : index
    %c0_71 = arith.constant 0 : index
    %285 = vector.load %arg5[%c0_70, %c0_71] : memref<32x128xf32, #tpu.memory_space<vmem>>, vector<32x128xf32>
    %c0_72 = arith.constant 0 : index
    %c0_73 = arith.constant 0 : index
    %286 = vector.load %arg4[%c0_72, %c0_73] : memref<32x128xf32, #tpu.memory_space<vmem>>, vector<32x128xf32>
    %cst_74 = arith.constant dense<0.000000e+00> : vector<16x128xf32>
    %287 = tpu.matmul %284, %286, %cst_74 {dimension_numbers = #tpu.dot_dimension_numbers<[1], [0], [0], [1], [0, 0, 1, 1], [], []>} : vector<16x32xf32>, vector<32x128xf32>, vector<16x128xf32> -> vector<16x128xf32>
    %c0_75 = arith.constant 0 : index
    %c0_76 = arith.constant 0 : index
    %288 = vector.load %arg6[%c0_75, %c0_76] : memref<1x128xf32, #tpu.memory_space<vmem>>, vector<1x128xf32>
    %289 = vector.broadcast %288 : vector<1x128xf32> to vector<16x128xf32>
    %290 = arith.addf %287, %289 : vector<16x128xf32>
    %291 = vector.shape_cast %290 : vector<16x128xf32> to vector<2x8x128xf32>
    %cst_77 = arith.constant 0.000000e+00 : f32
    %292 = vector.broadcast %cst_77 : f32 to vector<2x32xf32>
    %cst_78 = arith.constant 0.000000e+00 : f32
    %293 = vector.broadcast %cst_78 : f32 to vector<2x32xf32>
    %294 = vector.extract_strided_slice %291 {offsets = [0, 0, 0], sizes = [2, 1, 128], strides = [1, 1, 1]} : vector<2x8x128xf32> to vector<2x1x128xf32>
    %295 = vector.shape_cast %294 : vector<2x1x128xf32> to vector<2x128xf32>
    %cst_79 = arith.constant dense<0.000000e+00> : vector<2x128xf32>
    %296 = tpu.matmul %292, %285, %cst_79 {dimension_numbers = #tpu.dot_dimension_numbers<[1], [0], [0], [1], [0, 0, 1, 1], [], []>} : vector<2x32xf32>, vector<32x128xf32>, vector<2x128xf32> -> vector<2x128xf32>
    %297 = arith.addf %295, %296 : vector<2x128xf32>
    %298 = vector.extract_strided_slice %297 {offsets = [0, 0], sizes = [2, 32], strides = [1, 1]} : vector<2x128xf32> to vector<2x32xf32>
    %299 = arith.negf %298 : vector<2x32xf32>
    %300 = math.exp %299 : vector<2x32xf32>
    %cst_80 = arith.constant 1.000000e+00 : f32
    %301 = vector.broadcast %cst_80 : f32 to vector<2x32xf32>
    %302 = arith.addf %301, %300 : vector<2x32xf32>
    %303 = arith.divf %301, %302 : vector<2x32xf32>
    %304 = vector.extract_strided_slice %297 {offsets = [0, 32], sizes = [2, 32], strides = [1, 1]} : vector<2x128xf32> to vector<2x32xf32>
    %305 = arith.negf %304 : vector<2x32xf32>
    %306 = math.exp %305 : vector<2x32xf32>
    %cst_81 = arith.constant 1.000000e+00 : f32
    %307 = vector.broadcast %cst_81 : f32 to vector<2x32xf32>
    %308 = arith.addf %307, %306 : vector<2x32xf32>
    %309 = arith.divf %307, %308 : vector<2x32xf32>
    %310 = vector.extract_strided_slice %297 {offsets = [0, 64], sizes = [2, 32], strides = [1, 1]} : vector<2x128xf32> to vector<2x32xf32>
    %311 = math.tanh %310 : vector<2x32xf32>
    %312 = vector.extract_strided_slice %297 {offsets = [0, 96], sizes = [2, 32], strides = [1, 1]} : vector<2x128xf32> to vector<2x32xf32>
    %313 = arith.negf %312 : vector<2x32xf32>
    %314 = math.exp %313 : vector<2x32xf32>
    %cst_82 = arith.constant 1.000000e+00 : f32
    %315 = vector.broadcast %cst_82 : f32 to vector<2x32xf32>
    %316 = arith.addf %315, %314 : vector<2x32xf32>
    %317 = arith.divf %315, %316 : vector<2x32xf32>
    %318 = arith.mulf %309, %293 : vector<2x32xf32>
    %319 = arith.mulf %303, %311 : vector<2x32xf32>
    %320 = arith.addf %318, %319 : vector<2x32xf32>
    %321 = math.tanh %320 : vector<2x32xf32>
    %322 = arith.mulf %317, %321 : vector<2x32xf32>
    %cst_83 = arith.constant 0.000000e+00 : f32
    %323 = vector.broadcast %cst_83 : f32 to vector<2x32xf32>
    %324 = arith.maximumf %322, %323 : vector<2x32xf32>
    %c0_84 = arith.constant 0 : index
    %c0_85 = arith.constant 0 : index
    %c0_86 = arith.constant 0 : index
    %325 = vector.load %arg17[%c0_84, %c0_85, %c0_86] : memref<2x8x32xf32, #tpu.memory_space<vmem>>, vector<2x1x32xf32>
    %326 = vector.shape_cast %325 : vector<2x1x32xf32> to vector<2x32xf32>
    %327 = vector.shape_cast %324 : vector<2x32xf32> to vector<2x1x32xf32>
    tpu.vector_store %arg17[%c0_84, %c0_85, %c0_86], %327 {strides = array<i32>} : memref<2x8x32xf32, #tpu.memory_space<vmem>>, vector<2x1x32xf32>,
    %328 = vector.extract_strided_slice %291 {offsets = [0, 1, 0], sizes = [2, 1, 128], strides = [1, 1, 1]} : vector<2x8x128xf32> to vector<2x1x128xf32>
    %329 = vector.shape_cast %328 : vector<2x1x128xf32> to vector<2x128xf32>
    %cst_87 = arith.constant dense<0.000000e+00> : vector<2x128xf32>
    %330 = tpu.matmul %322, %285, %cst_87 {dimension_numbers = #tpu.dot_dimension_numbers<[1], [0], [0], [1], [0, 0, 1, 1], [], []>} : vector<2x32xf32>, vector<32x128xf32>, vector<2x128xf32> -> vector<2x128xf32>
    %331 = arith.addf %329, %330 : vector<2x128xf32>
    %332 = vector.extract_strided_slice %331 {offsets = [0, 0], sizes = [2, 32], strides = [1, 1]} : vector<2x128xf32> to vector<2x32xf32>
    %333 = arith.negf %332 : vector<2x32xf32>
    %334 = math.exp %333 : vector<2x32xf32>
    %cst_88 = arith.constant 1.000000e+00 : f32
    %335 = vector.broadcast %cst_88 : f32 to vector<2x32xf32>
    %336 = arith.addf %335, %334 : vector<2x32xf32>
    %337 = arith.divf %335, %336 : vector<2x32xf32>
    %338 = vector.extract_strided_slice %331 {offsets = [0, 32], sizes = [2, 32], strides = [1, 1]} : vector<2x128xf32> to vector<2x32xf32>
    %339 = arith.negf %338 : vector<2x32xf32>
    %340 = math.exp %339 : vector<2x32xf32>
    %cst_89 = arith.constant 1.000000e+00 : f32
    %341 = vector.broadcast %cst_89 : f32 to vector<2x32xf32>
    %342 = arith.addf %341, %340 : vector<2x32xf32>
    %343 = arith.divf %341, %342 : vector<2x32xf32>
    %344 = vector.extract_strided_slice %331 {offsets = [0, 64], sizes = [2, 32], strides = [1, 1]} : vector<2x128xf32> to vector<2x32xf32>
    %345 = math.tanh %344 : vector<2x32xf32>
    %346 = vector.extract_strided_slice %331 {offsets = [0, 96], sizes = [2, 32], strides = [1, 1]} : vector<2x128xf32> to vector<2x32xf32>
    %347 = arith.negf %346 : vector<2x32xf32>
    %348 = math.exp %347 : vector<2x32xf32>
    %cst_90 = arith.constant 1.000000e+00 : f32
    %349 = vector.broadcast %cst_90 : f32 to vector<2x32xf32>
    %350 = arith.addf %349, %348 : vector<2x32xf32>
    %351 = arith.divf %349, %350 : vector<2x32xf32>
    %352 = arith.mulf %343, %320 : vector<2x32xf32>
    %353 = arith.mulf %337, %345 : vector<2x32xf32>
    %354 = arith.addf %352, %353 : vector<2x32xf32>
    %355 = math.tanh %354 : vector<2x32xf32>
    %356 = arith.mulf %351, %355 : vector<2x32xf32>
    %cst_91 = arith.constant 0.000000e+00 : f32
    %357 = vector.broadcast %cst_91 : f32 to vector<2x32xf32>
    %358 = arith.maximumf %356, %357 : vector<2x32xf32>
    %c0_92 = arith.constant 0 : index
    %c1_93 = arith.constant 1 : index
    %c0_94 = arith.constant 0 : index
    %359 = vector.load %arg17[%c0_92, %c1_93, %c0_94] : memref<2x8x32xf32, #tpu.memory_space<vmem>>, vector<2x1x32xf32>
    %360 = vector.shape_cast %359 : vector<2x1x32xf32> to vector<2x32xf32>
    %361 = vector.shape_cast %358 : vector<2x32xf32> to vector<2x1x32xf32>
    tpu.vector_store %arg17[%c0_92, %c1_93, %c0_94], %361 {strides = array<i32>} : memref<2x8x32xf32, #tpu.memory_space<vmem>>, vector<2x1x32xf32>,
    %362 = vector.extract_strided_slice %291 {offsets = [0, 2, 0], sizes = [2, 1, 128], strides = [1, 1, 1]} : vector<2x8x128xf32> to vector<2x1x128xf32>
    %363 = vector.shape_cast %362 : vector<2x1x128xf32> to vector<2x128xf32>
    %cst_95 = arith.constant dense<0.000000e+00> : vector<2x128xf32>
    %364 = tpu.matmul %356, %285, %cst_95 {dimension_numbers = #tpu.dot_dimension_numbers<[1], [0], [0], [1], [0, 0, 1, 1], [], []>} : vector<2x32xf32>, vector<32x128xf32>, vector<2x128xf32> -> vector<2x128xf32>
    %365 = arith.addf %363, %364 : vector<2x128xf32>
    %366 = vector.extract_strided_slice %365 {offsets = [0, 0], sizes = [2, 32], strides = [1, 1]} : vector<2x128xf32> to vector<2x32xf32>
    %367 = arith.negf %366 : vector<2x32xf32>
    %368 = math.exp %367 : vector<2x32xf32>
    %cst_96 = arith.constant 1.000000e+00 : f32
    %369 = vector.broadcast %cst_96 : f32 to vector<2x32xf32>
    %370 = arith.addf %369, %368 : vector<2x32xf32>
    %371 = arith.divf %369, %370 : vector<2x32xf32>
    %372 = vector.extract_strided_slice %365 {offsets = [0, 32], sizes = [2, 32], strides = [1, 1]} : vector<2x128xf32> to vector<2x32xf32>
    %373 = arith.negf %372 : vector<2x32xf32>
    %374 = math.exp %373 : vector<2x32xf32>
    %cst_97 = arith.constant 1.000000e+00 : f32
    %375 = vector.broadcast %cst_97 : f32 to vector<2x32xf32>
    %376 = arith.addf %375, %374 : vector<2x32xf32>
    %377 = arith.divf %375, %376 : vector<2x32xf32>
    %378 = vector.extract_strided_slice %365 {offsets = [0, 64], sizes = [2, 32], strides = [1, 1]} : vector<2x128xf32> to vector<2x32xf32>
    %379 = math.tanh %378 : vector<2x32xf32>
    %380 = vector.extract_strided_slice %365 {offsets = [0, 96], sizes = [2, 32], strides = [1, 1]} : vector<2x128xf32> to vector<2x32xf32>
    %381 = arith.negf %380 : vector<2x32xf32>
    %382 = math.exp %381 : vector<2x32xf32>
    %cst_98 = arith.constant 1.000000e+00 : f32
    %383 = vector.broadcast %cst_98 : f32 to vector<2x32xf32>
    %384 = arith.addf %383, %382 : vector<2x32xf32>
    %385 = arith.divf %383, %384 : vector<2x32xf32>
    %386 = arith.mulf %377, %354 : vector<2x32xf32>
    %387 = arith.mulf %371, %379 : vector<2x32xf32>
    %388 = arith.addf %386, %387 : vector<2x32xf32>
    %389 = math.tanh %388 : vector<2x32xf32>
    %390 = arith.mulf %385, %389 : vector<2x32xf32>
    %cst_99 = arith.constant 0.000000e+00 : f32
    %391 = vector.broadcast %cst_99 : f32 to vector<2x32xf32>
    %392 = arith.maximumf %390, %391 : vector<2x32xf32>
    %c0_100 = arith.constant 0 : index
    %c2_101 = arith.constant 2 : index
    %c0_102 = arith.constant 0 : index
    %393 = vector.load %arg17[%c0_100, %c2_101, %c0_102] : memref<2x8x32xf32, #tpu.memory_space<vmem>>, vector<2x1x32xf32>
    %394 = vector.shape_cast %393 : vector<2x1x32xf32> to vector<2x32xf32>
    %395 = vector.shape_cast %392 : vector<2x32xf32> to vector<2x1x32xf32>
    tpu.vector_store %arg17[%c0_100, %c2_101, %c0_102], %395 {strides = array<i32>} : memref<2x8x32xf32, #tpu.memory_space<vmem>>, vector<2x1x32xf32>,
    %396 = vector.extract_strided_slice %291 {offsets = [0, 3, 0], sizes = [2, 1, 128], strides = [1, 1, 1]} : vector<2x8x128xf32> to vector<2x1x128xf32>
    %397 = vector.shape_cast %396 : vector<2x1x128xf32> to vector<2x128xf32>
    %cst_103 = arith.constant dense<0.000000e+00> : vector<2x128xf32>
    %398 = tpu.matmul %390, %285, %cst_103 {dimension_numbers = #tpu.dot_dimension_numbers<[1], [0], [0], [1], [0, 0, 1, 1], [], []>} : vector<2x32xf32>, vector<32x128xf32>, vector<2x128xf32> -> vector<2x128xf32>
    %399 = arith.addf %397, %398 : vector<2x128xf32>
    %400 = vector.extract_strided_slice %399 {offsets = [0, 0], sizes = [2, 32], strides = [1, 1]} : vector<2x128xf32> to vector<2x32xf32>
    %401 = arith.negf %400 : vector<2x32xf32>
    %402 = math.exp %401 : vector<2x32xf32>
    %cst_104 = arith.constant 1.000000e+00 : f32
    %403 = vector.broadcast %cst_104 : f32 to vector<2x32xf32>
    %404 = arith.addf %403, %402 : vector<2x32xf32>
    %405 = arith.divf %403, %404 : vector<2x32xf32>
    %406 = vector.extract_strided_slice %399 {offsets = [0, 32], sizes = [2, 32], strides = [1, 1]} : vector<2x128xf32> to vector<2x32xf32>
    %407 = arith.negf %406 : vector<2x32xf32>
    %408 = math.exp %407 : vector<2x32xf32>
    %cst_105 = arith.constant 1.000000e+00 : f32
    %409 = vector.broadcast %cst_105 : f32 to vector<2x32xf32>
    %410 = arith.addf %409, %408 : vector<2x32xf32>
    %411 = arith.divf %409, %410 : vector<2x32xf32>
    %412 = vector.extract_strided_slice %399 {offsets = [0, 64], sizes = [2, 32], strides = [1, 1]} : vector<2x128xf32> to vector<2x32xf32>
    %413 = math.tanh %412 : vector<2x32xf32>
    %414 = vector.extract_strided_slice %399 {offsets = [0, 96], sizes = [2, 32], strides = [1, 1]} : vector<2x128xf32> to vector<2x32xf32>
    %415 = arith.negf %414 : vector<2x32xf32>
    %416 = math.exp %415 : vector<2x32xf32>
    %cst_106 = arith.constant 1.000000e+00 : f32
    %417 = vector.broadcast %cst_106 : f32 to vector<2x32xf32>
    %418 = arith.addf %417, %416 : vector<2x32xf32>
    %419 = arith.divf %417, %418 : vector<2x32xf32>
    %420 = arith.mulf %411, %388 : vector<2x32xf32>
    %421 = arith.mulf %405, %413 : vector<2x32xf32>
    %422 = arith.addf %420, %421 : vector<2x32xf32>
    %423 = math.tanh %422 : vector<2x32xf32>
    %424 = arith.mulf %419, %423 : vector<2x32xf32>
    %cst_107 = arith.constant 0.000000e+00 : f32
    %425 = vector.broadcast %cst_107 : f32 to vector<2x32xf32>
    %426 = arith.maximumf %424, %425 : vector<2x32xf32>
    %c0_108 = arith.constant 0 : index
    %c3_109 = arith.constant 3 : index
    %c0_110 = arith.constant 0 : index
    %427 = vector.load %arg17[%c0_108, %c3_109, %c0_110] : memref<2x8x32xf32, #tpu.memory_space<vmem>>, vector<2x1x32xf32>
    %428 = vector.shape_cast %427 : vector<2x1x32xf32> to vector<2x32xf32>
    %429 = vector.shape_cast %426 : vector<2x32xf32> to vector<2x1x32xf32>
    tpu.vector_store %arg17[%c0_108, %c3_109, %c0_110], %429 {strides = array<i32>} : memref<2x8x32xf32, #tpu.memory_space<vmem>>, vector<2x1x32xf32>,
    %430 = vector.extract_strided_slice %291 {offsets = [0, 4, 0], sizes = [2, 1, 128], strides = [1, 1, 1]} : vector<2x8x128xf32> to vector<2x1x128xf32>
    %431 = vector.shape_cast %430 : vector<2x1x128xf32> to vector<2x128xf32>
    %cst_111 = arith.constant dense<0.000000e+00> : vector<2x128xf32>
    %432 = tpu.matmul %424, %285, %cst_111 {dimension_numbers = #tpu.dot_dimension_numbers<[1], [0], [0], [1], [0, 0, 1, 1], [], []>} : vector<2x32xf32>, vector<32x128xf32>, vector<2x128xf32> -> vector<2x128xf32>
    %433 = arith.addf %431, %432 : vector<2x128xf32>
    %434 = vector.extract_strided_slice %433 {offsets = [0, 0], sizes = [2, 32], strides = [1, 1]} : vector<2x128xf32> to vector<2x32xf32>
    %435 = arith.negf %434 : vector<2x32xf32>
    %436 = math.exp %435 : vector<2x32xf32>
    %cst_112 = arith.constant 1.000000e+00 : f32
    %437 = vector.broadcast %cst_112 : f32 to vector<2x32xf32>
    %438 = arith.addf %437, %436 : vector<2x32xf32>
    %439 = arith.divf %437, %438 : vector<2x32xf32>
    %440 = vector.extract_strided_slice %433 {offsets = [0, 32], sizes = [2, 32], strides = [1, 1]} : vector<2x128xf32> to vector<2x32xf32>
    %441 = arith.negf %440 : vector<2x32xf32>
    %442 = math.exp %441 : vector<2x32xf32>
    %cst_113 = arith.constant 1.000000e+00 : f32
    %443 = vector.broadcast %cst_113 : f32 to vector<2x32xf32>
    %444 = arith.addf %443, %442 : vector<2x32xf32>
    %445 = arith.divf %443, %444 : vector<2x32xf32>
    %446 = vector.extract_strided_slice %433 {offsets = [0, 64], sizes = [2, 32], strides = [1, 1]} : vector<2x128xf32> to vector<2x32xf32>
    %447 = math.tanh %446 : vector<2x32xf32>
    %448 = vector.extract_strided_slice %433 {offsets = [0, 96], sizes = [2, 32], strides = [1, 1]} : vector<2x128xf32> to vector<2x32xf32>
    %449 = arith.negf %448 : vector<2x32xf32>
    %450 = math.exp %449 : vector<2x32xf32>
    %cst_114 = arith.constant 1.000000e+00 : f32
    %451 = vector.broadcast %cst_114 : f32 to vector<2x32xf32>
    %452 = arith.addf %451, %450 : vector<2x32xf32>
    %453 = arith.divf %451, %452 : vector<2x32xf32>
    %454 = arith.mulf %445, %422 : vector<2x32xf32>
    %455 = arith.mulf %439, %447 : vector<2x32xf32>
    %456 = arith.addf %454, %455 : vector<2x32xf32>
    %457 = math.tanh %456 : vector<2x32xf32>
    %458 = arith.mulf %453, %457 : vector<2x32xf32>
    %cst_115 = arith.constant 0.000000e+00 : f32
    %459 = vector.broadcast %cst_115 : f32 to vector<2x32xf32>
    %460 = arith.maximumf %458, %459 : vector<2x32xf32>
    %c0_116 = arith.constant 0 : index
    %c4_117 = arith.constant 4 : index
    %c0_118 = arith.constant 0 : index
    %461 = vector.load %arg17[%c0_116, %c4_117, %c0_118] : memref<2x8x32xf32, #tpu.memory_space<vmem>>, vector<2x1x32xf32>
    %462 = vector.shape_cast %461 : vector<2x1x32xf32> to vector<2x32xf32>
    %463 = vector.shape_cast %460 : vector<2x32xf32> to vector<2x1x32xf32>
    tpu.vector_store %arg17[%c0_116, %c4_117, %c0_118], %463 {strides = array<i32>} : memref<2x8x32xf32, #tpu.memory_space<vmem>>, vector<2x1x32xf32>,
    %464 = vector.extract_strided_slice %291 {offsets = [0, 5, 0], sizes = [2, 1, 128], strides = [1, 1, 1]} : vector<2x8x128xf32> to vector<2x1x128xf32>
    %465 = vector.shape_cast %464 : vector<2x1x128xf32> to vector<2x128xf32>
    %cst_119 = arith.constant dense<0.000000e+00> : vector<2x128xf32>
    %466 = tpu.matmul %458, %285, %cst_119 {dimension_numbers = #tpu.dot_dimension_numbers<[1], [0], [0], [1], [0, 0, 1, 1], [], []>} : vector<2x32xf32>, vector<32x128xf32>, vector<2x128xf32> -> vector<2x128xf32>
    %467 = arith.addf %465, %466 : vector<2x128xf32>
    %468 = vector.extract_strided_slice %467 {offsets = [0, 0], sizes = [2, 32], strides = [1, 1]} : vector<2x128xf32> to vector<2x32xf32>
    %469 = arith.negf %468 : vector<2x32xf32>
    %470 = math.exp %469 : vector<2x32xf32>
    %cst_120 = arith.constant 1.000000e+00 : f32
    %471 = vector.broadcast %cst_120 : f32 to vector<2x32xf32>
    %472 = arith.addf %471, %470 : vector<2x32xf32>
    %473 = arith.divf %471, %472 : vector<2x32xf32>
    %474 = vector.extract_strided_slice %467 {offsets = [0, 32], sizes = [2, 32], strides = [1, 1]} : vector<2x128xf32> to vector<2x32xf32>
    %475 = arith.negf %474 : vector<2x32xf32>
    %476 = math.exp %475 : vector<2x32xf32>
    %cst_121 = arith.constant 1.000000e+00 : f32
    %477 = vector.broadcast %cst_121 : f32 to vector<2x32xf32>
    %478 = arith.addf %477, %476 : vector<2x32xf32>
    %479 = arith.divf %477, %478 : vector<2x32xf32>
    %480 = vector.extract_strided_slice %467 {offsets = [0, 64], sizes = [2, 32], strides = [1, 1]} : vector<2x128xf32> to vector<2x32xf32>
    %481 = math.tanh %480 : vector<2x32xf32>
    %482 = vector.extract_strided_slice %467 {offsets = [0, 96], sizes = [2, 32], strides = [1, 1]} : vector<2x128xf32> to vector<2x32xf32>
    %483 = arith.negf %482 : vector<2x32xf32>
    %484 = math.exp %483 : vector<2x32xf32>
    %cst_122 = arith.constant 1.000000e+00 : f32
    %485 = vector.broadcast %cst_122 : f32 to vector<2x32xf32>
    %486 = arith.addf %485, %484 : vector<2x32xf32>
    %487 = arith.divf %485, %486 : vector<2x32xf32>
    %488 = arith.mulf %479, %456 : vector<2x32xf32>
    %489 = arith.mulf %473, %481 : vector<2x32xf32>
    %490 = arith.addf %488, %489 : vector<2x32xf32>
    %491 = math.tanh %490 : vector<2x32xf32>
    %492 = arith.mulf %487, %491 : vector<2x32xf32>
    %cst_123 = arith.constant 0.000000e+00 : f32
    %493 = vector.broadcast %cst_123 : f32 to vector<2x32xf32>
    %494 = arith.maximumf %492, %493 : vector<2x32xf32>
    %c0_124 = arith.constant 0 : index
    %c5_125 = arith.constant 5 : index
    %c0_126 = arith.constant 0 : index
    %495 = vector.load %arg17[%c0_124, %c5_125, %c0_126] : memref<2x8x32xf32, #tpu.memory_space<vmem>>, vector<2x1x32xf32>
    %496 = vector.shape_cast %495 : vector<2x1x32xf32> to vector<2x32xf32>
    %497 = vector.shape_cast %494 : vector<2x32xf32> to vector<2x1x32xf32>
    tpu.vector_store %arg17[%c0_124, %c5_125, %c0_126], %497 {strides = array<i32>} : memref<2x8x32xf32, #tpu.memory_space<vmem>>, vector<2x1x32xf32>,
    %498 = vector.extract_strided_slice %291 {offsets = [0, 6, 0], sizes = [2, 1, 128], strides = [1, 1, 1]} : vector<2x8x128xf32> to vector<2x1x128xf32>
    %499 = vector.shape_cast %498 : vector<2x1x128xf32> to vector<2x128xf32>
    %cst_127 = arith.constant dense<0.000000e+00> : vector<2x128xf32>
    %500 = tpu.matmul %492, %285, %cst_127 {dimension_numbers = #tpu.dot_dimension_numbers<[1], [0], [0], [1], [0, 0, 1, 1], [], []>} : vector<2x32xf32>, vector<32x128xf32>, vector<2x128xf32> -> vector<2x128xf32>
    %501 = arith.addf %499, %500 : vector<2x128xf32>
    %502 = vector.extract_strided_slice %501 {offsets = [0, 0], sizes = [2, 32], strides = [1, 1]} : vector<2x128xf32> to vector<2x32xf32>
    %503 = arith.negf %502 : vector<2x32xf32>
    %504 = math.exp %503 : vector<2x32xf32>
    %cst_128 = arith.constant 1.000000e+00 : f32
    %505 = vector.broadcast %cst_128 : f32 to vector<2x32xf32>
    %506 = arith.addf %505, %504 : vector<2x32xf32>
    %507 = arith.divf %505, %506 : vector<2x32xf32>
    %508 = vector.extract_strided_slice %501 {offsets = [0, 32], sizes = [2, 32], strides = [1, 1]} : vector<2x128xf32> to vector<2x32xf32>
    %509 = arith.negf %508 : vector<2x32xf32>
    %510 = math.exp %509 : vector<2x32xf32>
    %cst_129 = arith.constant 1.000000e+00 : f32
    %511 = vector.broadcast %cst_129 : f32 to vector<2x32xf32>
    %512 = arith.addf %511, %510 : vector<2x32xf32>
    %513 = arith.divf %511, %512 : vector<2x32xf32>
    %514 = vector.extract_strided_slice %501 {offsets = [0, 64], sizes = [2, 32], strides = [1, 1]} : vector<2x128xf32> to vector<2x32xf32>
    %515 = math.tanh %514 : vector<2x32xf32>
    %516 = vector.extract_strided_slice %501 {offsets = [0, 96], sizes = [2, 32], strides = [1, 1]} : vector<2x128xf32> to vector<2x32xf32>
    %517 = arith.negf %516 : vector<2x32xf32>
    %518 = math.exp %517 : vector<2x32xf32>
    %cst_130 = arith.constant 1.000000e+00 : f32
    %519 = vector.broadcast %cst_130 : f32 to vector<2x32xf32>
    %520 = arith.addf %519, %518 : vector<2x32xf32>
    %521 = arith.divf %519, %520 : vector<2x32xf32>
    %522 = arith.mulf %513, %490 : vector<2x32xf32>
    %523 = arith.mulf %507, %515 : vector<2x32xf32>
    %524 = arith.addf %522, %523 : vector<2x32xf32>
    %525 = math.tanh %524 : vector<2x32xf32>
    %526 = arith.mulf %521, %525 : vector<2x32xf32>
    %cst_131 = arith.constant 0.000000e+00 : f32
    %527 = vector.broadcast %cst_131 : f32 to vector<2x32xf32>
    %528 = arith.maximumf %526, %527 : vector<2x32xf32>
    %c0_132 = arith.constant 0 : index
    %c6_133 = arith.constant 6 : index
    %c0_134 = arith.constant 0 : index
    %529 = vector.load %arg17[%c0_132, %c6_133, %c0_134] : memref<2x8x32xf32, #tpu.memory_space<vmem>>, vector<2x1x32xf32>
    %530 = vector.shape_cast %529 : vector<2x1x32xf32> to vector<2x32xf32>
    %531 = vector.shape_cast %528 : vector<2x32xf32> to vector<2x1x32xf32>
    tpu.vector_store %arg17[%c0_132, %c6_133, %c0_134], %531 {strides = array<i32>} : memref<2x8x32xf32, #tpu.memory_space<vmem>>, vector<2x1x32xf32>,
    %532 = vector.extract_strided_slice %291 {offsets = [0, 7, 0], sizes = [2, 1, 128], strides = [1, 1, 1]} : vector<2x8x128xf32> to vector<2x1x128xf32>
    %533 = vector.shape_cast %532 : vector<2x1x128xf32> to vector<2x128xf32>
    %cst_135 = arith.constant dense<0.000000e+00> : vector<2x128xf32>
    %534 = tpu.matmul %526, %285, %cst_135 {dimension_numbers = #tpu.dot_dimension_numbers<[1], [0], [0], [1], [0, 0, 1, 1], [], []>} : vector<2x32xf32>, vector<32x128xf32>, vector<2x128xf32> -> vector<2x128xf32>
    %535 = arith.addf %533, %534 : vector<2x128xf32>
    %536 = vector.extract_strided_slice %535 {offsets = [0, 0], sizes = [2, 32], strides = [1, 1]} : vector<2x128xf32> to vector<2x32xf32>
    %537 = arith.negf %536 : vector<2x32xf32>
    %538 = math.exp %537 : vector<2x32xf32>
    %cst_136 = arith.constant 1.000000e+00 : f32
    %539 = vector.broadcast %cst_136 : f32 to vector<2x32xf32>
    %540 = arith.addf %539, %538 : vector<2x32xf32>
    %541 = arith.divf %539, %540 : vector<2x32xf32>
    %542 = vector.extract_strided_slice %535 {offsets = [0, 32], sizes = [2, 32], strides = [1, 1]} : vector<2x128xf32> to vector<2x32xf32>
    %543 = arith.negf %542 : vector<2x32xf32>
    %544 = math.exp %543 : vector<2x32xf32>
    %cst_137 = arith.constant 1.000000e+00 : f32
    %545 = vector.broadcast %cst_137 : f32 to vector<2x32xf32>
    %546 = arith.addf %545, %544 : vector<2x32xf32>
    %547 = arith.divf %545, %546 : vector<2x32xf32>
    %548 = vector.extract_strided_slice %535 {offsets = [0, 64], sizes = [2, 32], strides = [1, 1]} : vector<2x128xf32> to vector<2x32xf32>
    %549 = math.tanh %548 : vector<2x32xf32>
    %550 = vector.extract_strided_slice %535 {offsets = [0, 96], sizes = [2, 32], strides = [1, 1]} : vector<2x128xf32> to vector<2x32xf32>
    %551 = arith.negf %550 : vector<2x32xf32>
    %552 = math.exp %551 : vector<2x32xf32>
    %cst_138 = arith.constant 1.000000e+00 : f32
    %553 = vector.broadcast %cst_138 : f32 to vector<2x32xf32>
    %554 = arith.addf %553, %552 : vector<2x32xf32>
    %555 = arith.divf %553, %554 : vector<2x32xf32>
    %556 = arith.mulf %547, %524 : vector<2x32xf32>
    %557 = arith.mulf %541, %549 : vector<2x32xf32>
    %558 = arith.addf %556, %557 : vector<2x32xf32>
    %559 = math.tanh %558 : vector<2x32xf32>
    %560 = arith.mulf %555, %559 : vector<2x32xf32>
    %cst_139 = arith.constant 0.000000e+00 : f32
    %561 = vector.broadcast %cst_139 : f32 to vector<2x32xf32>
    %562 = arith.maximumf %560, %561 : vector<2x32xf32>
    %c0_140 = arith.constant 0 : index
    %c7_141 = arith.constant 7 : index
    %c0_142 = arith.constant 0 : index
    %563 = vector.load %arg17[%c0_140, %c7_141, %c0_142] : memref<2x8x32xf32, #tpu.memory_space<vmem>>, vector<2x1x32xf32>
    %564 = vector.shape_cast %563 : vector<2x1x32xf32> to vector<2x32xf32>
    %565 = vector.shape_cast %562 : vector<2x32xf32> to vector<2x1x32xf32>
    tpu.vector_store %arg17[%c0_140, %c7_141, %c0_142], %565 {strides = array<i32>} : memref<2x8x32xf32, #tpu.memory_space<vmem>>, vector<2x1x32xf32>,
    %c0_143 = arith.constant 0 : index
    %c0_144 = arith.constant 0 : index
    %c0_145 = arith.constant 0 : index
    %566 = vector.load %arg17[%c0_143, %c0_144, %c0_145] : memref<2x8x32xf32, #tpu.memory_space<vmem>>, vector<2x8x32xf32>
    %567 = vector.shape_cast %566 : vector<2x8x32xf32> to vector<16x32xf32>
    %c0_146 = arith.constant 0 : index
    %c0_147 = arith.constant 0 : index
    %568 = vector.load %arg8[%c0_146, %c0_147] : memref<16x64xf32, #tpu.memory_space<vmem>>, vector<16x64xf32>
    %c0_148 = arith.constant 0 : index
    %c0_149 = arith.constant 0 : index
    %569 = vector.load %arg7[%c0_148, %c0_149] : memref<32x64xf32, #tpu.memory_space<vmem>>, vector<32x64xf32>
    %cst_150 = arith.constant dense<0.000000e+00> : vector<16x64xf32>
    %570 = tpu.matmul %567, %569, %cst_150 {dimension_numbers = #tpu.dot_dimension_numbers<[1], [0], [0], [1], [0, 0, 1, 1], [], []>} : vector<16x32xf32>, vector<32x64xf32>, vector<16x64xf32> -> vector<16x64xf32>
    %c0_151 = arith.constant 0 : index
    %c0_152 = arith.constant 0 : index
    %571 = vector.load %arg9[%c0_151, %c0_152] : memref<1x64xf32, #tpu.memory_space<vmem>>, vector<1x64xf32>
    %572 = vector.broadcast %571 : vector<1x64xf32> to vector<16x64xf32>
    %573 = arith.addf %570, %572 : vector<16x64xf32>
    %574 = vector.shape_cast %573 : vector<16x64xf32> to vector<2x8x64xf32>
    %cst_153 = arith.constant 0.000000e+00 : f32
    %575 = vector.broadcast %cst_153 : f32 to vector<2x16xf32>
    %cst_154 = arith.constant 0.000000e+00 : f32
    %576 = vector.broadcast %cst_154 : f32 to vector<2x16xf32>
    %577 = vector.extract_strided_slice %574 {offsets = [0, 0, 0], sizes = [2, 1, 64], strides = [1, 1, 1]} : vector<2x8x64xf32> to vector<2x1x64xf32>
    %578 = vector.shape_cast %577 : vector<2x1x64xf32> to vector<2x64xf32>
    %cst_155 = arith.constant dense<0.000000e+00> : vector<2x64xf32>
    %579 = tpu.matmul %575, %568, %cst_155 {dimension_numbers = #tpu.dot_dimension_numbers<[1], [0], [0], [1], [0, 0, 1, 1], [], []>} : vector<2x16xf32>, vector<16x64xf32>, vector<2x64xf32> -> vector<2x64xf32>
    %580 = arith.addf %578, %579 : vector<2x64xf32>
    %581 = vector.extract_strided_slice %580 {offsets = [0, 0], sizes = [2, 16], strides = [1, 1]} : vector<2x64xf32> to vector<2x16xf32>
    %582 = arith.negf %581 : vector<2x16xf32>
    %583 = math.exp %582 : vector<2x16xf32>
    %cst_156 = arith.constant 1.000000e+00 : f32
    %584 = vector.broadcast %cst_156 : f32 to vector<2x16xf32>
    %585 = arith.addf %584, %583 : vector<2x16xf32>
    %586 = arith.divf %584, %585 : vector<2x16xf32>
    %587 = vector.extract_strided_slice %580 {offsets = [0, 16], sizes = [2, 16], strides = [1, 1]} : vector<2x64xf32> to vector<2x16xf32>
    %588 = arith.negf %587 : vector<2x16xf32>
    %589 = math.exp %588 : vector<2x16xf32>
    %cst_157 = arith.constant 1.000000e+00 : f32
    %590 = vector.broadcast %cst_157 : f32 to vector<2x16xf32>
    %591 = arith.addf %590, %589 : vector<2x16xf32>
    %592 = arith.divf %590, %591 : vector<2x16xf32>
    %593 = vector.extract_strided_slice %580 {offsets = [0, 32], sizes = [2, 16], strides = [1, 1]} : vector<2x64xf32> to vector<2x16xf32>
    %594 = math.tanh %593 : vector<2x16xf32>
    %595 = vector.extract_strided_slice %580 {offsets = [0, 48], sizes = [2, 16], strides = [1, 1]} : vector<2x64xf32> to vector<2x16xf32>
    %596 = arith.negf %595 : vector<2x16xf32>
    %597 = math.exp %596 : vector<2x16xf32>
    %cst_158 = arith.constant 1.000000e+00 : f32
    %598 = vector.broadcast %cst_158 : f32 to vector<2x16xf32>
    %599 = arith.addf %598, %597 : vector<2x16xf32>
    %600 = arith.divf %598, %599 : vector<2x16xf32>
    %601 = arith.mulf %592, %576 : vector<2x16xf32>
    %602 = arith.mulf %586, %594 : vector<2x16xf32>
    %603 = arith.addf %601, %602 : vector<2x16xf32>
    %604 = math.tanh %603 : vector<2x16xf32>
    %605 = arith.mulf %600, %604 : vector<2x16xf32>
    %cst_159 = arith.constant 0.000000e+00 : f32
    %606 = vector.broadcast %cst_159 : f32 to vector<2x16xf32>
    %607 = arith.maximumf %605, %606 : vector<2x16xf32>
    %c0_160 = arith.constant 0 : index
    %c0_161 = arith.constant 0 : index
    %c0_162 = arith.constant 0 : index
    %608 = vector.load %arg18[%c0_160, %c0_161, %c0_162] : memref<2x8x16xf32, #tpu.memory_space<vmem>>, vector<2x1x16xf32>
    %609 = vector.shape_cast %608 : vector<2x1x16xf32> to vector<2x16xf32>
    %610 = vector.shape_cast %607 : vector<2x16xf32> to vector<2x1x16xf32>
    tpu.vector_store %arg18[%c0_160, %c0_161, %c0_162], %610 {strides = array<i32>} : memref<2x8x16xf32, #tpu.memory_space<vmem>>, vector<2x1x16xf32>,
    %611 = vector.extract_strided_slice %574 {offsets = [0, 1, 0], sizes = [2, 1, 64], strides = [1, 1, 1]} : vector<2x8x64xf32> to vector<2x1x64xf32>
    %612 = vector.shape_cast %611 : vector<2x1x64xf32> to vector<2x64xf32>
    %cst_163 = arith.constant dense<0.000000e+00> : vector<2x64xf32>
    %613 = tpu.matmul %605, %568, %cst_163 {dimension_numbers = #tpu.dot_dimension_numbers<[1], [0], [0], [1], [0, 0, 1, 1], [], []>} : vector<2x16xf32>, vector<16x64xf32>, vector<2x64xf32> -> vector<2x64xf32>
    %614 = arith.addf %612, %613 : vector<2x64xf32>
    %615 = vector.extract_strided_slice %614 {offsets = [0, 0], sizes = [2, 16], strides = [1, 1]} : vector<2x64xf32> to vector<2x16xf32>
    %616 = arith.negf %615 : vector<2x16xf32>
    %617 = math.exp %616 : vector<2x16xf32>
    %cst_164 = arith.constant 1.000000e+00 : f32
    %618 = vector.broadcast %cst_164 : f32 to vector<2x16xf32>
    %619 = arith.addf %618, %617 : vector<2x16xf32>
    %620 = arith.divf %618, %619 : vector<2x16xf32>
    %621 = vector.extract_strided_slice %614 {offsets = [0, 16], sizes = [2, 16], strides = [1, 1]} : vector<2x64xf32> to vector<2x16xf32>
    %622 = arith.negf %621 : vector<2x16xf32>
    %623 = math.exp %622 : vector<2x16xf32>
    %cst_165 = arith.constant 1.000000e+00 : f32
    %624 = vector.broadcast %cst_165 : f32 to vector<2x16xf32>
    %625 = arith.addf %624, %623 : vector<2x16xf32>
    %626 = arith.divf %624, %625 : vector<2x16xf32>
    %627 = vector.extract_strided_slice %614 {offsets = [0, 32], sizes = [2, 16], strides = [1, 1]} : vector<2x64xf32> to vector<2x16xf32>
    %628 = math.tanh %627 : vector<2x16xf32>
    %629 = vector.extract_strided_slice %614 {offsets = [0, 48], sizes = [2, 16], strides = [1, 1]} : vector<2x64xf32> to vector<2x16xf32>
    %630 = arith.negf %629 : vector<2x16xf32>
    %631 = math.exp %630 : vector<2x16xf32>
    %cst_166 = arith.constant 1.000000e+00 : f32
    %632 = vector.broadcast %cst_166 : f32 to vector<2x16xf32>
    %633 = arith.addf %632, %631 : vector<2x16xf32>
    %634 = arith.divf %632, %633 : vector<2x16xf32>
    %635 = arith.mulf %626, %603 : vector<2x16xf32>
    %636 = arith.mulf %620, %628 : vector<2x16xf32>
    %637 = arith.addf %635, %636 : vector<2x16xf32>
    %638 = math.tanh %637 : vector<2x16xf32>
    %639 = arith.mulf %634, %638 : vector<2x16xf32>
    %cst_167 = arith.constant 0.000000e+00 : f32
    %640 = vector.broadcast %cst_167 : f32 to vector<2x16xf32>
    %641 = arith.maximumf %639, %640 : vector<2x16xf32>
    %c0_168 = arith.constant 0 : index
    %c1_169 = arith.constant 1 : index
    %c0_170 = arith.constant 0 : index
    %642 = vector.load %arg18[%c0_168, %c1_169, %c0_170] : memref<2x8x16xf32, #tpu.memory_space<vmem>>, vector<2x1x16xf32>
    %643 = vector.shape_cast %642 : vector<2x1x16xf32> to vector<2x16xf32>
    %644 = vector.shape_cast %641 : vector<2x16xf32> to vector<2x1x16xf32>
    tpu.vector_store %arg18[%c0_168, %c1_169, %c0_170], %644 {strides = array<i32>} : memref<2x8x16xf32, #tpu.memory_space<vmem>>, vector<2x1x16xf32>,
    %645 = vector.extract_strided_slice %574 {offsets = [0, 2, 0], sizes = [2, 1, 64], strides = [1, 1, 1]} : vector<2x8x64xf32> to vector<2x1x64xf32>
    %646 = vector.shape_cast %645 : vector<2x1x64xf32> to vector<2x64xf32>
    %cst_171 = arith.constant dense<0.000000e+00> : vector<2x64xf32>
    %647 = tpu.matmul %639, %568, %cst_171 {dimension_numbers = #tpu.dot_dimension_numbers<[1], [0], [0], [1], [0, 0, 1, 1], [], []>} : vector<2x16xf32>, vector<16x64xf32>, vector<2x64xf32> -> vector<2x64xf32>
    %648 = arith.addf %646, %647 : vector<2x64xf32>
    %649 = vector.extract_strided_slice %648 {offsets = [0, 0], sizes = [2, 16], strides = [1, 1]} : vector<2x64xf32> to vector<2x16xf32>
    %650 = arith.negf %649 : vector<2x16xf32>
    %651 = math.exp %650 : vector<2x16xf32>
    %cst_172 = arith.constant 1.000000e+00 : f32
    %652 = vector.broadcast %cst_172 : f32 to vector<2x16xf32>
    %653 = arith.addf %652, %651 : vector<2x16xf32>
    %654 = arith.divf %652, %653 : vector<2x16xf32>
    %655 = vector.extract_strided_slice %648 {offsets = [0, 16], sizes = [2, 16], strides = [1, 1]} : vector<2x64xf32> to vector<2x16xf32>
    %656 = arith.negf %655 : vector<2x16xf32>
    %657 = math.exp %656 : vector<2x16xf32>
    %cst_173 = arith.constant 1.000000e+00 : f32
    %658 = vector.broadcast %cst_173 : f32 to vector<2x16xf32>
    %659 = arith.addf %658, %657 : vector<2x16xf32>
    %660 = arith.divf %658, %659 : vector<2x16xf32>
    %661 = vector.extract_strided_slice %648 {offsets = [0, 32], sizes = [2, 16], strides = [1, 1]} : vector<2x64xf32> to vector<2x16xf32>
    %662 = math.tanh %661 : vector<2x16xf32>
    %663 = vector.extract_strided_slice %648 {offsets = [0, 48], sizes = [2, 16], strides = [1, 1]} : vector<2x64xf32> to vector<2x16xf32>
    %664 = arith.negf %663 : vector<2x16xf32>
    %665 = math.exp %664 : vector<2x16xf32>
    %cst_174 = arith.constant 1.000000e+00 : f32
    %666 = vector.broadcast %cst_174 : f32 to vector<2x16xf32>
    %667 = arith.addf %666, %665 : vector<2x16xf32>
    %668 = arith.divf %666, %667 : vector<2x16xf32>
    %669 = arith.mulf %660, %637 : vector<2x16xf32>
    %670 = arith.mulf %654, %662 : vector<2x16xf32>
    %671 = arith.addf %669, %670 : vector<2x16xf32>
    %672 = math.tanh %671 : vector<2x16xf32>
    %673 = arith.mulf %668, %672 : vector<2x16xf32>
    %cst_175 = arith.constant 0.000000e+00 : f32
    %674 = vector.broadcast %cst_175 : f32 to vector<2x16xf32>
    %675 = arith.maximumf %673, %674 : vector<2x16xf32>
    %c0_176 = arith.constant 0 : index
    %c2_177 = arith.constant 2 : index
    %c0_178 = arith.constant 0 : index
    %676 = vector.load %arg18[%c0_176, %c2_177, %c0_178] : memref<2x8x16xf32, #tpu.memory_space<vmem>>, vector<2x1x16xf32>
    %677 = vector.shape_cast %676 : vector<2x1x16xf32> to vector<2x16xf32>
    %678 = vector.shape_cast %675 : vector<2x16xf32> to vector<2x1x16xf32>
    tpu.vector_store %arg18[%c0_176, %c2_177, %c0_178], %678 {strides = array<i32>} : memref<2x8x16xf32, #tpu.memory_space<vmem>>, vector<2x1x16xf32>,
    %679 = vector.extract_strided_slice %574 {offsets = [0, 3, 0], sizes = [2, 1, 64], strides = [1, 1, 1]} : vector<2x8x64xf32> to vector<2x1x64xf32>
    %680 = vector.shape_cast %679 : vector<2x1x64xf32> to vector<2x64xf32>
    %cst_179 = arith.constant dense<0.000000e+00> : vector<2x64xf32>
    %681 = tpu.matmul %673, %568, %cst_179 {dimension_numbers = #tpu.dot_dimension_numbers<[1], [0], [0], [1], [0, 0, 1, 1], [], []>} : vector<2x16xf32>, vector<16x64xf32>, vector<2x64xf32> -> vector<2x64xf32>
    %682 = arith.addf %680, %681 : vector<2x64xf32>
    %683 = vector.extract_strided_slice %682 {offsets = [0, 0], sizes = [2, 16], strides = [1, 1]} : vector<2x64xf32> to vector<2x16xf32>
    %684 = arith.negf %683 : vector<2x16xf32>
    %685 = math.exp %684 : vector<2x16xf32>
    %cst_180 = arith.constant 1.000000e+00 : f32
    %686 = vector.broadcast %cst_180 : f32 to vector<2x16xf32>
    %687 = arith.addf %686, %685 : vector<2x16xf32>
    %688 = arith.divf %686, %687 : vector<2x16xf32>
    %689 = vector.extract_strided_slice %682 {offsets = [0, 16], sizes = [2, 16], strides = [1, 1]} : vector<2x64xf32> to vector<2x16xf32>
    %690 = arith.negf %689 : vector<2x16xf32>
    %691 = math.exp %690 : vector<2x16xf32>
    %cst_181 = arith.constant 1.000000e+00 : f32
    %692 = vector.broadcast %cst_181 : f32 to vector<2x16xf32>
    %693 = arith.addf %692, %691 : vector<2x16xf32>
    %694 = arith.divf %692, %693 : vector<2x16xf32>
    %695 = vector.extract_strided_slice %682 {offsets = [0, 32], sizes = [2, 16], strides = [1, 1]} : vector<2x64xf32> to vector<2x16xf32>
    %696 = math.tanh %695 : vector<2x16xf32>
    %697 = vector.extract_strided_slice %682 {offsets = [0, 48], sizes = [2, 16], strides = [1, 1]} : vector<2x64xf32> to vector<2x16xf32>
    %698 = arith.negf %697 : vector<2x16xf32>
    %699 = math.exp %698 : vector<2x16xf32>
    %cst_182 = arith.constant 1.000000e+00 : f32
    %700 = vector.broadcast %cst_182 : f32 to vector<2x16xf32>
    %701 = arith.addf %700, %699 : vector<2x16xf32>
    %702 = arith.divf %700, %701 : vector<2x16xf32>
    %703 = arith.mulf %694, %671 : vector<2x16xf32>
    %704 = arith.mulf %688, %696 : vector<2x16xf32>
    %705 = arith.addf %703, %704 : vector<2x16xf32>
    %706 = math.tanh %705 : vector<2x16xf32>
    %707 = arith.mulf %702, %706 : vector<2x16xf32>
    %cst_183 = arith.constant 0.000000e+00 : f32
    %708 = vector.broadcast %cst_183 : f32 to vector<2x16xf32>
    %709 = arith.maximumf %707, %708 : vector<2x16xf32>
    %c0_184 = arith.constant 0 : index
    %c3_185 = arith.constant 3 : index
    %c0_186 = arith.constant 0 : index
    %710 = vector.load %arg18[%c0_184, %c3_185, %c0_186] : memref<2x8x16xf32, #tpu.memory_space<vmem>>, vector<2x1x16xf32>
    %711 = vector.shape_cast %710 : vector<2x1x16xf32> to vector<2x16xf32>
    %712 = vector.shape_cast %709 : vector<2x16xf32> to vector<2x1x16xf32>
    tpu.vector_store %arg18[%c0_184, %c3_185, %c0_186], %712 {strides = array<i32>} : memref<2x8x16xf32, #tpu.memory_space<vmem>>, vector<2x1x16xf32>,
    %713 = vector.extract_strided_slice %574 {offsets = [0, 4, 0], sizes = [2, 1, 64], strides = [1, 1, 1]} : vector<2x8x64xf32> to vector<2x1x64xf32>
    %714 = vector.shape_cast %713 : vector<2x1x64xf32> to vector<2x64xf32>
    %cst_187 = arith.constant dense<0.000000e+00> : vector<2x64xf32>
    %715 = tpu.matmul %707, %568, %cst_187 {dimension_numbers = #tpu.dot_dimension_numbers<[1], [0], [0], [1], [0, 0, 1, 1], [], []>} : vector<2x16xf32>, vector<16x64xf32>, vector<2x64xf32> -> vector<2x64xf32>
    %716 = arith.addf %714, %715 : vector<2x64xf32>
    %717 = vector.extract_strided_slice %716 {offsets = [0, 0], sizes = [2, 16], strides = [1, 1]} : vector<2x64xf32> to vector<2x16xf32>
    %718 = arith.negf %717 : vector<2x16xf32>
    %719 = math.exp %718 : vector<2x16xf32>
    %cst_188 = arith.constant 1.000000e+00 : f32
    %720 = vector.broadcast %cst_188 : f32 to vector<2x16xf32>
    %721 = arith.addf %720, %719 : vector<2x16xf32>
    %722 = arith.divf %720, %721 : vector<2x16xf32>
    %723 = vector.extract_strided_slice %716 {offsets = [0, 16], sizes = [2, 16], strides = [1, 1]} : vector<2x64xf32> to vector<2x16xf32>
    %724 = arith.negf %723 : vector<2x16xf32>
    %725 = math.exp %724 : vector<2x16xf32>
    %cst_189 = arith.constant 1.000000e+00 : f32
    %726 = vector.broadcast %cst_189 : f32 to vector<2x16xf32>
    %727 = arith.addf %726, %725 : vector<2x16xf32>
    %728 = arith.divf %726, %727 : vector<2x16xf32>
    %729 = vector.extract_strided_slice %716 {offsets = [0, 32], sizes = [2, 16], strides = [1, 1]} : vector<2x64xf32> to vector<2x16xf32>
    %730 = math.tanh %729 : vector<2x16xf32>
    %731 = vector.extract_strided_slice %716 {offsets = [0, 48], sizes = [2, 16], strides = [1, 1]} : vector<2x64xf32> to vector<2x16xf32>
    %732 = arith.negf %731 : vector<2x16xf32>
    %733 = math.exp %732 : vector<2x16xf32>
    %cst_190 = arith.constant 1.000000e+00 : f32
    %734 = vector.broadcast %cst_190 : f32 to vector<2x16xf32>
    %735 = arith.addf %734, %733 : vector<2x16xf32>
    %736 = arith.divf %734, %735 : vector<2x16xf32>
    %737 = arith.mulf %728, %705 : vector<2x16xf32>
    %738 = arith.mulf %722, %730 : vector<2x16xf32>
    %739 = arith.addf %737, %738 : vector<2x16xf32>
    %740 = math.tanh %739 : vector<2x16xf32>
    %741 = arith.mulf %736, %740 : vector<2x16xf32>
    %cst_191 = arith.constant 0.000000e+00 : f32
    %742 = vector.broadcast %cst_191 : f32 to vector<2x16xf32>
    %743 = arith.maximumf %741, %742 : vector<2x16xf32>
    %c0_192 = arith.constant 0 : index
    %c4_193 = arith.constant 4 : index
    %c0_194 = arith.constant 0 : index
    %744 = vector.load %arg18[%c0_192, %c4_193, %c0_194] : memref<2x8x16xf32, #tpu.memory_space<vmem>>, vector<2x1x16xf32>
    %745 = vector.shape_cast %744 : vector<2x1x16xf32> to vector<2x16xf32>
    %746 = vector.shape_cast %743 : vector<2x16xf32> to vector<2x1x16xf32>
    tpu.vector_store %arg18[%c0_192, %c4_193, %c0_194], %746 {strides = array<i32>} : memref<2x8x16xf32, #tpu.memory_space<vmem>>, vector<2x1x16xf32>,
    %747 = vector.extract_strided_slice %574 {offsets = [0, 5, 0], sizes = [2, 1, 64], strides = [1, 1, 1]} : vector<2x8x64xf32> to vector<2x1x64xf32>
    %748 = vector.shape_cast %747 : vector<2x1x64xf32> to vector<2x64xf32>
    %cst_195 = arith.constant dense<0.000000e+00> : vector<2x64xf32>
    %749 = tpu.matmul %741, %568, %cst_195 {dimension_numbers = #tpu.dot_dimension_numbers<[1], [0], [0], [1], [0, 0, 1, 1], [], []>} : vector<2x16xf32>, vector<16x64xf32>, vector<2x64xf32> -> vector<2x64xf32>
    %750 = arith.addf %748, %749 : vector<2x64xf32>
    %751 = vector.extract_strided_slice %750 {offsets = [0, 0], sizes = [2, 16], strides = [1, 1]} : vector<2x64xf32> to vector<2x16xf32>
    %752 = arith.negf %751 : vector<2x16xf32>
    %753 = math.exp %752 : vector<2x16xf32>
    %cst_196 = arith.constant 1.000000e+00 : f32
    %754 = vector.broadcast %cst_196 : f32 to vector<2x16xf32>
    %755 = arith.addf %754, %753 : vector<2x16xf32>
    %756 = arith.divf %754, %755 : vector<2x16xf32>
    %757 = vector.extract_strided_slice %750 {offsets = [0, 16], sizes = [2, 16], strides = [1, 1]} : vector<2x64xf32> to vector<2x16xf32>
    %758 = arith.negf %757 : vector<2x16xf32>
    %759 = math.exp %758 : vector<2x16xf32>
    %cst_197 = arith.constant 1.000000e+00 : f32
    %760 = vector.broadcast %cst_197 : f32 to vector<2x16xf32>
    %761 = arith.addf %760, %759 : vector<2x16xf32>
    %762 = arith.divf %760, %761 : vector<2x16xf32>
    %763 = vector.extract_strided_slice %750 {offsets = [0, 32], sizes = [2, 16], strides = [1, 1]} : vector<2x64xf32> to vector<2x16xf32>
    %764 = math.tanh %763 : vector<2x16xf32>
    %765 = vector.extract_strided_slice %750 {offsets = [0, 48], sizes = [2, 16], strides = [1, 1]} : vector<2x64xf32> to vector<2x16xf32>
    %766 = arith.negf %765 : vector<2x16xf32>
    %767 = math.exp %766 : vector<2x16xf32>
    %cst_198 = arith.constant 1.000000e+00 : f32
    %768 = vector.broadcast %cst_198 : f32 to vector<2x16xf32>
    %769 = arith.addf %768, %767 : vector<2x16xf32>
    %770 = arith.divf %768, %769 : vector<2x16xf32>
    %771 = arith.mulf %762, %739 : vector<2x16xf32>
    %772 = arith.mulf %756, %764 : vector<2x16xf32>
    %773 = arith.addf %771, %772 : vector<2x16xf32>
    %774 = math.tanh %773 : vector<2x16xf32>
    %775 = arith.mulf %770, %774 : vector<2x16xf32>
    %cst_199 = arith.constant 0.000000e+00 : f32
    %776 = vector.broadcast %cst_199 : f32 to vector<2x16xf32>
    %777 = arith.maximumf %775, %776 : vector<2x16xf32>
    %c0_200 = arith.constant 0 : index
    %c5_201 = arith.constant 5 : index
    %c0_202 = arith.constant 0 : index
    %778 = vector.load %arg18[%c0_200, %c5_201, %c0_202] : memref<2x8x16xf32, #tpu.memory_space<vmem>>, vector<2x1x16xf32>
    %779 = vector.shape_cast %778 : vector<2x1x16xf32> to vector<2x16xf32>
    %780 = vector.shape_cast %777 : vector<2x16xf32> to vector<2x1x16xf32>
    tpu.vector_store %arg18[%c0_200, %c5_201, %c0_202], %780 {strides = array<i32>} : memref<2x8x16xf32, #tpu.memory_space<vmem>>, vector<2x1x16xf32>,
    %781 = vector.extract_strided_slice %574 {offsets = [0, 6, 0], sizes = [2, 1, 64], strides = [1, 1, 1]} : vector<2x8x64xf32> to vector<2x1x64xf32>
    %782 = vector.shape_cast %781 : vector<2x1x64xf32> to vector<2x64xf32>
    %cst_203 = arith.constant dense<0.000000e+00> : vector<2x64xf32>
    %783 = tpu.matmul %775, %568, %cst_203 {dimension_numbers = #tpu.dot_dimension_numbers<[1], [0], [0], [1], [0, 0, 1, 1], [], []>} : vector<2x16xf32>, vector<16x64xf32>, vector<2x64xf32> -> vector<2x64xf32>
    %784 = arith.addf %782, %783 : vector<2x64xf32>
    %785 = vector.extract_strided_slice %784 {offsets = [0, 0], sizes = [2, 16], strides = [1, 1]} : vector<2x64xf32> to vector<2x16xf32>
    %786 = arith.negf %785 : vector<2x16xf32>
    %787 = math.exp %786 : vector<2x16xf32>
    %cst_204 = arith.constant 1.000000e+00 : f32
    %788 = vector.broadcast %cst_204 : f32 to vector<2x16xf32>
    %789 = arith.addf %788, %787 : vector<2x16xf32>
    %790 = arith.divf %788, %789 : vector<2x16xf32>
    %791 = vector.extract_strided_slice %784 {offsets = [0, 16], sizes = [2, 16], strides = [1, 1]} : vector<2x64xf32> to vector<2x16xf32>
    %792 = arith.negf %791 : vector<2x16xf32>
    %793 = math.exp %792 : vector<2x16xf32>
    %cst_205 = arith.constant 1.000000e+00 : f32
    %794 = vector.broadcast %cst_205 : f32 to vector<2x16xf32>
    %795 = arith.addf %794, %793 : vector<2x16xf32>
    %796 = arith.divf %794, %795 : vector<2x16xf32>
    %797 = vector.extract_strided_slice %784 {offsets = [0, 32], sizes = [2, 16], strides = [1, 1]} : vector<2x64xf32> to vector<2x16xf32>
    %798 = math.tanh %797 : vector<2x16xf32>
    %799 = vector.extract_strided_slice %784 {offsets = [0, 48], sizes = [2, 16], strides = [1, 1]} : vector<2x64xf32> to vector<2x16xf32>
    %800 = arith.negf %799 : vector<2x16xf32>
    %801 = math.exp %800 : vector<2x16xf32>
    %cst_206 = arith.constant 1.000000e+00 : f32
    %802 = vector.broadcast %cst_206 : f32 to vector<2x16xf32>
    %803 = arith.addf %802, %801 : vector<2x16xf32>
    %804 = arith.divf %802, %803 : vector<2x16xf32>
    %805 = arith.mulf %796, %773 : vector<2x16xf32>
    %806 = arith.mulf %790, %798 : vector<2x16xf32>
    %807 = arith.addf %805, %806 : vector<2x16xf32>
    %808 = math.tanh %807 : vector<2x16xf32>
    %809 = arith.mulf %804, %808 : vector<2x16xf32>
    %cst_207 = arith.constant 0.000000e+00 : f32
    %810 = vector.broadcast %cst_207 : f32 to vector<2x16xf32>
    %811 = arith.maximumf %809, %810 : vector<2x16xf32>
    %c0_208 = arith.constant 0 : index
    %c6_209 = arith.constant 6 : index
    %c0_210 = arith.constant 0 : index
    %812 = vector.load %arg18[%c0_208, %c6_209, %c0_210] : memref<2x8x16xf32, #tpu.memory_space<vmem>>, vector<2x1x16xf32>
    %813 = vector.shape_cast %812 : vector<2x1x16xf32> to vector<2x16xf32>
    %814 = vector.shape_cast %811 : vector<2x16xf32> to vector<2x1x16xf32>
    tpu.vector_store %arg18[%c0_208, %c6_209, %c0_210], %814 {strides = array<i32>} : memref<2x8x16xf32, #tpu.memory_space<vmem>>, vector<2x1x16xf32>,
    %815 = vector.extract_strided_slice %574 {offsets = [0, 7, 0], sizes = [2, 1, 64], strides = [1, 1, 1]} : vector<2x8x64xf32> to vector<2x1x64xf32>
    %816 = vector.shape_cast %815 : vector<2x1x64xf32> to vector<2x64xf32>
    %cst_211 = arith.constant dense<0.000000e+00> : vector<2x64xf32>
    %817 = tpu.matmul %809, %568, %cst_211 {dimension_numbers = #tpu.dot_dimension_numbers<[1], [0], [0], [1], [0, 0, 1, 1], [], []>} : vector<2x16xf32>, vector<16x64xf32>, vector<2x64xf32> -> vector<2x64xf32>
    %818 = arith.addf %816, %817 : vector<2x64xf32>
    %819 = vector.extract_strided_slice %818 {offsets = [0, 0], sizes = [2, 16], strides = [1, 1]} : vector<2x64xf32> to vector<2x16xf32>
    %820 = arith.negf %819 : vector<2x16xf32>
    %821 = math.exp %820 : vector<2x16xf32>
    %cst_212 = arith.constant 1.000000e+00 : f32
    %822 = vector.broadcast %cst_212 : f32 to vector<2x16xf32>
    %823 = arith.addf %822, %821 : vector<2x16xf32>
    %824 = arith.divf %822, %823 : vector<2x16xf32>
    %825 = vector.extract_strided_slice %818 {offsets = [0, 16], sizes = [2, 16], strides = [1, 1]} : vector<2x64xf32> to vector<2x16xf32>
    %826 = arith.negf %825 : vector<2x16xf32>
    %827 = math.exp %826 : vector<2x16xf32>
    %cst_213 = arith.constant 1.000000e+00 : f32
    %828 = vector.broadcast %cst_213 : f32 to vector<2x16xf32>
    %829 = arith.addf %828, %827 : vector<2x16xf32>
    %830 = arith.divf %828, %829 : vector<2x16xf32>
    %831 = vector.extract_strided_slice %818 {offsets = [0, 32], sizes = [2, 16], strides = [1, 1]} : vector<2x64xf32> to vector<2x16xf32>
    %832 = math.tanh %831 : vector<2x16xf32>
    %833 = vector.extract_strided_slice %818 {offsets = [0, 48], sizes = [2, 16], strides = [1, 1]} : vector<2x64xf32> to vector<2x16xf32>
    %834 = arith.negf %833 : vector<2x16xf32>
    %835 = math.exp %834 : vector<2x16xf32>
    %cst_214 = arith.constant 1.000000e+00 : f32
    %836 = vector.broadcast %cst_214 : f32 to vector<2x16xf32>
    %837 = arith.addf %836, %835 : vector<2x16xf32>
    %838 = arith.divf %836, %837 : vector<2x16xf32>
    %839 = arith.mulf %830, %807 : vector<2x16xf32>
    %840 = arith.mulf %824, %832 : vector<2x16xf32>
    %841 = arith.addf %839, %840 : vector<2x16xf32>
    %842 = math.tanh %841 : vector<2x16xf32>
    %843 = arith.mulf %838, %842 : vector<2x16xf32>
    %cst_215 = arith.constant 0.000000e+00 : f32
    %844 = vector.broadcast %cst_215 : f32 to vector<2x16xf32>
    %845 = arith.maximumf %843, %844 : vector<2x16xf32>
    %c0_216 = arith.constant 0 : index
    %c7_217 = arith.constant 7 : index
    %c0_218 = arith.constant 0 : index
    %846 = vector.load %arg18[%c0_216, %c7_217, %c0_218] : memref<2x8x16xf32, #tpu.memory_space<vmem>>, vector<2x1x16xf32>
    %847 = vector.shape_cast %846 : vector<2x1x16xf32> to vector<2x16xf32>
    %848 = vector.shape_cast %845 : vector<2x16xf32> to vector<2x1x16xf32>
    tpu.vector_store %arg18[%c0_216, %c7_217, %c0_218], %848 {strides = array<i32>} : memref<2x8x16xf32, #tpu.memory_space<vmem>>, vector<2x1x16xf32>,
    %c0_219 = arith.constant 0 : index
    %c0_220 = arith.constant 0 : index
    %c0_221 = arith.constant 0 : index
    %849 = vector.load %arg18[%c0_219, %c0_220, %c0_221] : memref<2x8x16xf32, #tpu.memory_space<vmem>>, vector<2x8x16xf32>
    %850 = vector.shape_cast %849 : vector<2x8x16xf32> to vector<16x16xf32>
    %c0_222 = arith.constant 0 : index
    %c0_223 = arith.constant 0 : index
    %851 = vector.load %arg11[%c0_222, %c0_223] : memref<16x64xf32, #tpu.memory_space<vmem>>, vector<16x64xf32>
    %c0_224 = arith.constant 0 : index
    %c0_225 = arith.constant 0 : index
    %852 = vector.load %arg10[%c0_224, %c0_225] : memref<16x64xf32, #tpu.memory_space<vmem>>, vector<16x64xf32>
    %cst_226 = arith.constant dense<0.000000e+00> : vector<16x64xf32>
    %853 = tpu.matmul %850, %852, %cst_226 {dimension_numbers = #tpu.dot_dimension_numbers<[1], [0], [0], [1], [0, 0, 1, 1], [], []>} : vector<16x16xf32>, vector<16x64xf32>, vector<16x64xf32> -> vector<16x64xf32>
    %c0_227 = arith.constant 0 : index
    %c0_228 = arith.constant 0 : index
    %854 = vector.load %arg12[%c0_227, %c0_228] : memref<1x64xf32, #tpu.memory_space<vmem>>, vector<1x64xf32>
    %855 = vector.broadcast %854 : vector<1x64xf32> to vector<16x64xf32>
    %856 = arith.addf %853, %855 : vector<16x64xf32>
    %857 = vector.shape_cast %856 : vector<16x64xf32> to vector<2x8x64xf32>
    %cst_229 = arith.constant 0.000000e+00 : f32
    %858 = vector.broadcast %cst_229 : f32 to vector<2x16xf32>
    %cst_230 = arith.constant 0.000000e+00 : f32
    %859 = vector.broadcast %cst_230 : f32 to vector<2x16xf32>
    %860 = vector.extract_strided_slice %857 {offsets = [0, 0, 0], sizes = [2, 1, 64], strides = [1, 1, 1]} : vector<2x8x64xf32> to vector<2x1x64xf32>
    %861 = vector.shape_cast %860 : vector<2x1x64xf32> to vector<2x64xf32>
    %cst_231 = arith.constant dense<0.000000e+00> : vector<2x64xf32>
    %862 = tpu.matmul %858, %851, %cst_231 {dimension_numbers = #tpu.dot_dimension_numbers<[1], [0], [0], [1], [0, 0, 1, 1], [], []>} : vector<2x16xf32>, vector<16x64xf32>, vector<2x64xf32> -> vector<2x64xf32>
    %863 = arith.addf %861, %862 : vector<2x64xf32>
    %864 = vector.extract_strided_slice %863 {offsets = [0, 0], sizes = [2, 16], strides = [1, 1]} : vector<2x64xf32> to vector<2x16xf32>
    %865 = arith.negf %864 : vector<2x16xf32>
    %866 = math.exp %865 : vector<2x16xf32>
    %cst_232 = arith.constant 1.000000e+00 : f32
    %867 = vector.broadcast %cst_232 : f32 to vector<2x16xf32>
    %868 = arith.addf %867, %866 : vector<2x16xf32>
    %869 = arith.divf %867, %868 : vector<2x16xf32>
    %870 = vector.extract_strided_slice %863 {offsets = [0, 16], sizes = [2, 16], strides = [1, 1]} : vector<2x64xf32> to vector<2x16xf32>
    %871 = arith.negf %870 : vector<2x16xf32>
    %872 = math.exp %871 : vector<2x16xf32>
    %cst_233 = arith.constant 1.000000e+00 : f32
    %873 = vector.broadcast %cst_233 : f32 to vector<2x16xf32>
    %874 = arith.addf %873, %872 : vector<2x16xf32>
    %875 = arith.divf %873, %874 : vector<2x16xf32>
    %876 = vector.extract_strided_slice %863 {offsets = [0, 32], sizes = [2, 16], strides = [1, 1]} : vector<2x64xf32> to vector<2x16xf32>
    %877 = math.tanh %876 : vector<2x16xf32>
    %878 = vector.extract_strided_slice %863 {offsets = [0, 48], sizes = [2, 16], strides = [1, 1]} : vector<2x64xf32> to vector<2x16xf32>
    %879 = arith.negf %878 : vector<2x16xf32>
    %880 = math.exp %879 : vector<2x16xf32>
    %cst_234 = arith.constant 1.000000e+00 : f32
    %881 = vector.broadcast %cst_234 : f32 to vector<2x16xf32>
    %882 = arith.addf %881, %880 : vector<2x16xf32>
    %883 = arith.divf %881, %882 : vector<2x16xf32>
    %884 = arith.mulf %875, %859 : vector<2x16xf32>
    %885 = arith.mulf %869, %877 : vector<2x16xf32>
    %886 = arith.addf %884, %885 : vector<2x16xf32>
    %887 = math.tanh %886 : vector<2x16xf32>
    %888 = arith.mulf %883, %887 : vector<2x16xf32>
    %889 = vector.extract_strided_slice %857 {offsets = [0, 1, 0], sizes = [2, 1, 64], strides = [1, 1, 1]} : vector<2x8x64xf32> to vector<2x1x64xf32>
    %890 = vector.shape_cast %889 : vector<2x1x64xf32> to vector<2x64xf32>
    %cst_235 = arith.constant dense<0.000000e+00> : vector<2x64xf32>
    %891 = tpu.matmul %888, %851, %cst_235 {dimension_numbers = #tpu.dot_dimension_numbers<[1], [0], [0], [1], [0, 0, 1, 1], [], []>} : vector<2x16xf32>, vector<16x64xf32>, vector<2x64xf32> -> vector<2x64xf32>
    %892 = arith.addf %890, %891 : vector<2x64xf32>
    %893 = vector.extract_strided_slice %892 {offsets = [0, 0], sizes = [2, 16], strides = [1, 1]} : vector<2x64xf32> to vector<2x16xf32>
    %894 = arith.negf %893 : vector<2x16xf32>
    %895 = math.exp %894 : vector<2x16xf32>
    %cst_236 = arith.constant 1.000000e+00 : f32
    %896 = vector.broadcast %cst_236 : f32 to vector<2x16xf32>
    %897 = arith.addf %896, %895 : vector<2x16xf32>
    %898 = arith.divf %896, %897 : vector<2x16xf32>
    %899 = vector.extract_strided_slice %892 {offsets = [0, 16], sizes = [2, 16], strides = [1, 1]} : vector<2x64xf32> to vector<2x16xf32>
    %900 = arith.negf %899 : vector<2x16xf32>
    %901 = math.exp %900 : vector<2x16xf32>
    %cst_237 = arith.constant 1.000000e+00 : f32
    %902 = vector.broadcast %cst_237 : f32 to vector<2x16xf32>
    %903 = arith.addf %902, %901 : vector<2x16xf32>
    %904 = arith.divf %902, %903 : vector<2x16xf32>
    %905 = vector.extract_strided_slice %892 {offsets = [0, 32], sizes = [2, 16], strides = [1, 1]} : vector<2x64xf32> to vector<2x16xf32>
    %906 = math.tanh %905 : vector<2x16xf32>
    %907 = vector.extract_strided_slice %892 {offsets = [0, 48], sizes = [2, 16], strides = [1, 1]} : vector<2x64xf32> to vector<2x16xf32>
    %908 = arith.negf %907 : vector<2x16xf32>
    %909 = math.exp %908 : vector<2x16xf32>
    %cst_238 = arith.constant 1.000000e+00 : f32
    %910 = vector.broadcast %cst_238 : f32 to vector<2x16xf32>
    %911 = arith.addf %910, %909 : vector<2x16xf32>
    %912 = arith.divf %910, %911 : vector<2x16xf32>
    %913 = arith.mulf %904, %886 : vector<2x16xf32>
    %914 = arith.mulf %898, %906 : vector<2x16xf32>
    %915 = arith.addf %913, %914 : vector<2x16xf32>
    %916 = math.tanh %915 : vector<2x16xf32>
    %917 = arith.mulf %912, %916 : vector<2x16xf32>
    %918 = vector.extract_strided_slice %857 {offsets = [0, 2, 0], sizes = [2, 1, 64], strides = [1, 1, 1]} : vector<2x8x64xf32> to vector<2x1x64xf32>
    %919 = vector.shape_cast %918 : vector<2x1x64xf32> to vector<2x64xf32>
    %cst_239 = arith.constant dense<0.000000e+00> : vector<2x64xf32>
    %920 = tpu.matmul %917, %851, %cst_239 {dimension_numbers = #tpu.dot_dimension_numbers<[1], [0], [0], [1], [0, 0, 1, 1], [], []>} : vector<2x16xf32>, vector<16x64xf32>, vector<2x64xf32> -> vector<2x64xf32>
    %921 = arith.addf %919, %920 : vector<2x64xf32>
    %922 = vector.extract_strided_slice %921 {offsets = [0, 0], sizes = [2, 16], strides = [1, 1]} : vector<2x64xf32> to vector<2x16xf32>
    %923 = arith.negf %922 : vector<2x16xf32>
    %924 = math.exp %923 : vector<2x16xf32>
    %cst_240 = arith.constant 1.000000e+00 : f32
    %925 = vector.broadcast %cst_240 : f32 to vector<2x16xf32>
    %926 = arith.addf %925, %924 : vector<2x16xf32>
    %927 = arith.divf %925, %926 : vector<2x16xf32>
    %928 = vector.extract_strided_slice %921 {offsets = [0, 16], sizes = [2, 16], strides = [1, 1]} : vector<2x64xf32> to vector<2x16xf32>
    %929 = arith.negf %928 : vector<2x16xf32>
    %930 = math.exp %929 : vector<2x16xf32>
    %cst_241 = arith.constant 1.000000e+00 : f32
    %931 = vector.broadcast %cst_241 : f32 to vector<2x16xf32>
    %932 = arith.addf %931, %930 : vector<2x16xf32>
    %933 = arith.divf %931, %932 : vector<2x16xf32>
    %934 = vector.extract_strided_slice %921 {offsets = [0, 32], sizes = [2, 16], strides = [1, 1]} : vector<2x64xf32> to vector<2x16xf32>
    %935 = math.tanh %934 : vector<2x16xf32>
    %936 = vector.extract_strided_slice %921 {offsets = [0, 48], sizes = [2, 16], strides = [1, 1]} : vector<2x64xf32> to vector<2x16xf32>
    %937 = arith.negf %936 : vector<2x16xf32>
    %938 = math.exp %937 : vector<2x16xf32>
    %cst_242 = arith.constant 1.000000e+00 : f32
    %939 = vector.broadcast %cst_242 : f32 to vector<2x16xf32>
    %940 = arith.addf %939, %938 : vector<2x16xf32>
    %941 = arith.divf %939, %940 : vector<2x16xf32>
    %942 = arith.mulf %933, %915 : vector<2x16xf32>
    %943 = arith.mulf %927, %935 : vector<2x16xf32>
    %944 = arith.addf %942, %943 : vector<2x16xf32>
    %945 = math.tanh %944 : vector<2x16xf32>
    %946 = arith.mulf %941, %945 : vector<2x16xf32>
    %947 = vector.extract_strided_slice %857 {offsets = [0, 3, 0], sizes = [2, 1, 64], strides = [1, 1, 1]} : vector<2x8x64xf32> to vector<2x1x64xf32>
    %948 = vector.shape_cast %947 : vector<2x1x64xf32> to vector<2x64xf32>
    %cst_243 = arith.constant dense<0.000000e+00> : vector<2x64xf32>
    %949 = tpu.matmul %946, %851, %cst_243 {dimension_numbers = #tpu.dot_dimension_numbers<[1], [0], [0], [1], [0, 0, 1, 1], [], []>} : vector<2x16xf32>, vector<16x64xf32>, vector<2x64xf32> -> vector<2x64xf32>
    %950 = arith.addf %948, %949 : vector<2x64xf32>
    %951 = vector.extract_strided_slice %950 {offsets = [0, 0], sizes = [2, 16], strides = [1, 1]} : vector<2x64xf32> to vector<2x16xf32>
    %952 = arith.negf %951 : vector<2x16xf32>
    %953 = math.exp %952 : vector<2x16xf32>
    %cst_244 = arith.constant 1.000000e+00 : f32
    %954 = vector.broadcast %cst_244 : f32 to vector<2x16xf32>
    %955 = arith.addf %954, %953 : vector<2x16xf32>
    %956 = arith.divf %954, %955 : vector<2x16xf32>
    %957 = vector.extract_strided_slice %950 {offsets = [0, 16], sizes = [2, 16], strides = [1, 1]} : vector<2x64xf32> to vector<2x16xf32>
    %958 = arith.negf %957 : vector<2x16xf32>
    %959 = math.exp %958 : vector<2x16xf32>
    %cst_245 = arith.constant 1.000000e+00 : f32
    %960 = vector.broadcast %cst_245 : f32 to vector<2x16xf32>
    %961 = arith.addf %960, %959 : vector<2x16xf32>
    %962 = arith.divf %960, %961 : vector<2x16xf32>
    %963 = vector.extract_strided_slice %950 {offsets = [0, 32], sizes = [2, 16], strides = [1, 1]} : vector<2x64xf32> to vector<2x16xf32>
    %964 = math.tanh %963 : vector<2x16xf32>
    %965 = vector.extract_strided_slice %950 {offsets = [0, 48], sizes = [2, 16], strides = [1, 1]} : vector<2x64xf32> to vector<2x16xf32>
    %966 = arith.negf %965 : vector<2x16xf32>
    %967 = math.exp %966 : vector<2x16xf32>
    %cst_246 = arith.constant 1.000000e+00 : f32
    %968 = vector.broadcast %cst_246 : f32 to vector<2x16xf32>
    %969 = arith.addf %968, %967 : vector<2x16xf32>
    %970 = arith.divf %968, %969 : vector<2x16xf32>
    %971 = arith.mulf %962, %944 : vector<2x16xf32>
    %972 = arith.mulf %956, %964 : vector<2x16xf32>
    %973 = arith.addf %971, %972 : vector<2x16xf32>
    %974 = math.tanh %973 : vector<2x16xf32>
    %975 = arith.mulf %970, %974 : vector<2x16xf32>
    %976 = vector.extract_strided_slice %857 {offsets = [0, 4, 0], sizes = [2, 1, 64], strides = [1, 1, 1]} : vector<2x8x64xf32> to vector<2x1x64xf32>
    %977 = vector.shape_cast %976 : vector<2x1x64xf32> to vector<2x64xf32>
    %cst_247 = arith.constant dense<0.000000e+00> : vector<2x64xf32>
    %978 = tpu.matmul %975, %851, %cst_247 {dimension_numbers = #tpu.dot_dimension_numbers<[1], [0], [0], [1], [0, 0, 1, 1], [], []>} : vector<2x16xf32>, vector<16x64xf32>, vector<2x64xf32> -> vector<2x64xf32>
    %979 = arith.addf %977, %978 : vector<2x64xf32>
    %980 = vector.extract_strided_slice %979 {offsets = [0, 0], sizes = [2, 16], strides = [1, 1]} : vector<2x64xf32> to vector<2x16xf32>
    %981 = arith.negf %980 : vector<2x16xf32>
    %982 = math.exp %981 : vector<2x16xf32>
    %cst_248 = arith.constant 1.000000e+00 : f32
    %983 = vector.broadcast %cst_248 : f32 to vector<2x16xf32>
    %984 = arith.addf %983, %982 : vector<2x16xf32>
    %985 = arith.divf %983, %984 : vector<2x16xf32>
    %986 = vector.extract_strided_slice %979 {offsets = [0, 16], sizes = [2, 16], strides = [1, 1]} : vector<2x64xf32> to vector<2x16xf32>
    %987 = arith.negf %986 : vector<2x16xf32>
    %988 = math.exp %987 : vector<2x16xf32>
    %cst_249 = arith.constant 1.000000e+00 : f32
    %989 = vector.broadcast %cst_249 : f32 to vector<2x16xf32>
    %990 = arith.addf %989, %988 : vector<2x16xf32>
    %991 = arith.divf %989, %990 : vector<2x16xf32>
    %992 = vector.extract_strided_slice %979 {offsets = [0, 32], sizes = [2, 16], strides = [1, 1]} : vector<2x64xf32> to vector<2x16xf32>
    %993 = math.tanh %992 : vector<2x16xf32>
    %994 = vector.extract_strided_slice %979 {offsets = [0, 48], sizes = [2, 16], strides = [1, 1]} : vector<2x64xf32> to vector<2x16xf32>
    %995 = arith.negf %994 : vector<2x16xf32>
    %996 = math.exp %995 : vector<2x16xf32>
    %cst_250 = arith.constant 1.000000e+00 : f32
    %997 = vector.broadcast %cst_250 : f32 to vector<2x16xf32>
    %998 = arith.addf %997, %996 : vector<2x16xf32>
    %999 = arith.divf %997, %998 : vector<2x16xf32>
    %1000 = arith.mulf %991, %973 : vector<2x16xf32>
    %1001 = arith.mulf %985, %993 : vector<2x16xf32>
    %1002 = arith.addf %1000, %1001 : vector<2x16xf32>
    %1003 = math.tanh %1002 : vector<2x16xf32>
    %1004 = arith.mulf %999, %1003 : vector<2x16xf32>
    %1005 = vector.extract_strided_slice %857 {offsets = [0, 5, 0], sizes = [2, 1, 64], strides = [1, 1, 1]} : vector<2x8x64xf32> to vector<2x1x64xf32>
    %1006 = vector.shape_cast %1005 : vector<2x1x64xf32> to vector<2x64xf32>
    %cst_251 = arith.constant dense<0.000000e+00> : vector<2x64xf32>
    %1007 = tpu.matmul %1004, %851, %cst_251 {dimension_numbers = #tpu.dot_dimension_numbers<[1], [0], [0], [1], [0, 0, 1, 1], [], []>} : vector<2x16xf32>, vector<16x64xf32>, vector<2x64xf32> -> vector<2x64xf32>
    %1008 = arith.addf %1006, %1007 : vector<2x64xf32>
    %1009 = vector.extract_strided_slice %1008 {offsets = [0, 0], sizes = [2, 16], strides = [1, 1]} : vector<2x64xf32> to vector<2x16xf32>
    %1010 = arith.negf %1009 : vector<2x16xf32>
    %1011 = math.exp %1010 : vector<2x16xf32>
    %cst_252 = arith.constant 1.000000e+00 : f32
    %1012 = vector.broadcast %cst_252 : f32 to vector<2x16xf32>
    %1013 = arith.addf %1012, %1011 : vector<2x16xf32>
    %1014 = arith.divf %1012, %1013 : vector<2x16xf32>
    %1015 = vector.extract_strided_slice %1008 {offsets = [0, 16], sizes = [2, 16], strides = [1, 1]} : vector<2x64xf32> to vector<2x16xf32>
    %1016 = arith.negf %1015 : vector<2x16xf32>
    %1017 = math.exp %1016 : vector<2x16xf32>
    %cst_253 = arith.constant 1.000000e+00 : f32
    %1018 = vector.broadcast %cst_253 : f32 to vector<2x16xf32>
    %1019 = arith.addf %1018, %1017 : vector<2x16xf32>
    %1020 = arith.divf %1018, %1019 : vector<2x16xf32>
    %1021 = vector.extract_strided_slice %1008 {offsets = [0, 32], sizes = [2, 16], strides = [1, 1]} : vector<2x64xf32> to vector<2x16xf32>
    %1022 = math.tanh %1021 : vector<2x16xf32>
    %1023 = vector.extract_strided_slice %1008 {offsets = [0, 48], sizes = [2, 16], strides = [1, 1]} : vector<2x64xf32> to vector<2x16xf32>
    %1024 = arith.negf %1023 : vector<2x16xf32>
    %1025 = math.exp %1024 : vector<2x16xf32>
    %cst_254 = arith.constant 1.000000e+00 : f32
    %1026 = vector.broadcast %cst_254 : f32 to vector<2x16xf32>
    %1027 = arith.addf %1026, %1025 : vector<2x16xf32>
    %1028 = arith.divf %1026, %1027 : vector<2x16xf32>
    %1029 = arith.mulf %1020, %1002 : vector<2x16xf32>
    %1030 = arith.mulf %1014, %1022 : vector<2x16xf32>
    %1031 = arith.addf %1029, %1030 : vector<2x16xf32>
    %1032 = math.tanh %1031 : vector<2x16xf32>
    %1033 = arith.mulf %1028, %1032 : vector<2x16xf32>
    %1034 = vector.extract_strided_slice %857 {offsets = [0, 6, 0], sizes = [2, 1, 64], strides = [1, 1, 1]} : vector<2x8x64xf32> to vector<2x1x64xf32>
    %1035 = vector.shape_cast %1034 : vector<2x1x64xf32> to vector<2x64xf32>
    %cst_255 = arith.constant dense<0.000000e+00> : vector<2x64xf32>
    %1036 = tpu.matmul %1033, %851, %cst_255 {dimension_numbers = #tpu.dot_dimension_numbers<[1], [0], [0], [1], [0, 0, 1, 1], [], []>} : vector<2x16xf32>, vector<16x64xf32>, vector<2x64xf32> -> vector<2x64xf32>
    %1037 = arith.addf %1035, %1036 : vector<2x64xf32>
    %1038 = vector.extract_strided_slice %1037 {offsets = [0, 0], sizes = [2, 16], strides = [1, 1]} : vector<2x64xf32> to vector<2x16xf32>
    %1039 = arith.negf %1038 : vector<2x16xf32>
    %1040 = math.exp %1039 : vector<2x16xf32>
    %cst_256 = arith.constant 1.000000e+00 : f32
    %1041 = vector.broadcast %cst_256 : f32 to vector<2x16xf32>
    %1042 = arith.addf %1041, %1040 : vector<2x16xf32>
    %1043 = arith.divf %1041, %1042 : vector<2x16xf32>
    %1044 = vector.extract_strided_slice %1037 {offsets = [0, 16], sizes = [2, 16], strides = [1, 1]} : vector<2x64xf32> to vector<2x16xf32>
    %1045 = arith.negf %1044 : vector<2x16xf32>
    %1046 = math.exp %1045 : vector<2x16xf32>
    %cst_257 = arith.constant 1.000000e+00 : f32
    %1047 = vector.broadcast %cst_257 : f32 to vector<2x16xf32>
    %1048 = arith.addf %1047, %1046 : vector<2x16xf32>
    %1049 = arith.divf %1047, %1048 : vector<2x16xf32>
    %1050 = vector.extract_strided_slice %1037 {offsets = [0, 32], sizes = [2, 16], strides = [1, 1]} : vector<2x64xf32> to vector<2x16xf32>
    %1051 = math.tanh %1050 : vector<2x16xf32>
    %1052 = vector.extract_strided_slice %1037 {offsets = [0, 48], sizes = [2, 16], strides = [1, 1]} : vector<2x64xf32> to vector<2x16xf32>
    %1053 = arith.negf %1052 : vector<2x16xf32>
    %1054 = math.exp %1053 : vector<2x16xf32>
    %cst_258 = arith.constant 1.000000e+00 : f32
    %1055 = vector.broadcast %cst_258 : f32 to vector<2x16xf32>
    %1056 = arith.addf %1055, %1054 : vector<2x16xf32>
    %1057 = arith.divf %1055, %1056 : vector<2x16xf32>
    %1058 = arith.mulf %1049, %1031 : vector<2x16xf32>
    %1059 = arith.mulf %1043, %1051 : vector<2x16xf32>
    %1060 = arith.addf %1058, %1059 : vector<2x16xf32>
    %1061 = math.tanh %1060 : vector<2x16xf32>
    %1062 = arith.mulf %1057, %1061 : vector<2x16xf32>
    %1063 = vector.extract_strided_slice %857 {offsets = [0, 7, 0], sizes = [2, 1, 64], strides = [1, 1, 1]} : vector<2x8x64xf32> to vector<2x1x64xf32>
    %1064 = vector.shape_cast %1063 : vector<2x1x64xf32> to vector<2x64xf32>
    %cst_259 = arith.constant dense<0.000000e+00> : vector<2x64xf32>
    %1065 = tpu.matmul %1062, %851, %cst_259 {dimension_numbers = #tpu.dot_dimension_numbers<[1], [0], [0], [1], [0, 0, 1, 1], [], []>} : vector<2x16xf32>, vector<16x64xf32>, vector<2x64xf32> -> vector<2x64xf32>
    %1066 = arith.addf %1064, %1065 : vector<2x64xf32>
    %1067 = vector.extract_strided_slice %1066 {offsets = [0, 0], sizes = [2, 16], strides = [1, 1]} : vector<2x64xf32> to vector<2x16xf32>
    %1068 = arith.negf %1067 : vector<2x16xf32>
    %1069 = math.exp %1068 : vector<2x16xf32>
    %cst_260 = arith.constant 1.000000e+00 : f32
    %1070 = vector.broadcast %cst_260 : f32 to vector<2x16xf32>
    %1071 = arith.addf %1070, %1069 : vector<2x16xf32>
    %1072 = arith.divf %1070, %1071 : vector<2x16xf32>
    %1073 = vector.extract_strided_slice %1066 {offsets = [0, 16], sizes = [2, 16], strides = [1, 1]} : vector<2x64xf32> to vector<2x16xf32>
    %1074 = arith.negf %1073 : vector<2x16xf32>
    %1075 = math.exp %1074 : vector<2x16xf32>
    %cst_261 = arith.constant 1.000000e+00 : f32
    %1076 = vector.broadcast %cst_261 : f32 to vector<2x16xf32>
    %1077 = arith.addf %1076, %1075 : vector<2x16xf32>
    %1078 = arith.divf %1076, %1077 : vector<2x16xf32>
    %1079 = vector.extract_strided_slice %1066 {offsets = [0, 32], sizes = [2, 16], strides = [1, 1]} : vector<2x64xf32> to vector<2x16xf32>
    %1080 = math.tanh %1079 : vector<2x16xf32>
    %1081 = vector.extract_strided_slice %1066 {offsets = [0, 48], sizes = [2, 16], strides = [1, 1]} : vector<2x64xf32> to vector<2x16xf32>
    %1082 = arith.negf %1081 : vector<2x16xf32>
    %1083 = math.exp %1082 : vector<2x16xf32>
    %cst_262 = arith.constant 1.000000e+00 : f32
    %1084 = vector.broadcast %cst_262 : f32 to vector<2x16xf32>
    %1085 = arith.addf %1084, %1083 : vector<2x16xf32>
    %1086 = arith.divf %1084, %1085 : vector<2x16xf32>
    %1087 = arith.mulf %1078, %1060 : vector<2x16xf32>
    %1088 = arith.mulf %1072, %1080 : vector<2x16xf32>
    %1089 = arith.addf %1087, %1088 : vector<2x16xf32>
    %1090 = math.tanh %1089 : vector<2x16xf32>
    %1091 = arith.mulf %1086, %1090 : vector<2x16xf32>
    %cst_263 = arith.constant 0.000000e+00 : f32
    %1092 = vector.broadcast %cst_263 : f32 to vector<2x16xf32>
    %1093 = arith.maximumf %1091, %1092 : vector<2x16xf32>
    %c0_264 = arith.constant 0 : index
    %c0_265 = arith.constant 0 : index
    %1094 = vector.load %arg13[%c0_264, %c0_265] : memref<16x1xf32, #tpu.memory_space<vmem>>, vector<16x1xf32>
    %cst_266 = arith.constant dense<0.000000e+00> : vector<2x1xf32>
    %1095 = tpu.matmul %1093, %1094, %cst_266 {dimension_numbers = #tpu.dot_dimension_numbers<[1], [0], [0], [1], [0, 0, 1, 1], [], []>} : vector<2x16xf32>, vector<16x1xf32>, vector<2x1xf32> -> vector<2x1xf32>
    %c0_267 = arith.constant 0 : index
    %c0_268 = arith.constant 0 : index
    %1096 = vector.load %arg14[%c0_267, %c0_268] : memref<1x1xf32, #tpu.memory_space<vmem>>, vector<1x1xf32>
    %1097 = vector.broadcast %1096 : vector<1x1xf32> to vector<2x1xf32>
    %1098 = arith.addf %1095, %1097 : vector<2x1xf32>
    %c0_269 = arith.constant 0 : index
    %c0_270 = arith.constant 0 : index
    %1099 = vector.load %arg15[%c0_269, %c0_270] : memref<2x1xf32, #tpu.memory_space<vmem>>, vector<2x1xf32>
    tpu.vector_store %arg15[%c0_269, %c0_270], %1098 {strides = array<i32>} : memref<2x1xf32, #tpu.memory_space<vmem>>, vector<2x1xf32>,
    return
  }
}

</mosaic_0001>

<bundles_post_ra>
// kernel: tpu_custom_call.1
= control target key start
LH: loop header
LB: loop body
LE: loop exit
PB: predicated region body
PF: predicated region fallthrough
CT: control target
= control target key end

     0   :  { %s7860_s0 = inlined_call_operand.hbm [shape: f32[2,8,8], index: 0, kind: input, shape index: {}]   ;;  %s7861_s1 = inlined_call_operand.hbm [shape: f32[8,128], index: 1, kind: input, shape index: {}]   ;;  %s7862_s2 = inlined_call_operand.hbm [shape: f32[32,128], index: 2, kind: input, shape index: {}]   ;;  %s7863_s3 = inlined_call_operand.vmem [shape: f32[1,128], index: 3, kind: input, shape index: {}]   ;;  %s7864_s4 = inlined_call_operand.vmem [shape: f32[32,128], index: 4, kind: input, shape index: {}]   ;;  %s7865_s5 = inlined_call_operand.hbm [shape: f32[32,128], index: 5, kind: input, shape index: {}]   ;;  %s7866_s6 = inlined_call_operand.vmem [shape: f32[1,128], index: 6, kind: input, shape index: {}]   ;;  %s7867_s7 = inlined_call_operand.hbm [shape: f32[32,64], index: 7, kind: input, shape index: {}]   ;;  %s7868_s8 = inlined_call_operand.vmem [shape: f32[16,64], index: 8, kind: input, shape index: {}]   ;;  %s7869_s9 = inlined_call_operand.vmem [shape: f32[1,64], index: 9, kind: input, shape index: {}]   ;;  %s7870_s10 = inlined_call_operand.hbm [shape: f32[16,64], index: 10, kind: input, shape index: {}]   ;;  %s7871_s11 = inlined_call_operand.hbm [shape: f32[16,64], index: 11, kind: input, shape index: {}]   ;;  %s7872_s12 = inlined_call_operand.vmem [shape: f32[1,64], index: 12, kind: input, shape index: {}]   ;;  %s7873_s13 = inlined_call_operand.vmem [shape: f32[16,1], index: 13, kind: input, shape index: {}]   ;;  %s7874_s14 = inlined_call_operand.<no memory space> [shape: f32[1,1], index: 14, kind: input, shape index: {}]   ;;  %s7875_s15 = inlined_call_operand.vmem [shape: f32[2,1], index: 15, kind: output, shape index: {}]  }
   0x1   :  { %v20_v0 = vstv %s7874_s14 }
   0x2   :  { %21 = vst [vmem:[#allocation5] sm:$0x1] %v20_v0 }
   0x3   :  { %22 = vsyncpa [#allocation7], 0 }
   0x4   :  { %23 = vsyncpa [#allocation9], 0 }
   0x5   :  { %24 = vsyncpa [#allocation12], 0 }
   0x6   :  { %25 = vsyncpa [#allocation15], 0  ;;  %s6788_s20 = smov [#allocation8]   ;;  %s6626_s24 = scalar_lea.hbm %s7861_s1, 128 }
   0x7   :  { %s44_s21 = sshll.u32 %s6788_s20, 4  ;;  %p6627_p0 = scmp.ne.s32.totalorder %s7861_s1, %s6626_s24  ;;  %s45_s21 = int_to_ptr.vmem [resolvable:$true] %s44_s21 }
   0x8   :  { %p6630_p1 = scmp.lt.u32.totalorder %s6626_s24, %s7861_s1 }
   0xa   :  { %p6632_p2 = pnand %p6630_p1, %p6627_p0 }
   0xc   :  { %6635 = shalt.err (!%p6632_p2)
}
   0xd   :  { %s6636_s14 = scalar_lea.vmem %s45_s21, 128  ;;  %p6641_p4 = scmp.lt.s32.totalorder %s45_s21, %s45_s21 }
   0xe   :  { %p6637_p3 = scmp.ne.s32.totalorder %s45_s21, %s6636_s14  ;;  %p6642_p5 = scmp.lt.s32.totalorder %s6636_s14, %s6636_s14 }
  0x10   :  { %p6643_p6 = por %p6642_p5, %p6641_p4 }
  0x12   :  { %p6644_p7 = pnand %p6643_p6, %p6637_p3 }
  0x14   :  { %6647 = shalt.err (!%p6644_p7)
}
  0x15   :  { %47 = dma.hbm_to_vmem [thread:$0]  %s7861_s1, 128, %s45_s21, [#allocation9]  }
  0x16   :  { %s6789_s16 = smov [#allocation11]   ;;  %s6790_s18 = smov [#allocation14]  }
  0x17   :  { %s69_s17 = sshll.u32 %s6789_s16, 4  ;;  %s99_s19 = sshll.u32 %s6790_s18, 4  ;;  %s70_s17 = int_to_ptr.vmem [resolvable:$true] %s69_s17  ;;  %s100_s19 = int_to_ptr.vmem [resolvable:$true] %s99_s19 }
  0x18   :  { %s6648_s23 = scalar_lea.hbm %s7865_s5, 512 }
  0x19   :  { %p6649_p8 = scmp.ne.s32.totalorder %s7865_s5, %s6648_s23  ;;  %p6652_p9 = scmp.lt.u32.totalorder %s6648_s23, %s7865_s5 }
  0x1b   :  { %p6654_p10 = pnand %p6652_p9, %p6649_p8 }
  0x1d   :  { %6657 = shalt.err (!%p6654_p10)
}
  0x1e   :  { %s6658_s1 = scalar_lea.vmem %s70_s17, 512  ;;  %p6663_p12 = scmp.lt.s32.totalorder %s70_s17, %s70_s17 }
  0x1f   :  { %p6659_p11 = scmp.ne.s32.totalorder %s70_s17, %s6658_s1  ;;  %p6664_p13 = scmp.lt.s32.totalorder %s6658_s1, %s6658_s1 }
  0x21   :  { %p6665_p0 = por %p6664_p13, %p6663_p12 }
  0x23   :  { %p6666_p1 = pnand %p6665_p0, %p6659_p11 }
  0x25   :  { %6669 = shalt.err (!%p6666_p1)
}
  0x26   :  { %s6791_s21 = smov 128   ;;  %s6792_s28 = smov 8  }
  0x27   :  { %75 = dma.hbm_to_vmem [thread:$0]  %s7865_s5, 512, %s70_s17, [#allocation12], %s6791_s21, %s6791_s21, %s6792_s28  }
  0x28   :  { %s6670_s18 = scalar_lea.hbm %s7870_s10, 256 }
  0x29   :  { %p6671_p2 = scmp.ne.s32.totalorder %s7870_s10, %s6670_s18  ;;  %p6674_p3 = scmp.lt.u32.totalorder %s6670_s18, %s7870_s10 }
  0x2b   :  { %p6676_p4 = pnand %p6674_p3, %p6671_p2 }
  0x2d   :  { %6679 = shalt.err (!%p6676_p4)
}
  0x2e   :  { %s6680_s25 = scalar_lea.vmem %s100_s19, 256  ;;  %p6685_p6 = scmp.lt.s32.totalorder %s100_s19, %s100_s19 }
  0x2f   :  { %p6681_p5 = scmp.ne.s32.totalorder %s100_s19, %s6680_s25  ;;  %p6686_p7 = scmp.lt.s32.totalorder %s6680_s25, %s6680_s25 }
  0x31   :  { %p6687_p8 = por %p6686_p7, %p6685_p6 }
  0x33   :  { %p6688_p9 = pnand %p6687_p8, %p6681_p5 }
  0x35   :  { %6691 = shalt.err (!%p6688_p9)
}
  0x36   :  { %105 = dma.hbm_to_vmem [thread:$0]  %s7870_s10, 256, %s100_s19, [#allocation15], %s6791_s21, %s6791_s21, %s6792_s28  }
  0x37   :  { %s6793_s26 = smov [#allocation6]   ;;  %s6794_s1 = smov [#allocation10]  }
  0x38   :  { %s31_s27 = sshll.u32 %s6793_s26, 4  ;;  %s53_s14 = sshll.u32 %s6794_s1, 4  ;;  %s32_s27 = int_to_ptr.vmem [resolvable:$true] %s31_s27  ;;  %s54_s14 = int_to_ptr.vmem [resolvable:$true] %s53_s14 }
  0x39   :  { %s6692_s16 = scalar_lea.hbm %s7860_s0, 256 }
  0x3a   :  { %p6693_p10 = scmp.ne.s32.totalorder %s7860_s0, %s6692_s16  ;;  %p6696_p11 = scmp.lt.u32.totalorder %s6692_s16, %s7860_s0 }
  0x3c   :  { %p6698_p12 = pnand %p6696_p11, %p6693_p10 }
  0x3e   :  { %6701 = shalt.err (!%p6698_p12)
}
  0x3f   :  { %s6702_s10 = scalar_lea.vmem %s32_s27, 256  ;;  %p6707_p0 = scmp.lt.s32.totalorder %s32_s27, %s32_s27 }
  0x40   :  { %p6703_p13 = scmp.ne.s32.totalorder %s32_s27, %s6702_s10  ;;  %p6708_p1 = scmp.lt.s32.totalorder %s6702_s10, %s6702_s10 }
  0x42   :  { %p6709_p2 = por %p6708_p1, %p6707_p0 }
  0x44   :  { %p6710_p3 = pnand %p6709_p2, %p6703_p13 }
  0x46   :  { %6713 = shalt.err (!%p6710_p3)
}
  0x47   :  { %37 = dma.hbm_to_vmem [thread:$0]  %s7860_s0, 256, %s32_s27, [#allocation7], %s6791_s21, %s6791_s21, %s6792_s28  }
  0x48   :  { %s6714_s17 = scalar_lea.hbm %s7862_s2, 512 }
  0x49   :  { %p6715_p4 = scmp.ne.s32.totalorder %s7862_s2, %s6714_s17  ;;  %p6718_p5 = scmp.lt.u32.totalorder %s6714_s17, %s7862_s2 }
  0x4b   :  { %p6720_p6 = pnand %p6718_p5, %p6715_p4 }
  0x4d   :  { %6723 = shalt.err (!%p6720_p6)
}
  0x4e   :  { %s6724_s16 = scalar_lea.vmem %s54_s14, 512  ;;  %p6729_p8 = scmp.lt.s32.totalorder %s54_s14, %s54_s14 }
  0x4f   :  { %p6725_p7 = scmp.ne.s32.totalorder %s54_s14, %s6724_s16  ;;  %p6730_p9 = scmp.lt.s32.totalorder %s6724_s16, %s6724_s16 }
  0x51   :  { %p6731_p10 = por %p6730_p9, %p6729_p8 }
  0x53   :  { %p6732_p11 = pnand %p6731_p10, %p6725_p7 }
  0x55   :  { %6735 = shalt.err (!%p6732_p11)
}
  0x56   :  { %59 = dma.hbm_to_vmem [thread:$0]  %s7862_s2, 512, %s54_s14, [#allocation9], %s6791_s21, %s6791_s21, %s6792_s28  }
  0x57   :  { %s6795_s18 = smov [#allocation13]   ;;  %s6796_s22 = smov [#allocation16]  }
  0x58   :  { %s83_s20 = sshll.u32 %s6795_s18, 4  ;;  %s111_s23 = sshll.u32 %s6796_s22, 4  ;;  %s84_s20 = int_to_ptr.vmem [resolvable:$true] %s83_s20  ;;  %s112_s23 = int_to_ptr.vmem [resolvable:$true] %s111_s23 }
  0x59   :  { %s6736_s24 = scalar_lea.hbm %s7867_s7, 512 }
  0x5a   :  { %p6737_p12 = scmp.ne.s32.totalorder %s7867_s7, %s6736_s24  ;;  %p6740_p13 = scmp.lt.u32.totalorder %s6736_s24, %s7867_s7 }
  0x5c   :  { %p6742_p0 = pnand %p6740_p13, %p6737_p12 }
  0x5e   :  { %6745 = shalt.err (!%p6742_p0)
}
  0x5f   :  { %s6746_s2 = scalar_lea.vmem %s84_s20, 512  ;;  %p6751_p2 = scmp.lt.s32.totalorder %s84_s20, %s84_s20 }
  0x60   :  { %p6747_p1 = scmp.ne.s32.totalorder %s84_s20, %s6746_s2  ;;  %p6752_p3 = scmp.lt.s32.totalorder %s6746_s2, %s6746_s2 }
  0x62   :  { %p6753_p4 = por %p6752_p3, %p6751_p2 }
  0x64   :  { %p6754_p5 = pnand %p6753_p4, %p6747_p1 }
  0x66   :  { %6757 = shalt.err (!%p6754_p5)
}
  0x67   :  { %89 = dma.hbm_to_vmem [thread:$0]  %s7867_s7, 512, %s84_s20, [#allocation12], %s6791_s21, %s6791_s21, %s6792_s28  }
  0x68   :  { %s6758_s16 = scalar_lea.hbm %s7871_s11, 256 }
  0x69   :  { %p6759_p6 = scmp.ne.s32.totalorder %s7871_s11, %s6758_s16  ;;  %p6762_p7 = scmp.lt.u32.totalorder %s6758_s16, %s7871_s11 }
  0x6b   :  { %p6764_p8 = pnand %p6762_p7, %p6759_p6 }
  0x6d   :  { %6767 = shalt.err (!%p6764_p8)
}
  0x6e   :  { %s6768_s10 = scalar_lea.vmem %s112_s23, 256  ;;  %p6773_p10 = scmp.lt.s32.totalorder %s112_s23, %s112_s23 }
  0x6f   :  { %p6769_p9 = scmp.ne.s32.totalorder %s112_s23, %s6768_s10  ;;  %p6774_p11 = scmp.lt.s32.totalorder %s6768_s10, %s6768_s10 }
  0x71   :  { %p6775_p12 = por %p6774_p11, %p6773_p10 }
  0x73   :  { %p6776_p13 = pnand %p6775_p12, %p6769_p9 }
  0x75   :  { %6779 = shalt.err (!%p6776_p13)
}
  0x76   :  { %117 = dma.hbm_to_vmem [thread:$0]  %s7871_s11, 256, %s112_s23, [#allocation15], %s6791_s21, %s6791_s21, %s6792_s28  }
  0x77   :  { %6780 = dma.done.wait [#allocation7], 256  }
  0x78   :  { %6781 = vsyncadd [#allocation7], 4294967040 }
  0x79   :  { %6782 = dma.done.wait [#allocation9], 640  }
  0x7a   :  { %6783 = vsyncadd [#allocation9], 4294966656 }
  0x7b   :  { %6784 = dma.done.wait [#allocation12], 1024  }
  0x7c   :  { %6785 = vsyncadd [#allocation12], 4294966272 }
  0x7d   :  { %6786 = dma.done.wait [#allocation15], 512  }
  0x7e   :  { %6787 = vsyncadd [#allocation15], 4294966784  ;;  %v6797_v1 = vmov 0.0|0.0   ;;  %vm6798_vm0 = vmmov 0   ;;  %v6799_v2 = vmov 0.0   ;;  %vm159_vm1 = vcmask 64512  }
  0x7f   :  { %5930 = vmatprep.subr.bf16.mxu1 %v6797_v1  ;;  %5614 = vmatprep.mubr.msk.f32.mxu1 %vm6798_vm0, %v6799_v2  ;;  %v147_v3 = vld [vmem:[#allocation10] sm:$0xff]  ;;  %v148_v4 = vld [vmem:[#allocation10 + $0x8] sm:$0xff]  ;;  %v151_v5 = vld [vmem:[#allocation8] sm:$0xff]  ;;  %s6800_s28 = smov 64   ;;  %vm385_vm2 = vcmask 1041409   ;;  %vm241_vm3 = vcmask 261120  }
  0x80   :  { %v6993_v6 = vpack.c.bf16 %v148_v4, %v147_v3  ;;  %5601 = vmatprep.subr.mxu0 %v151_v5  ;;  %v145_v7 = vld [vmem:[#allocation6] sm:$0xff]  ;;  %v146_v8 = vld [vmem:[#allocation6 + $0x8] sm:$0xff]  ;;  %v150_v10 = vld [vmem:[#allocation10 + $0x18] sm:$0xff]  ;;  %vm379_vm4 = vcmask 253952   ;;  %vm531_vm5 = vcmask 254977   ;;  %vm683_vm6 = vcmask 256002  }
  0x81   :  { %v149_v9 = vld [vmem:[#allocation10 + $0x10] sm:$0xff]  ;;  %5602 = vmatpush3.msra.mxu0 %v151_v5  ;;  %5603 = vmatprep.mubr.msk.f32.mxu0 %vm159_vm1, %v145_v7  ;;  %vm836_vm7 = vcmask 257027   ;;  %vm989_vm8 = vcmask 258052   ;;  %vm1142_vm9 = vcmask 259077   ;;  %vm1295_vm10 = vcmask 260102   ;;  %s6802_s0 = smov 96  }
  0x82   :  { %5932 = vmatpush3.bf16.msra.mxu1 %v6993_v6  ;;  %5604 = vmatmul.mubr.msk.f32.vlgmr.msra.gmra.mrb[0].mxu0 %vm159_vm1, %v146_v8  ;;  %v6996_v11 = vpack.c.bf16 %v150_v10, %v149_v9  ;;  %v5345_v14 = vld [vmem:[%s7863_s3] ss:$0 sm:$0xff]  ;;  %s6801_s3 = smov 32   ;;  %vm1448_vm11 = vcmask 261127   ;;  %s6804_s27 = smov 80   ;;  %vm2842_vm12 = vcmask 130048  }
  0x83   :  { %5933 = vmatprep.subr.bf16.mxu1 %v6797_v1  ;;  %5936 = vmatprep.subr.bf16.mxu0 %v6797_v1  ;;  %vm2979_vm13 = vcmask 122880   ;;  %vm3130_vm14 = vcmask 123905   ;;  %vm3282_vm15 = vcmask 124930   ;;  %vm3435_vm1 = vcmask 125955  }
  0x84   :  { %5938 = vmatpush3.bf16.msra.mxu0 %v6993_v6  ;;  %5625 = vmatprep.mubr.msk.f32.mxu0 %vm6798_vm0, %v6799_v2 }
  0x85   :  { %5939 = vmatprep.subr.bf16.mxu0 %v6797_v1 }
  0x86   :  { %5935 = vmatpush3.bf16.msra.mxu1 %v6996_v11 }
  0x87   :  { %5942 = vmatprep.subr.bf16.mxu1 %v6797_v1 }
  0x88   :  { %5941 = vmatpush3.bf16.msra.mxu0 %v6996_v11 }
  0x89   :  { %5615 = vmatmul.mubr.f32.vlgmr.msra.gmra.mrb[0].mxu1 %v6799_v2  ;;  %5948 = vmatprep.subr.bf16.mxu0 %v6797_v1 }
  0x8a   :  { %5944 = vmatpush3.bf16.msra.mxu1 %v6993_v6  ;;  %5636 = vmatprep.mubr.msk.f32.mxu1 %vm6798_vm0, %v6799_v2 }
  0x8b   :  { %5945 = vmatprep.subr.bf16.mxu1 %v6797_v1 }
  0x8e   :  { %5947 = vmatpush3.bf16.msra.mxu1 %v6996_v11 }
  0x8f   :  { %5954 = vmatprep.subr.bf16.mxu1 %v6797_v1 }
 0x155   :  { %v5605_v12 = vpop.f32.mrb[0].mxu0 }
 0x156   :  { %v232_v13 = vpop.f32.mrb[1].mxu0  ;;  %v7018_v15 = vadd.f32 %v5605_v12, %v5345_v14 }
 0x157   :  { %v7020_v19 = vadd.f32 %v5345_v14, %v232_v13 }
 0x15c   :  { %v311_v16 = vpop.f32.mrb[0].mxu1 }
 0x15d   :  { %v316_v17 = vrot.slane %v311_v16, 1  ;;  %v5616_v18 = vpop.f32.mrb[1].mxu1  ;;  %v319_v21 = vadd.f32 %v311_v16, %v7020_v19 }
 0x15f   :  { %v320_v20 = vadd.f32 %v316_v17, %v7018_v15  ;;  %v5348_v25 = vmul.f32 -1.442695, %v319_v21 }
 0x161   :  { %6114 = vtanh.f32 %v320_v20  ;;  %v5349_v24 = vmul.f32 -1.442695, %v320_v20 }
 0x162   :  { %6116 = vtanh.f32 %v319_v21 }
 0x163   :  { %6118 = vpow2.f32 %v5349_v24 }
 0x164   :  { %6120 = vpow2.f32 %v5348_v25 }
 0x16b   :  { %v6115_v22 = vpop.eup %6114 }
 0x16c   :  { %341 = vrot.lane.b32.xlu0 %v6115_v22, %s6800_s28  ;;  %v6117_v23 = vpop.eup %6116 }
 0x16d   :  { %v6119_v26 = vpop.eup %6118 }
 0x16e   :  { %v328_v27 = vadd.f32 1.0, %v6119_v26  ;;  %v6121_v28 = vpop.eup %6120 }
 0x16f   :  { %v327_v29 = vadd.f32 1.0, %v6121_v28 }
 0x170   :  { %339 = vrot.lane.b32.xlu0 %v6117_v23, %s6800_s28  ;;  %6122 = vrcp.f32 %v328_v27 }
 0x171   :  { %6124 = vrcp.f32 %v327_v29 }
 0x17a   :  { %v6123_v30 = vpop.eup %6122 }
 0x17b   :  { %v6125_v33 = vpop.eup %6124  ;;  %v336_v36 = vmul.f32 0.0, %v6123_v30 }
 0x17c   :  { %v335_v39 = vmul.f32 0.0, %v6125_v33 }
 0x1de   :  { %v342_v31 = vpop.permute.xlu0 %341 }
 0x1df   :  { %v346_v32 = vmul.f32 %v6123_v30, %v342_v31 }
 0x1e1   :  { %351 = vrot.lane.b32.xlu1 %v346_v32, %s6801_s3 }
 0x1e2   :  { %v340_v34 = vpop.permute.xlu0 %339 }
 0x1e3   :  { %v345_v35 = vmul.f32 %v6125_v33, %v340_v34 }
 0x1e5   :  { %349 = vrot.lane.b32.xlu1 %v345_v35, %s6801_s3 }
 0x253   :  { %v352_v37 = vpop.permute.xlu1 %351 }
 0x254   :  { %v356_v38 = vadd.f32 %v352_v37, %v336_v36 }
 0x256   :  { %6126 = vtanh.f32 %v356_v38  ;;  %v484_v9 = vrot.slane %v356_v38, 7 }
 0x257   :  { %v350_v40 = vpop.permute.xlu1 %349 }
 0x258   :  { %v355_v41 = vadd.f32 %v350_v40, %v335_v39 }
 0x25a   :  { %6128 = vtanh.f32 %v355_v41  ;;  %v483_v12 = vrot.slane %v355_v41, 7 }
 0x260   :  { %v6127_v42 = vpop.eup %6126 }
 0x261   :  { %363 = vrot.lane.b32.xlu0 %v6127_v42, %s6800_s28 }
 0x264   :  { %v6129_v43 = vpop.eup %6128 }
 0x265   :  { %361 = vrot.lane.b32.xlu1 %v6129_v43, %s6800_s28 }
 0x2d3   :  { %v364_v44 = vpop.permute.xlu0 %363 }
 0x2d4   :  { %v7030_v45 = vmul.f32 %v6123_v30, %v364_v44 }
 0x2d6   :  { %v384_v47 = vrot.slane %v7030_v45, 7 }
 0x2d7   :  { %v362_v46 = vpop.permute.xlu1 %361 }
 0x2d8   :  { %v7033_v48 = vmul.f32 %v6125_v33, %v362_v46 }
 0x2da   :  { %v386_v49 = vsel %vm385_vm2, %v384_v47, %v7033_v48 }
 0x2db   :  { %387 = vrot.lane.b32.xlu0 %v386_v49, %s6801_s3 }
 0x34d   :  { %v388_v50 = vpop.permute.xlu0 %387 }
 0x34e   :  { %5626 = vmatmul.mubr.msk.f32.vlgmr.msra.gmra.mrb[2].mxu0 %vm241_vm3, %v388_v50 }
 0x34f   :  { %5950 = vmatpush3.bf16.msra.mxu0 %v6993_v6  ;;  %5647 = vmatprep.mubr.msk.f32.mxu0 %vm6798_vm0, %v6799_v2 }
 0x350   :  { %5951 = vmatprep.subr.bf16.mxu0 %v6797_v1 }
 0x353   :  { %5953 = vmatpush3.bf16.msra.mxu0 %v6996_v11 }
 0x354   :  { %5960 = vmatprep.subr.bf16.mxu0 %v6797_v1 }
 0x421   :  { %v457_v51 = vpop.f32.mrb[2].mxu0 }
 0x422   :  { %v462_v52 = vrot.slane %v457_v51, 7  ;;  %v466_v53 = vadd.f32 %v457_v51, %v7018_v15  ;;  %v5627_v54 = vpop.f32.mrb[3].mxu0 }
 0x424   :  { %v465_v55 = vadd.f32 %v462_v52, %v7020_v19  ;;  %6130 = vtanh.f32 %v466_v53  ;;  %v5352_v58 = vmul.f32 -1.442695, %v466_v53 }
 0x426   :  { %6132 = vtanh.f32 %v465_v55  ;;  %v5351_v59 = vmul.f32 -1.442695, %v465_v55 }
 0x427   :  { %6134 = vpow2.f32 %v5352_v58 }
 0x428   :  { %6136 = vpow2.f32 %v5351_v59 }
 0x42e   :  { %v6131_v56 = vpop.eup %6130 }
 0x42f   :  { %493 = vrot.lane.b32.xlu0 %v6131_v56, %s6800_s28 }
 0x430   :  { %v6133_v57 = vpop.eup %6132 }
 0x431   :  { %491 = vrot.lane.b32.xlu1 %v6133_v57, %s6800_s28  ;;  %v6135_v60 = vpop.eup %6134 }
 0x432   :  { %v6137_v61 = vpop.eup %6136  ;;  %v474_v62 = vadd.f32 1.0, %v6135_v60 }
 0x433   :  { %v473_v63 = vadd.f32 1.0, %v6137_v61 }
 0x434   :  { %6138 = vrcp.f32 %v474_v62 }
 0x435   :  { %6140 = vrcp.f32 %v473_v63 }
 0x43e   :  { %v6139_v0 = vpop.eup %6138 }
 0x43f   :  { %v6141_v5 = vpop.eup %6140  ;;  %v488_v10 = vmul.f32 %v6139_v0, %v484_v9 }
 0x440   :  { %v487_v16 = vmul.f32 %v6141_v5, %v483_v12 }
 0x4a1   :  { %v494_v3 = vpop.permute.xlu0 %493 }
 0x4a2   :  { %v498_v4 = vmul.f32 %v6139_v0, %v494_v3 }
 0x4a3   :  { %v492_v7 = vpop.permute.xlu1 %491 }
 0x4a4   :  { %503 = vrot.lane.b32.xlu0 %v498_v4, %s6801_s3  ;;  %v497_v8 = vmul.f32 %v6141_v5, %v492_v7 }
 0x4a6   :  { %501 = vrot.lane.b32.xlu1 %v497_v8, %s6801_s3 }
 0x516   :  { %v504_v13 = vpop.permute.xlu0 %503 }
 0x517   :  { %v508_v14 = vadd.f32 %v504_v13, %v488_v10 }
 0x518   :  { %v502_v17 = vpop.permute.xlu1 %501 }
 0x519   :  { %6142 = vtanh.f32 %v508_v14  ;;  %v507_v18 = vadd.f32 %v502_v17, %v487_v16  ;;  %v636_v52 = vrot.slane %v508_v14, 7 }
 0x51b   :  { %6144 = vtanh.f32 %v507_v18  ;;  %v635_v51 = vrot.slane %v507_v18, 7 }
 0x523   :  { %v6143_v20 = vpop.eup %6142 }
 0x524   :  { %515 = vrot.lane.b32.xlu0 %v6143_v20, %s6800_s28 }
 0x525   :  { %v6145_v21 = vpop.eup %6144 }
 0x526   :  { %513 = vrot.lane.b32.xlu1 %v6145_v21, %s6800_s28 }
 0x596   :  { %v516_v22 = vpop.permute.xlu0 %515 }
 0x597   :  { %v7055_v25 = vmul.f32 %v6139_v0, %v516_v22 }
 0x598   :  { %v514_v23 = vpop.permute.xlu1 %513 }
 0x599   :  { %v7053_v24 = vmul.f32 %v6141_v5, %v514_v23 }
 0x59b   :  { %v536_v26 = vrot.slane %v7053_v24, 1 }
 0x59d   :  { %v537_v27 = vsel %vm385_vm2, %v7055_v25, %v536_v26 }
 0x59e   :  { %538 = vrot.lane.b32.xlu1 %v537_v27, %s6801_s3 }
 0x610   :  { %v539_v28 = vpop.permute.xlu1 %538 }
 0x611   :  { %5637 = vmatmul.mubr.msk.f32.vlgmr.msra.gmra.mrb[2].mxu1 %vm241_vm3, %v539_v28 }
 0x612   :  { %5956 = vmatpush3.bf16.msra.mxu1 %v6993_v6  ;;  %5658 = vmatprep.mubr.msk.f32.mxu1 %vm6798_vm0, %v6799_v2 }
 0x613   :  { %5957 = vmatprep.subr.bf16.mxu1 %v6797_v1 }
 0x616   :  { %5959 = vmatpush3.bf16.msra.mxu1 %v6996_v11 }
 0x617   :  { %5966 = vmatprep.subr.bf16.mxu1 %v6797_v1 }
 0x6e4   :  { %v608_v29 = vpop.f32.mrb[2].mxu1 }
 0x6e5   :  { %v613_v30 = vrot.slane %v608_v29, 6  ;;  %v614_v31 = vrot.slane %v608_v29, 7  ;;  %v5638_v32 = vpop.f32.mrb[3].mxu1 }
 0x6e7   :  { %v617_v33 = vadd.f32 %v613_v30, %v7020_v19  ;;  %v618_v34 = vadd.f32 %v614_v31, %v7018_v15 }
 0x6e9   :  { %6146 = vtanh.f32 %v617_v33  ;;  %v5354_v37 = vmul.f32 -1.442695, %v617_v33  ;;  %v5355_v38 = vmul.f32 -1.442695, %v618_v34 }
 0x6ea   :  { %6148 = vtanh.f32 %v618_v34 }
 0x6eb   :  { %6150 = vpow2.f32 %v5354_v37 }
 0x6ec   :  { %6152 = vpow2.f32 %v5355_v38 }
 0x6f3   :  { %v6147_v35 = vpop.eup %6146 }
 0x6f4   :  { %v6149_v36 = vpop.eup %6148  ;;  %643 = vrot.lane.b32.xlu0 %v6147_v35, %s6800_s28 }
 0x6f5   :  { %645 = vrot.lane.b32.xlu1 %v6149_v36, %s6800_s28  ;;  %v6151_v39 = vpop.eup %6150 }
 0x6f6   :  { %v6153_v40 = vpop.eup %6152  ;;  %v625_v41 = vadd.f32 1.0, %v6151_v39 }
 0x6f7   :  { %v626_v42 = vadd.f32 1.0, %v6153_v40 }
 0x6f8   :  { %6154 = vrcp.f32 %v625_v41 }
 0x6f9   :  { %6156 = vrcp.f32 %v626_v42 }
 0x702   :  { %v6155_v43 = vpop.eup %6154 }
 0x703   :  { %v6157_v46 = vpop.eup %6156  ;;  %v639_v53 = vmul.f32 %v6155_v43, %v635_v51 }
 0x704   :  { %v640_v54 = vmul.f32 %v6157_v46, %v636_v52 }
 0x766   :  { %v644_v44 = vpop.permute.xlu0 %643 }
 0x767   :  { %v646_v47 = vpop.permute.xlu1 %645  ;;  %v649_v49 = vmul.f32 %v6155_v43, %v644_v44 }
 0x768   :  { %v650_v50 = vmul.f32 %v6157_v46, %v646_v47 }
 0x769   :  { %653 = vrot.lane.b32.xlu0 %v649_v49, %s6801_s3 }
 0x76a   :  { %655 = vrot.lane.b32.xlu1 %v650_v50, %s6801_s3 }
 0x7db   :  { %v654_v55 = vpop.permute.xlu0 %653 }
 0x7dc   :  { %v656_v56 = vpop.permute.xlu1 %655  ;;  %v659_v57 = vadd.f32 %v654_v55, %v639_v53 }
 0x7dd   :  { %v660_v58 = vadd.f32 %v656_v56, %v640_v54 }
 0x7de   :  { %6158 = vtanh.f32 %v659_v57  ;;  %v788_v33 = vrot.slane %v659_v57, 7 }
 0x7df   :  { %6160 = vtanh.f32 %v660_v58  ;;  %v789_v34 = vrot.slane %v660_v58, 7 }
 0x7e8   :  { %v6159_v59 = vpop.eup %6158 }
 0x7e9   :  { %v6161_v60 = vpop.eup %6160  ;;  %665 = vrot.lane.b32.xlu0 %v6159_v59, %s6800_s28 }
 0x7ea   :  { %667 = vrot.lane.b32.xlu1 %v6161_v60, %s6800_s28 }
 0x85b   :  { %v666_v61 = vpop.permute.xlu0 %665 }
 0x85c   :  { %v668_v62 = vpop.permute.xlu1 %667  ;;  %v7076_v63 = vmul.f32 %v6155_v43, %v666_v61 }
 0x85d   :  { %v7078_v0 = vmul.f32 %v6157_v46, %v668_v62 }
 0x85e   :  { %v688_v3 = vrot.slane %v7076_v63, 2 }
 0x85f   :  { %v689_v4 = vrot.slane %v7078_v0, 1 }
 0x861   :  { %v690_v5 = vsel %vm385_vm2, %v689_v4, %v688_v3 }
 0x862   :  { %691 = vrot.lane.b32.xlu0 %v690_v5, %s6801_s3 }
 0x8d4   :  { %v692_v7 = vpop.permute.xlu0 %691 }
 0x8d5   :  { %5648 = vmatmul.mubr.msk.f32.vlgmr.msra.gmra.mrb[4].mxu0 %vm241_vm3, %v692_v7 }
 0x8d6   :  { %5962 = vmatpush3.bf16.msra.mxu0 %v6993_v6  ;;  %5669 = vmatprep.mubr.msk.f32.mxu0 %vm6798_vm0, %v6799_v2 }
 0x8d7   :  { %5963 = vmatprep.subr.bf16.mxu0 %v6797_v1 }
 0x8da   :  { %5965 = vmatpush3.bf16.msra.mxu0 %v6996_v11 }
 0x8db   :  { %5972 = vmatprep.subr.bf16.mxu0 %v6797_v1 }
 0x9a8   :  { %v761_v8 = vpop.f32.mrb[4].mxu0 }
 0x9a9   :  { %v766_v9 = vrot.slane %v761_v8, 5  ;;  %v767_v10 = vrot.slane %v761_v8, 6  ;;  %v5649_v12 = vpop.f32.mrb[5].mxu0 }
 0x9ab   :  { %v770_v13 = vadd.f32 %v766_v9, %v7020_v19  ;;  %v771_v14 = vadd.f32 %v767_v10, %v7018_v15 }
 0x9ad   :  { %6162 = vtanh.f32 %v770_v13  ;;  %v5357_v18 = vmul.f32 -1.442695, %v770_v13  ;;  %v5358_v20 = vmul.f32 -1.442695, %v771_v14 }
 0x9ae   :  { %6164 = vtanh.f32 %v771_v14 }
 0x9af   :  { %6166 = vpow2.f32 %v5357_v18 }
 0x9b0   :  { %6168 = vpow2.f32 %v5358_v20 }
 0x9b7   :  { %v6163_v16 = vpop.eup %6162 }
 0x9b8   :  { %v6165_v17 = vpop.eup %6164  ;;  %796 = vrot.lane.b32.xlu1 %v6163_v16, %s6800_s28 }
 0x9b9   :  { %798 = vrot.lane.b32.xlu0 %v6165_v17, %s6800_s28  ;;  %v6167_v21 = vpop.eup %6166 }
 0x9ba   :  { %v6169_v22 = vpop.eup %6168  ;;  %v778_v23 = vadd.f32 1.0, %v6167_v21 }
 0x9bb   :  { %v779_v26 = vadd.f32 1.0, %v6169_v22 }
 0x9bc   :  { %6170 = vrcp.f32 %v778_v23 }
 0x9bd   :  { %6172 = vrcp.f32 %v779_v26 }
 0x9c6   :  { %v6171_v27 = vpop.eup %6170 }
 0x9c7   :  { %v6173_v29 = vpop.eup %6172  ;;  %v792_v35 = vmul.f32 %v6171_v27, %v788_v33 }
 0x9c8   :  { %v793_v36 = vmul.f32 %v6173_v29, %v789_v34 }
 0xa2a   :  { %v797_v28 = vpop.permute.xlu1 %796 }
 0xa2b   :  { %v799_v30 = vpop.permute.xlu0 %798  ;;  %v802_v31 = vmul.f32 %v6171_v27, %v797_v28 }
 0xa2c   :  { %v803_v32 = vmul.f32 %v6173_v29, %v799_v30 }
 0xa2d   :  { %806 = vrot.lane.b32.xlu1 %v802_v31, %s6801_s3 }
 0xa2e   :  { %808 = vrot.lane.b32.xlu0 %v803_v32, %s6801_s3 }
 0xa9f   :  { %v807_v37 = vpop.permute.xlu1 %806 }
 0xaa0   :  { %v809_v38 = vpop.permute.xlu0 %808  ;;  %v812_v39 = vadd.f32 %v807_v37, %v792_v35 }
 0xaa1   :  { %v813_v40 = vadd.f32 %v809_v38, %v793_v36 }
 0xaa2   :  { %6174 = vtanh.f32 %v812_v39  ;;  %v941_v16 = vrot.slane %v812_v39, 7 }
 0xaa3   :  { %6176 = vtanh.f32 %v813_v40  ;;  %v942_v17 = vrot.slane %v813_v40, 7 }
 0xaac   :  { %v6175_v41 = vpop.eup %6174 }
 0xaad   :  { %v6177_v42 = vpop.eup %6176  ;;  %818 = vrot.lane.b32.xlu1 %v6175_v41, %s6800_s28 }
 0xaae   :  { %820 = vrot.lane.b32.xlu0 %v6177_v42, %s6800_s28 }
 0xb1f   :  { %v819_v43 = vpop.permute.xlu1 %818 }
 0xb20   :  { %v821_v44 = vpop.permute.xlu0 %820  ;;  %v7099_v46 = vmul.f32 %v6171_v27, %v819_v43 }
 0xb21   :  { %v7101_v47 = vmul.f32 %v6173_v29, %v821_v44 }
 0xb22   :  { %v841_v49 = vrot.slane %v7099_v46, 3 }
 0xb23   :  { %v842_v50 = vrot.slane %v7101_v47, 2 }
 0xb25   :  { %v843_v51 = vsel %vm385_vm2, %v842_v50, %v841_v49 }
 0xb26   :  { %844 = vrot.lane.b32.xlu1 %v843_v51, %s6801_s3 }
 0xb98   :  { %v845_v52 = vpop.permute.xlu1 %844 }
 0xb99   :  { %5659 = vmatmul.mubr.msk.f32.vlgmr.msra.gmra.mrb[4].mxu1 %vm241_vm3, %v845_v52 }
 0xb9a   :  { %5968 = vmatpush3.bf16.msra.mxu1 %v6993_v6  ;;  %5680 = vmatprep.mubr.msk.f32.mxu1 %vm6798_vm0, %v6799_v2 }
 0xb9b   :  { %5969 = vmatprep.subr.bf16.mxu1 %v6797_v1 }
 0xb9e   :  { %5971 = vmatpush3.bf16.msra.mxu1 %v6996_v11 }
 0xc6c   :  { %v914_v53 = vpop.f32.mrb[4].mxu1 }
 0xc6d   :  { %v919_v54 = vrot.slane %v914_v53, 4  ;;  %v920_v55 = vrot.slane %v914_v53, 5  ;;  %v5660_v56 = vpop.f32.mrb[5].mxu1 }
 0xc6f   :  { %v923_v57 = vadd.f32 %v919_v54, %v7020_v19  ;;  %v924_v58 = vadd.f32 %v920_v55, %v7018_v15 }
 0xc71   :  { %6178 = vtanh.f32 %v923_v57  ;;  %v5360_v61 = vmul.f32 -1.442695, %v923_v57  ;;  %v5361_v62 = vmul.f32 -1.442695, %v924_v58 }
 0xc72   :  { %6180 = vtanh.f32 %v924_v58 }
 0xc73   :  { %6182 = vpow2.f32 %v5360_v61 }
 0xc74   :  { %6184 = vpow2.f32 %v5361_v62 }
 0xc7b   :  { %v6179_v59 = vpop.eup %6178 }
 0xc7c   :  { %v6181_v60 = vpop.eup %6180  ;;  %949 = vrot.lane.b32.xlu0 %v6179_v59, %s6800_s28 }
 0xc7d   :  { %951 = vrot.lane.b32.xlu1 %v6181_v60, %s6800_s28  ;;  %v6183_v3 = vpop.eup %6182 }
 0xc7e   :  { %v6185_v4 = vpop.eup %6184  ;;  %v931_v5 = vadd.f32 1.0, %v6183_v3 }
 0xc7f   :  { %v932_v7 = vadd.f32 1.0, %v6185_v4 }
 0xc80   :  { %6186 = vrcp.f32 %v931_v5 }
 0xc81   :  { %6188 = vrcp.f32 %v932_v7 }
 0xc8a   :  { %v6187_v8 = vpop.eup %6186 }
 0xc8b   :  { %v6189_v10 = vpop.eup %6188  ;;  %v945_v18 = vmul.f32 %v6187_v8, %v941_v16 }
 0xc8c   :  { %v946_v20 = vmul.f32 %v6189_v10, %v942_v17 }
 0xcee   :  { %v950_v9 = vpop.permute.xlu0 %949 }
 0xcef   :  { %v952_v12 = vpop.permute.xlu1 %951  ;;  %v955_v13 = vmul.f32 %v6187_v8, %v950_v9 }
 0xcf0   :  { %v956_v14 = vmul.f32 %v6189_v10, %v952_v12 }
 0xcf1   :  { %959 = vrot.lane.b32.xlu0 %v955_v13, %s6801_s3 }
 0xcf2   :  { %961 = vrot.lane.b32.xlu1 %v956_v14, %s6801_s3 }
 0xd63   :  { %v960_v21 = vpop.permute.xlu0 %959 }
 0xd64   :  { %v962_v22 = vpop.permute.xlu1 %961  ;;  %v965_v23 = vadd.f32 %v960_v21, %v945_v18 }
 0xd65   :  { %v966_v26 = vadd.f32 %v962_v22, %v946_v20 }
 0xd66   :  { %6190 = vtanh.f32 %v965_v23  ;;  %v1094_v59 = vrot.slane %v965_v23, 7 }
 0xd67   :  { %6192 = vtanh.f32 %v966_v26  ;;  %v1095_v60 = vrot.slane %v966_v26, 7 }
 0xd70   :  { %v6191_v27 = vpop.eup %6190 }
 0xd71   :  { %v6193_v28 = vpop.eup %6192  ;;  %971 = vrot.lane.b32.xlu0 %v6191_v27, %s6800_s28 }
 0xd72   :  { %973 = vrot.lane.b32.xlu1 %v6193_v28, %s6800_s28 }
 0xde3   :  { %v972_v29 = vpop.permute.xlu0 %971 }
 0xde4   :  { %v974_v30 = vpop.permute.xlu1 %973  ;;  %v7121_v31 = vmul.f32 %v6187_v8, %v972_v29 }
 0xde5   :  { %v7123_v32 = vmul.f32 %v6189_v10, %v974_v30 }
 0xde6   :  { %v994_v33 = vrot.slane %v7121_v31, 4 }
 0xde7   :  { %v995_v34 = vrot.slane %v7123_v32, 3 }
 0xde9   :  { %v996_v35 = vsel %vm385_vm2, %v995_v34, %v994_v33 }
 0xdea   :  { %997 = vrot.lane.b32.xlu0 %v996_v35, %s6801_s3 }
 0xe5c   :  { %v998_v36 = vpop.permute.xlu0 %997 }
 0xe5d   :  { %5670 = vmatmul.mubr.msk.f32.vlgmr.msra.gmra.mrb[6].mxu0 %vm241_vm3, %v998_v36 }
 0xe5e   :  { %5974 = vmatpush3.bf16.msra.mxu0 %v6993_v6  ;;  %5691 = vmatprep.mubr.msk.f32.mxu0 %vm6798_vm0, %v6799_v2 }
 0xe5f   :  { %5975 = vmatprep.subr.bf16.mxu0 %v6797_v1 }
 0xe62   :  { %5977 = vmatpush3.bf16.msra.mxu0 %v6996_v11 }
 0xe63   :  { %5986 = vmatprep.subr.bf16.mxu0 %v6797_v1 }
 0xf30   :  { %v1067_v37 = vpop.f32.mrb[6].mxu0 }
 0xf31   :  { %v1072_v38 = vrot.slane %v1067_v37, 3  ;;  %v1073_v39 = vrot.slane %v1067_v37, 4  ;;  %v5671_v40 = vpop.f32.mrb[7].mxu0 }
 0xf33   :  { %v1076_v41 = vadd.f32 %v1072_v38, %v7020_v19  ;;  %v1077_v42 = vadd.f32 %v1073_v39, %v7018_v15 }
 0xf35   :  { %6194 = vtanh.f32 %v1076_v41  ;;  %v5363_v44 = vmul.f32 -1.442695, %v1076_v41  ;;  %v5364_v11 = vmul.f32 -1.442695, %v1077_v42 }
 0xf36   :  { %6196 = vtanh.f32 %v1077_v42 }
 0xf37   :  { %6198 = vpow2.f32 %v5363_v44 }
 0xf38   :  { %6200 = vpow2.f32 %v5364_v11 }
 0xf3f   :  { %v6195_v6 = vpop.eup %6194 }
 0xf40   :  { %v6197_v43 = vpop.eup %6196  ;;  %1102 = vrot.lane.b32.xlu1 %v6195_v6, %s6800_s28 }
 0xf41   :  { %1104 = vrot.lane.b32.xlu0 %v6197_v43, %s6800_s28  ;;  %v6199_v49 = vpop.eup %6198 }
 0xf42   :  { %v6201_v50 = vpop.eup %6200  ;;  %v1084_v51 = vadd.f32 1.0, %v6199_v49 }
 0xf43   :  { %v1085_v52 = vadd.f32 1.0, %v6201_v50 }
 0xf44   :  { %6202 = vrcp.f32 %v1084_v51 }
 0xf45   :  { %6204 = vrcp.f32 %v1085_v52 }
 0xf4e   :  { %v6203_v53 = vpop.eup %6202 }
 0xf4f   :  { %v6205_v55 = vpop.eup %6204  ;;  %v1098_v61 = vmul.f32 %v6203_v53, %v1094_v59 }
 0xf50   :  { %v1099_v62 = vmul.f32 %v6205_v55, %v1095_v60 }
 0xfb2   :  { %v1103_v54 = vpop.permute.xlu1 %1102 }
 0xfb3   :  { %v1105_v56 = vpop.permute.xlu0 %1104  ;;  %v1108_v57 = vmul.f32 %v6203_v53, %v1103_v54 }
 0xfb4   :  { %v1109_v58 = vmul.f32 %v6205_v55, %v1105_v56 }
 0xfb5   :  { %1112 = vrot.lane.b32.xlu1 %v1108_v57, %s6801_s3 }
 0xfb6   :  { %1114 = vrot.lane.b32.xlu0 %v1109_v58, %s6801_s3 }
0x1027   :  { %v1113_v3 = vpop.permute.xlu1 %1112 }
0x1028   :  { %v1115_v4 = vpop.permute.xlu0 %1114  ;;  %v1118_v5 = vadd.f32 %v1113_v3, %v1098_v61 }
0x1029   :  { %v1119_v7 = vadd.f32 %v1115_v4, %v1099_v62 }
0x102a   :  { %6206 = vtanh.f32 %v1118_v5  ;;  %v1247_v44 = vrot.slane %v1118_v5, 7 }
0x102b   :  { %6208 = vtanh.f32 %v1119_v7  ;;  %v1248_v11 = vrot.slane %v1119_v7, 7 }
0x1034   :  { %v6207_v8 = vpop.eup %6206 }
0x1035   :  { %v6209_v9 = vpop.eup %6208  ;;  %1124 = vrot.lane.b32.xlu1 %v6207_v8, %s6800_s28 }
0x1036   :  { %1126 = vrot.lane.b32.xlu0 %v6209_v9, %s6800_s28 }
0x10a7   :  { %v1125_v10 = vpop.permute.xlu1 %1124 }
0x10a8   :  { %v1127_v12 = vpop.permute.xlu0 %1126  ;;  %v7144_v13 = vmul.f32 %v6203_v53, %v1125_v10 }
0x10a9   :  { %v7146_v14 = vmul.f32 %v6205_v55, %v1127_v12 }
0x10aa   :  { %v1147_v16 = vrot.slane %v7144_v13, 5 }
0x10ab   :  { %v1148_v17 = vrot.slane %v7146_v14, 4 }
0x10ad   :  { %v1149_v18 = vsel %vm385_vm2, %v1148_v17, %v1147_v16 }
0x10ae   :  { %1150 = vrot.lane.b32.xlu1 %v1149_v18, %s6801_s3 }
0x1120   :  { %v1151_v20 = vpop.permute.xlu1 %1150 }
0x1121   :  { %5681 = vmatmul.mubr.msk.f32.vlgmr.msra.gmra.mrb[6].mxu1 %vm241_vm3, %v1151_v20 }
0x11f4   :  { %v1220_v21 = vpop.f32.mrb[6].mxu1 }
0x11f5   :  { %v1225_v22 = vrot.slane %v1220_v21, 2  ;;  %v1226_v23 = vrot.slane %v1220_v21, 3  ;;  %v5682_v26 = vpop.f32.mrb[7].mxu1 }
0x11f7   :  { %v1229_v27 = vadd.f32 %v1225_v22, %v7020_v19  ;;  %v1230_v28 = vadd.f32 %v1226_v23, %v7018_v15 }
0x11f9   :  { %6210 = vtanh.f32 %v1229_v27  ;;  %v5366_v33 = vmul.f32 -1.442695, %v1229_v27  ;;  %v5367_v34 = vmul.f32 -1.442695, %v1230_v28 }
0x11fa   :  { %6212 = vtanh.f32 %v1230_v28 }
0x11fb   :  { %6214 = vpow2.f32 %v5366_v33 }
0x11fc   :  { %6216 = vpow2.f32 %v5367_v34 }
0x1203   :  { %v6211_v29 = vpop.eup %6210 }
0x1204   :  { %v6213_v30 = vpop.eup %6212  ;;  %1255 = vrot.lane.b32.xlu0 %v6211_v29, %s6800_s28 }
0x1205   :  { %1257 = vrot.lane.b32.xlu1 %v6213_v30, %s6800_s28  ;;  %v6215_v35 = vpop.eup %6214 }
0x1206   :  { %v6217_v36 = vpop.eup %6216  ;;  %v1237_v37 = vadd.f32 1.0, %v6215_v35 }
0x1207   :  { %v1238_v38 = vadd.f32 1.0, %v6217_v36 }
0x1208   :  { %6218 = vrcp.f32 %v1237_v37 }
0x1209   :  { %6220 = vrcp.f32 %v1238_v38 }
0x1212   :  { %v6219_v39 = vpop.eup %6218 }
0x1213   :  { %v6221_v41 = vpop.eup %6220  ;;  %v1251_v49 = vmul.f32 %v6219_v39, %v1247_v44  ;;  %v673_v44 = vmax.f32 %v7076_v63, 0.0  ;;  %v370_v63 = vmax.f32 %v7030_v45, 0.0 }
0x1214   :  { %v1252_v50 = vmul.f32 %v6221_v41, %v1248_v11  ;;  %v826_v11 = vmax.f32 %v7099_v46, 0.0  ;;  %v827_v46 = vmax.f32 %v7101_v47, 0.0  ;;  %v1457_v47 = vld [vmem:[%s7864_s4] sm:$0xff] }
0x1276   :  { %v1256_v40 = vpop.permute.xlu0 %1255 }
0x1277   :  { %v1258_v42 = vpop.permute.xlu1 %1257  ;;  %v1261_v6 = vmul.f32 %v6219_v39, %v1256_v40 }
0x1278   :  { %v1262_v43 = vmul.f32 %v6221_v41, %v1258_v42 }
0x1279   :  { %1265 = vrot.lane.b32.xlu0 %v1261_v6, %s6801_s3  ;;  %v369_v6 = vmax.f32 %v7033_v48, 0.0 }
0x127a   :  { %1267 = vrot.lane.b32.xlu1 %v1262_v43, %s6801_s3  ;;  %v521_v43 = vmax.f32 %v7053_v24, 0.0  ;;  %v522_v24 = vmax.f32 %v7055_v25, 0.0  ;;  %v980_v25 = vmax.f32 %v7123_v32, 0.0  ;;  %v1459_v32 = vld [vmem:[%s7864_s4 + $0x10] sm:$0xff] }
0x12eb   :  { %v1266_v51 = vpop.permute.xlu0 %1265 }
0x12ec   :  { %v1268_v52 = vpop.permute.xlu1 %1267  ;;  %v1271_v53 = vadd.f32 %v1266_v51, %v1251_v49  ;;  %v979_v49 = vmax.f32 %v7121_v31, 0.0  ;;  %v674_v31 = vmax.f32 %v7078_v0, 0.0  ;;  %v1458_v0 = vld [vmem:[%s7864_s4 + $0x8] sm:$0xff] }
0x12ed   :  { %v1272_v54 = vadd.f32 %v1268_v52, %v1252_v50  ;;  %v1132_v50 = vmax.f32 %v7144_v13, 0.0  ;;  %v1133_v13 = vmax.f32 %v7146_v14, 0.0  ;;  %v1453_v14 = vld [vmem:[#allocation11] sm:$0xff]  ;;  %v5978_v51 = vpack.c.bf16 %v1458_v0, %v1457_v47  ;;  %v1454_v52 = vld [vmem:[#allocation11 + $0x8] sm:$0xff] }
0x12ee   :  { %6222 = vtanh.f32 %v1271_v53  ;;  %v1400_v33 = vrot.slane %v1271_v53, 7  ;;  %v7222_v53 = vpack.c.bf16 %v1454_v52, %v1453_v14 }
0x12ef   :  { %6224 = vtanh.f32 %v1272_v54  ;;  %v1401_v34 = vrot.slane %v1272_v54, 7  ;;  %v1460_v54 = vld [vmem:[%s7864_s4 + $0x18] sm:$0xff]  ;;  %5979 = vmatprep.subr.bf16.mxu1 %v5978_v51 }
0x12f0   :  { %5981 = vmatpush3.bf16.msra.mxu1 %v5978_v51 }
0x12f8   :  { %v6223_v55 = vpop.eup %6222 }
0x12f9   :  { %v6225_v56 = vpop.eup %6224  ;;  %1277 = vrot.lane.b32.xlu0 %v6223_v55, %s6800_s28  ;;  %v5982_v55 = vpack.c.bf16 %v1460_v54, %v1459_v32 }
0x12fa   :  { %1279 = vrot.lane.b32.xlu1 %v6225_v56, %s6800_s28  ;;  %v1455_v56 = vld [vmem:[#allocation11 + $0x10] sm:$0xff] }
0x12fb   :  { %5983 = vmatprep.subr.bf16.mxu1 %v5982_v55 }
0x12fc   :  { %5985 = vmatpush3.bf16.msra.mxu1 %v5982_v55 }
0x12fd   :  { %5992 = vmatprep.subr.bf16.mxu1 %v6797_v1 }
0x136b   :  { %v1278_v57 = vpop.permute.xlu0 %1277 }
0x136c   :  { %v1280_v58 = vpop.permute.xlu1 %1279  ;;  %v7161_v59 = vmul.f32 %v6219_v39, %v1278_v57  ;;  %v1456_v57 = vld [vmem:[#allocation11 + $0x18] sm:$0xff] }
0x136d   :  { %v7163_v60 = vmul.f32 %v6221_v41, %v1280_v58  ;;  %v7232_v58 = vpack.c.bf16 %v1456_v57, %v1455_v56 }
0x136e   :  { %v1300_v61 = vrot.slane %v7161_v59, 6  ;;  %v1285_v48 = vmax.f32 %v7161_v59, 0.0 }
0x136f   :  { %v1301_v62 = vrot.slane %v7163_v60, 5  ;;  %v1286_v45 = vmax.f32 %v7163_v60, 0.0 }
0x1371   :  { %v1302_v3 = vsel %vm385_vm2, %v1301_v62, %v1300_v61 }
0x1372   :  { %1303 = vrot.lane.b32.xlu0 %v1302_v3, %s6801_s3 }
0x13e4   :  { %v1304_v4 = vpop.permute.xlu0 %1303 }
0x13e5   :  { %5692 = vmatmul.mubr.msk.f32.vlgmr.msra.gmra.mrb[8].mxu0 %vm241_vm3, %v1304_v4 }
0x13e6   :  { %5713 = vmatprep.mubr.msk.f32.mxu0 %vm6798_vm0, %v6799_v2  ;;  %5988 = vmatpush3.bf16.msra.mxu0 %v7222_v53 }
0x13e7   :  { %5989 = vmatprep.subr.bf16.mxu0 %v6797_v1 }
0x13ea   :  { %5991 = vmatpush3.bf16.msra.mxu0 %v7232_v58 }
0x13eb   :  { %5998 = vmatprep.subr.bf16.mxu0 %v6797_v1 }
0x13ed   :  { %5714 = vmatmul.mubr.f32.vlgmr.msra.gmra.mrb[10].mxu0 %v6799_v2 }
0x13ee   :  { %6000 = vmatpush3.bf16.msra.mxu0 %v7222_v53  ;;  %5735 = vmatprep.mubr.msk.f32.mxu0 %vm6798_vm0, %v6799_v2 }
0x13ef   :  { %6001 = vmatprep.subr.bf16.mxu0 %v6797_v1 }
0x13f2   :  { %6003 = vmatpush3.bf16.msra.mxu0 %v7232_v58 }
0x13f3   :  { %6010 = vmatprep.subr.bf16.mxu0 %v6797_v1 }
0x14b8   :  { %v1373_v5 = vpop.f32.mrb[8].mxu0 }
0x14b9   :  { %v1378_v7 = vrot.slane %v1373_v5, 1  ;;  %v1379_v8 = vrot.slane %v1373_v5, 2  ;;  %v5693_v9 = vpop.f32.mrb[9].mxu0 }
0x14bb   :  { %v1382_v10 = vadd.f32 %v1378_v7, %v7020_v19  ;;  %v1383_v12 = vadd.f32 %v1379_v8, %v7018_v15 }
0x14bd   :  { %6226 = vtanh.f32 %v1382_v10  ;;  %v5369_v18 = vmul.f32 -1.442695, %v1382_v10  ;;  %v5370_v20 = vmul.f32 -1.442695, %v1383_v12 }
0x14be   :  { %6228 = vtanh.f32 %v1383_v12 }
0x14bf   :  { %6230 = vpow2.f32 %v5369_v18 }
0x14c0   :  { %6232 = vpow2.f32 %v5370_v20 }
0x14c7   :  { %v6227_v16 = vpop.eup %6226 }
0x14c8   :  { %v6229_v17 = vpop.eup %6228  ;;  %1408 = vrot.lane.b32.xlu1 %v6227_v16, %s6800_s28 }
0x14c9   :  { %1410 = vrot.lane.b32.xlu0 %v6229_v17, %s6800_s28  ;;  %v6231_v21 = vpop.eup %6230 }
0x14ca   :  { %v6233_v22 = vpop.eup %6232  ;;  %v1390_v23 = vadd.f32 1.0, %v6231_v21 }
0x14cb   :  { %v1391_v26 = vadd.f32 1.0, %v6233_v22 }
0x14cc   :  { %6234 = vrcp.f32 %v1390_v23 }
0x14cd   :  { %6236 = vrcp.f32 %v1391_v26 }
0x14d6   :  { %v7176_v19 = vpop.eup %6234 }
0x14d7   :  { %v7178_v27 = vpop.eup %6236  ;;  %v1404_v35 = vmul.f32 %v7176_v19, %v1400_v33  ;;  %v5371_v33 = vld [vmem:[%s7866_s6] ss:$0 sm:$0xff] }
0x14d8   :  { %v1405_v36 = vmul.f32 %v7178_v27, %v1401_v34 }
0x153a   :  { %v1409_v15 = vpop.permute.xlu1 %1408 }
0x153b   :  { %v1411_v28 = vpop.permute.xlu0 %1410  ;;  %v1414_v29 = vmul.f32 %v7176_v19, %v1409_v15 }
0x153c   :  { %v1415_v30 = vmul.f32 %v7178_v27, %v1411_v28 }
0x153d   :  { %1418 = vrot.lane.b32.xlu1 %v1414_v29, %s6801_s3  ;;  %v1615_v29 = vpop.f32.mrb[10].mxu0 }
0x153e   :  { %1420 = vrot.lane.b32.xlu0 %v1415_v30, %s6801_s3  ;;  %v5715_v30 = vpop.f32.mrb[11].mxu0  ;;  %v1620_v34 = vrot.slane %v1615_v29, 1 }
0x15af   :  { %v1419_v37 = vpop.permute.xlu1 %1418 }
0x15b0   :  { %v1421_v38 = vpop.permute.xlu0 %1420  ;;  %v1424_v39 = vadd.f32 %v1419_v37, %v1404_v35 }
0x15b1   :  { %v1425_v40 = vadd.f32 %v1421_v38, %v1405_v36 }
0x15b2   :  { %6238 = vtanh.f32 %v1424_v39 }
0x15b3   :  { %6240 = vtanh.f32 %v1425_v40 }
0x15bc   :  { %v6239_v41 = vpop.eup %6238 }
0x15bd   :  { %v6241_v42 = vpop.eup %6240  ;;  %1430 = vrot.lane.b32.xlu1 %v6239_v41, %s6800_s28 }
0x15be   :  { %1432 = vrot.lane.b32.xlu0 %v6241_v42, %s6800_s28 }
0x15c1   :  { %373 = vrot.lane.b32.xlu1 %v369_v6, %s6801_s3 }
0x15c2   :  { %525 = vrot.lane.b32.xlu0 %v521_v43, %s6801_s3 }
0x15c5   :  { %677 = vrot.lane.b32.xlu1 %v673_v44, %s6801_s3 }
0x15c6   :  { %830 = vrot.lane.b32.xlu0 %v826_v11, %s6801_s3 }
0x15c9   :  { %983 = vrot.lane.b32.xlu1 %v979_v49, %s6801_s3 }
0x15ca   :  { %1136 = vrot.lane.b32.xlu0 %v1132_v50, %s6801_s3 }
0x15cd   :  { %1289 = vrot.lane.b32.xlu1 %v1285_v48, %s6801_s3 }
0x15ce   :  { %527 = vrot.lane.b32.xlu0 %v522_v24, %s6801_s3 }
0x15d1   :  { %375 = vrot.lane.b32.xlu1 %v370_v63, %s6801_s3 }
0x15d2   :  { %832 = vrot.lane.b32.xlu0 %v827_v46, %s6801_s3 }
0x15d5   :  { %679 = vrot.lane.b32.xlu1 %v674_v31, %s6801_s3 }
0x15d6   :  { %1138 = vrot.lane.b32.xlu0 %v1133_v13, %s6801_s3 }
0x15d9   :  { %985 = vrot.lane.b32.xlu1 %v980_v25, %s6801_s3 }
0x15dd   :  { %1291 = vrot.lane.b32.xlu1 %v1286_v45, %s6801_s3 }
0x162f   :  { %v1431_v59 = vpop.permute.xlu1 %1430 }
0x1630   :  { %v1433_v60 = vpop.permute.xlu0 %1432  ;;  %v1436_v61 = vmul.f32 %v7176_v19, %v1431_v59 }
0x1631   :  { %v1437_v62 = vmul.f32 %v7178_v27, %v1433_v60 }
0x1632   :  { %v1438_v3 = vmax.f32 %v1436_v61, 0.0 }
0x1633   :  { %v374_v4 = vpop.permute.xlu1 %373  ;;  %v1439_v7 = vmax.f32 %v1437_v62, 0.0 }
0x1634   :  { %v526_v5 = vpop.permute.xlu0 %525  ;;  %380 = vst.msk [vmem:[#allocation2] sm:$0x1] %vm379_vm4, %v374_v4  ;;  %1442 = vrot.lane.b32.xlu0 %v1438_v3, %s6801_s3 }
0x1635   :  { %532 = vst.msk [vmem:[#allocation2] sm:$0x2] %vm531_vm5, %v526_v5 }
0x1637   :  { %v678_v8 = vpop.permute.xlu1 %677 }
0x1638   :  { %v831_v9 = vpop.permute.xlu0 %830  ;;  %684 = vst.msk [vmem:[#allocation2] sm:$0x4] %vm683_vm6, %v678_v8  ;;  %1444 = vrot.lane.b32.xlu0 %v1439_v7, %s6801_s3 }
0x1639   :  { %837 = vst.msk [vmem:[#allocation2] sm:$0x8] %vm836_vm7, %v831_v9 }
0x163b   :  { %v984_v10 = vpop.permute.xlu1 %983 }
0x163c   :  { %v1137_v12 = vpop.permute.xlu0 %1136  ;;  %990 = vst.msk [vmem:[#allocation2] sm:$0x10] %vm989_vm8, %v984_v10 }
0x163d   :  { %1143 = vst.msk [vmem:[#allocation2] sm:$0x20] %vm1142_vm9, %v1137_v12 }
0x163f   :  { %v1290_v16 = vpop.permute.xlu1 %1289 }
0x1640   :  { %v528_v17 = vpop.permute.xlu0 %527  ;;  %1296 = vst.msk [vmem:[#allocation2] sm:$0x40] %vm1295_vm10, %v1290_v16 }
0x1641   :  { %533 = vst.msk [vmem:[#allocation2 + $0x8] sm:$0x2] %vm531_vm5, %v528_v17 }
0x1643   :  { %v376_v18 = vpop.permute.xlu1 %375 }
0x1644   :  { %v833_v20 = vpop.permute.xlu0 %832  ;;  %381 = vst.msk [vmem:[#allocation2 + $0x8] sm:$0x1] %vm379_vm4, %v376_v18 }
0x1645   :  { %838 = vst.msk [vmem:[#allocation2 + $0x8] sm:$0x8] %vm836_vm7, %v833_v20 }
0x1647   :  { %v680_v21 = vpop.permute.xlu1 %679 }
0x1648   :  { %v1139_v22 = vpop.permute.xlu0 %1138  ;;  %685 = vst.msk [vmem:[#allocation2 + $0x8] sm:$0x4] %vm683_vm6, %v680_v21 }
0x1649   :  { %1144 = vst.msk [vmem:[#allocation2 + $0x8] sm:$0x20] %vm1142_vm9, %v1139_v22 }
0x164b   :  { %v986_v23 = vpop.permute.xlu1 %985 }
0x164c   :  { %991 = vst.msk [vmem:[#allocation2 + $0x8] sm:$0x10] %vm989_vm8, %v986_v23 }
0x164f   :  { %v1292_v26 = vpop.permute.xlu1 %1291 }
0x1650   :  { %1297 = vst.msk [vmem:[#allocation2 + $0x8] sm:$0x40] %vm1295_vm10, %v1292_v26 }
0x16a6   :  { %v1443_v19 = vpop.permute.xlu0 %1442 }
0x16a7   :  { %1449 = vst.msk [vmem:[#allocation2] sm:$0x80] %vm1448_vm11, %v1443_v19 }
0x16aa   :  { %v1445_v15 = vpop.permute.xlu0 %1444 }
0x16ab   :  { %1450 = vst.msk [vmem:[#allocation2 + $0x8] sm:$0x80] %vm1448_vm11, %v1445_v15 }
0x16ae   :  { %v1451_v27 = vld [vmem:[#allocation2] sm:$0xff] }
0x16af   :  { %5702 = vmatprep.mubr.msk.f32.mxu1 %vm241_vm3, %v1451_v27 }
0x16b2   :  { %v1452_v28 = vld [vmem:[#allocation2 + $0x8] sm:$0xff] }
0x16b3   :  { %5703 = vmatmul.mubr.msk.f32.vlgmr.msra.gmra.mrb[8].mxu1 %vm241_vm3, %v1452_v28 }
0x16b4   :  { %5994 = vmatpush3.bf16.msra.mxu1 %v7222_v53  ;;  %5724 = vmatprep.mubr.msk.f32.mxu1 %vm6798_vm0, %v6799_v2 }
0x16b5   :  { %5995 = vmatprep.subr.bf16.mxu1 %v6797_v1 }
0x16b8   :  { %5997 = vmatpush3.bf16.msra.mxu1 %v7232_v58 }
0x16b9   :  { %6004 = vmatprep.subr.bf16.mxu1 %v6797_v1 }
0x1786   :  { %v5704_v35 = vpop.f32.mrb[8].mxu1 }
0x1787   :  { %v7275_v36 = vadd.f32 %v5704_v35, %v5371_v33  ;;  %v1540_v37 = vpop.f32.mrb[9].mxu1 }
0x1788   :  { %v7277_v38 = vadd.f32 %v5371_v33, %v1540_v37 }
0x1789   :  { %v1624_v39 = vadd.f32 %v1620_v34, %v7275_v36 }
0x178a   :  { %v1623_v40 = vadd.f32 %v1615_v29, %v7277_v38 }
0x178b   :  { %6242 = vtanh.f32 %v1624_v39  ;;  %v5375_v6 = vmul.f32 -1.442695, %v1624_v39 }
0x178c   :  { %6244 = vtanh.f32 %v1623_v40  ;;  %v5374_v43 = vmul.f32 -1.442695, %v1623_v40 }
0x178d   :  { %6246 = vpow2.f32 %v5375_v6 }
0x178e   :  { %6248 = vpow2.f32 %v5374_v43 }
0x1795   :  { %v6243_v41 = vpop.eup %6242 }
0x1796   :  { %v6245_v42 = vpop.eup %6244  ;;  %1645 = vrot.lane.b32.xlu1 %v6243_v41, %s6800_s28 }
0x1797   :  { %1643 = vrot.lane.b32.xlu0 %v6245_v42, %s6800_s28  ;;  %v6247_v44 = vpop.eup %6246 }
0x1798   :  { %v6249_v11 = vpop.eup %6248  ;;  %v1632_v49 = vadd.f32 1.0, %v6247_v44 }
0x1799   :  { %v1631_v50 = vadd.f32 1.0, %v6249_v11 }
0x179a   :  { %6250 = vrcp.f32 %v1632_v49 }
0x179b   :  { %6252 = vrcp.f32 %v1631_v50 }
0x17a4   :  { %v6251_v48 = vpop.eup %6250 }
0x17a5   :  { %v6253_v63 = vpop.eup %6252  ;;  %v1640_v25 = vmul.f32 0.0, %v6251_v48 }
0x17a6   :  { %v1639_v47 = vmul.f32 0.0, %v6253_v63 }
0x1808   :  { %v1646_v24 = vpop.permute.xlu1 %1645 }
0x1809   :  { %v1650_v46 = vmul.f32 %v6251_v48, %v1646_v24  ;;  %v1644_v31 = vpop.permute.xlu0 %1643 }
0x180a   :  { %v1649_v13 = vmul.f32 %v6253_v63, %v1644_v31 }
0x180b   :  { %1655 = vrot.lane.b32.xlu1 %v1650_v46, %s6801_s3 }
0x180c   :  { %1653 = vrot.lane.b32.xlu0 %v1649_v13, %s6801_s3 }
0x187d   :  { %v1656_v45 = vpop.permute.xlu1 %1655 }
0x187e   :  { %v1660_v0 = vadd.f32 %v1656_v45, %v1640_v25  ;;  %v1654_v14 = vpop.permute.xlu0 %1653 }
0x187f   :  { %v1659_v51 = vadd.f32 %v1654_v14, %v1639_v47 }
0x1880   :  { %6254 = vtanh.f32 %v1660_v0  ;;  %v1786_v27 = vrot.slane %v1660_v0, 7 }
0x1881   :  { %6256 = vtanh.f32 %v1659_v51  ;;  %v1785_v29 = vrot.slane %v1659_v51, 7 }
0x188a   :  { %v6255_v52 = vpop.eup %6254 }
0x188b   :  { %v6257_v32 = vpop.eup %6256  ;;  %1667 = vrot.lane.b32.xlu1 %v6255_v52, %s6800_s28 }
0x188c   :  { %1665 = vrot.lane.b32.xlu0 %v6257_v32, %s6800_s28 }
0x18fd   :  { %v1668_v54 = vpop.permute.xlu1 %1667 }
0x18fe   :  { %v7287_v55 = vmul.f32 %v6251_v48, %v1668_v54  ;;  %v1666_v56 = vpop.permute.xlu0 %1665 }
0x18ff   :  { %v7289_v57 = vmul.f32 %v6253_v63, %v1666_v56 }
0x1900   :  { %v1687_v59 = vrot.slane %v7287_v55, 7 }
0x1902   :  { %v1688_v60 = vsel %vm385_vm2, %v1687_v59, %v7289_v57 }
0x1903   :  { %1689 = vrot.lane.b32.xlu1 %v1688_v60, %s6801_s3 }
0x1975   :  { %v1690_v61 = vpop.permute.xlu1 %1689 }
0x1976   :  { %5725 = vmatmul.mubr.msk.f32.vlgmr.msra.gmra.mrb[10].mxu1 %vm241_vm3, %v1690_v61 }
0x1977   :  { %6006 = vmatpush3.bf16.msra.mxu1 %v7222_v53  ;;  %5746 = vmatprep.mubr.msk.f32.mxu1 %vm6798_vm0, %v6799_v2 }
0x1978   :  { %6007 = vmatprep.subr.bf16.mxu1 %v6797_v1 }
0x197b   :  { %6009 = vmatpush3.bf16.msra.mxu1 %v7232_v58 }
0x197c   :  { %6016 = vmatprep.subr.bf16.mxu1 %v6797_v1 }
0x1a49   :  { %v1759_v62 = vpop.f32.mrb[10].mxu1 }
0x1a4a   :  { %v1764_v3 = vrot.slane %v1759_v62, 7  ;;  %v1768_v4 = vadd.f32 %v1759_v62, %v7275_v36  ;;  %v5726_v5 = vpop.f32.mrb[11].mxu1 }
0x1a4c   :  { %v1767_v7 = vadd.f32 %v1764_v3, %v7277_v38  ;;  %6258 = vtanh.f32 %v1768_v4  ;;  %v5378_v10 = vmul.f32 -1.442695, %v1768_v4 }
0x1a4e   :  { %6260 = vtanh.f32 %v1767_v7  ;;  %v5377_v12 = vmul.f32 -1.442695, %v1767_v7 }
0x1a4f   :  { %6262 = vpow2.f32 %v5378_v10 }
0x1a50   :  { %6264 = vpow2.f32 %v5377_v12 }
0x1a56   :  { %v6259_v8 = vpop.eup %6258 }
0x1a57   :  { %1795 = vrot.lane.b32.xlu1 %v6259_v8, %s6800_s28 }
0x1a58   :  { %v6261_v9 = vpop.eup %6260 }
0x1a59   :  { %1793 = vrot.lane.b32.xlu0 %v6261_v9, %s6800_s28  ;;  %v6263_v16 = vpop.eup %6262 }
0x1a5a   :  { %v6265_v17 = vpop.eup %6264  ;;  %v1776_v18 = vadd.f32 1.0, %v6263_v16 }
0x1a5b   :  { %v1775_v20 = vadd.f32 1.0, %v6265_v17 }
0x1a5c   :  { %6266 = vrcp.f32 %v1776_v18 }
0x1a5d   :  { %6268 = vrcp.f32 %v1775_v20 }
0x1a66   :  { %v6267_v21 = vpop.eup %6266 }
0x1a67   :  { %v6269_v26 = vpop.eup %6268  ;;  %v1790_v28 = vmul.f32 %v6267_v21, %v1786_v27 }
0x1a68   :  { %v1789_v34 = vmul.f32 %v6269_v26, %v1785_v29 }
0x1ac9   :  { %v1796_v22 = vpop.permute.xlu1 %1795 }
0x1aca   :  { %v1800_v23 = vmul.f32 %v6267_v21, %v1796_v22 }
0x1acb   :  { %v1794_v19 = vpop.permute.xlu0 %1793 }
0x1acc   :  { %1805 = vrot.lane.b32.xlu1 %v1800_v23, %s6801_s3  ;;  %v1799_v15 = vmul.f32 %v6269_v26, %v1794_v19 }
0x1ace   :  { %1803 = vrot.lane.b32.xlu0 %v1799_v15, %s6801_s3 }
0x1b3e   :  { %v1806_v30 = vpop.permute.xlu1 %1805 }
0x1b3f   :  { %v1810_v33 = vadd.f32 %v1806_v30, %v1790_v28 }
0x1b40   :  { %v1804_v35 = vpop.permute.xlu0 %1803 }
0x1b41   :  { %6270 = vtanh.f32 %v1810_v33  ;;  %v1809_v37 = vadd.f32 %v1804_v35, %v1789_v34  ;;  %v1937_v3 = vrot.slane %v1810_v33, 7 }
0x1b43   :  { %6272 = vtanh.f32 %v1809_v37  ;;  %v1936_v62 = vrot.slane %v1809_v37, 7 }
0x1b4b   :  { %v6271_v39 = vpop.eup %6270 }
0x1b4c   :  { %1817 = vrot.lane.b32.xlu1 %v6271_v39, %s6800_s28 }
0x1b4d   :  { %v6273_v40 = vpop.eup %6272 }
0x1b4e   :  { %1815 = vrot.lane.b32.xlu0 %v6273_v40, %s6800_s28 }
0x1bbe   :  { %v1818_v41 = vpop.permute.xlu1 %1817 }
0x1bbf   :  { %v7312_v43 = vmul.f32 %v6267_v21, %v1818_v41 }
0x1bc0   :  { %v1816_v42 = vpop.permute.xlu0 %1815 }
0x1bc1   :  { %v7310_v6 = vmul.f32 %v6269_v26, %v1816_v42 }
0x1bc3   :  { %v1837_v44 = vrot.slane %v7310_v6, 1 }
0x1bc5   :  { %v1838_v11 = vsel %vm385_vm2, %v7312_v43, %v1837_v44 }
0x1bc6   :  { %1839 = vrot.lane.b32.xlu0 %v1838_v11, %s6801_s3 }
0x1c38   :  { %v1840_v49 = vpop.permute.xlu0 %1839 }
0x1c39   :  { %5736 = vmatmul.mubr.msk.f32.vlgmr.msra.gmra.mrb[12].mxu0 %vm241_vm3, %v1840_v49 }
0x1c3a   :  { %6012 = vmatpush3.bf16.msra.mxu0 %v7222_v53  ;;  %5757 = vmatprep.mubr.msk.f32.mxu0 %vm6798_vm0, %v6799_v2 }
0x1c3b   :  { %6013 = vmatprep.subr.bf16.mxu0 %v6797_v1 }
0x1c3e   :  { %6015 = vmatpush3.bf16.msra.mxu0 %v7232_v58 }
0x1c3f   :  { %6022 = vmatprep.subr.bf16.mxu0 %v6797_v1 }
0x1d0c   :  { %v1909_v50 = vpop.f32.mrb[12].mxu0 }
0x1d0d   :  { %v1914_v48 = vrot.slane %v1909_v50, 6  ;;  %v1915_v24 = vrot.slane %v1909_v50, 7  ;;  %v5737_v63 = vpop.f32.mrb[13].mxu0 }
0x1d0f   :  { %v1918_v46 = vadd.f32 %v1914_v48, %v7277_v38  ;;  %v1919_v31 = vadd.f32 %v1915_v24, %v7275_v36 }
0x1d11   :  { %6274 = vtanh.f32 %v1918_v46  ;;  %v5380_v45 = vmul.f32 -1.442695, %v1918_v46  ;;  %v5381_v47 = vmul.f32 -1.442695, %v1919_v31 }
0x1d12   :  { %6276 = vtanh.f32 %v1919_v31 }
0x1d13   :  { %6278 = vpow2.f32 %v5380_v45 }
0x1d14   :  { %6280 = vpow2.f32 %v5381_v47 }
0x1d1b   :  { %v6275_v13 = vpop.eup %6274 }
0x1d1c   :  { %v6277_v25 = vpop.eup %6276  ;;  %1944 = vrot.lane.b32.xlu1 %v6275_v13, %s6800_s28 }
0x1d1d   :  { %1946 = vrot.lane.b32.xlu0 %v6277_v25, %s6800_s28  ;;  %v6279_v0 = vpop.eup %6278 }
0x1d1e   :  { %v6281_v14 = vpop.eup %6280  ;;  %v1926_v51 = vadd.f32 1.0, %v6279_v0 }
0x1d1f   :  { %v1927_v52 = vadd.f32 1.0, %v6281_v14 }
0x1d20   :  { %6282 = vrcp.f32 %v1926_v51 }
0x1d21   :  { %6284 = vrcp.f32 %v1927_v52 }
0x1d2a   :  { %v6283_v32 = vpop.eup %6282 }
0x1d2b   :  { %v6285_v56 = vpop.eup %6284  ;;  %v1940_v4 = vmul.f32 %v6283_v32, %v1936_v62 }
0x1d2c   :  { %v1941_v5 = vmul.f32 %v6285_v56, %v1937_v3 }
0x1d8e   :  { %v1945_v54 = vpop.permute.xlu1 %1944 }
0x1d8f   :  { %v1947_v59 = vpop.permute.xlu0 %1946  ;;  %v1950_v60 = vmul.f32 %v6283_v32, %v1945_v54 }
0x1d90   :  { %v1951_v61 = vmul.f32 %v6285_v56, %v1947_v59 }
0x1d91   :  { %1954 = vrot.lane.b32.xlu1 %v1950_v60, %s6801_s3 }
0x1d92   :  { %1956 = vrot.lane.b32.xlu0 %v1951_v61, %s6801_s3 }
0x1e03   :  { %v1955_v7 = vpop.permute.xlu1 %1954 }
0x1e04   :  { %v1957_v8 = vpop.permute.xlu0 %1956  ;;  %v1960_v9 = vadd.f32 %v1955_v7, %v1940_v4 }
0x1e05   :  { %v1961_v10 = vadd.f32 %v1957_v8, %v1941_v5 }
0x1e06   :  { %6286 = vtanh.f32 %v1960_v9  ;;  %v2088_v46 = vrot.slane %v1960_v9, 7 }
0x1e07   :  { %6288 = vtanh.f32 %v1961_v10  ;;  %v2089_v31 = vrot.slane %v1961_v10, 7 }
0x1e10   :  { %v6287_v12 = vpop.eup %6286 }
0x1e11   :  { %v6289_v16 = vpop.eup %6288  ;;  %1966 = vrot.lane.b32.xlu1 %v6287_v12, %s6800_s28 }
0x1e12   :  { %1968 = vrot.lane.b32.xlu0 %v6289_v16, %s6800_s28 }
0x1e83   :  { %v1967_v17 = vpop.permute.xlu1 %1966 }
0x1e84   :  { %v1969_v18 = vpop.permute.xlu0 %1968  ;;  %v7333_v20 = vmul.f32 %v6283_v32, %v1967_v17 }
0x1e85   :  { %v7335_v21 = vmul.f32 %v6285_v56, %v1969_v18 }
0x1e86   :  { %v1988_v22 = vrot.slane %v7333_v20, 2 }
0x1e87   :  { %v1989_v23 = vrot.slane %v7335_v21, 1 }
0x1e89   :  { %v1990_v26 = vsel %vm385_vm2, %v1989_v23, %v1988_v22 }
0x1e8a   :  { %1991 = vrot.lane.b32.xlu1 %v1990_v26, %s6801_s3 }
0x1efc   :  { %v1992_v19 = vpop.permute.xlu1 %1991 }
0x1efd   :  { %5747 = vmatmul.mubr.msk.f32.vlgmr.msra.gmra.mrb[12].mxu1 %vm241_vm3, %v1992_v19 }
0x1efe   :  { %6018 = vmatpush3.bf16.msra.mxu1 %v7222_v53  ;;  %5768 = vmatprep.mubr.msk.f32.mxu1 %vm6798_vm0, %v6799_v2 }
0x1eff   :  { %6019 = vmatprep.subr.bf16.mxu1 %v6797_v1 }
0x1f02   :  { %6021 = vmatpush3.bf16.msra.mxu1 %v7232_v58 }
0x1f03   :  { %6028 = vmatprep.subr.bf16.mxu1 %v6797_v1 }
0x1fd0   :  { %v2061_v15 = vpop.f32.mrb[12].mxu1 }
0x1fd1   :  { %v2066_v27 = vrot.slane %v2061_v15, 5  ;;  %v2067_v28 = vrot.slane %v2061_v15, 6  ;;  %v5748_v29 = vpop.f32.mrb[13].mxu1 }
0x1fd3   :  { %v2070_v30 = vadd.f32 %v2066_v27, %v7277_v38  ;;  %v2071_v33 = vadd.f32 %v2067_v28, %v7275_v36 }
0x1fd5   :  { %6290 = vtanh.f32 %v2070_v30  ;;  %v5383_v37 = vmul.f32 -1.442695, %v2070_v30  ;;  %v5384_v39 = vmul.f32 -1.442695, %v2071_v33 }
0x1fd6   :  { %6292 = vtanh.f32 %v2071_v33 }
0x1fd7   :  { %6294 = vpow2.f32 %v5383_v37 }
0x1fd8   :  { %6296 = vpow2.f32 %v5384_v39 }
0x1fdf   :  { %v6291_v34 = vpop.eup %6290 }
0x1fe0   :  { %v6293_v35 = vpop.eup %6292  ;;  %2096 = vrot.lane.b32.xlu0 %v6291_v34, %s6800_s28 }
0x1fe1   :  { %2098 = vrot.lane.b32.xlu1 %v6293_v35, %s6800_s28  ;;  %v6295_v40 = vpop.eup %6294 }
0x1fe2   :  { %v6297_v41 = vpop.eup %6296  ;;  %v2078_v42 = vadd.f32 1.0, %v6295_v40 }
0x1fe3   :  { %v2079_v44 = vadd.f32 1.0, %v6297_v41 }
0x1fe4   :  { %6298 = vrcp.f32 %v2078_v42 }
0x1fe5   :  { %6300 = vrcp.f32 %v2079_v44 }
0x1fee   :  { %v6299_v11 = vpop.eup %6298 }
0x1fef   :  { %v6301_v50 = vpop.eup %6300  ;;  %v2092_v13 = vmul.f32 %v6299_v11, %v2088_v46 }
0x1ff0   :  { %v2093_v25 = vmul.f32 %v6301_v50, %v2089_v31 }
0x2052   :  { %v2097_v49 = vpop.permute.xlu0 %2096 }
0x2053   :  { %v2099_v48 = vpop.permute.xlu1 %2098  ;;  %v2102_v24 = vmul.f32 %v6299_v11, %v2097_v49 }
0x2054   :  { %v2103_v63 = vmul.f32 %v6301_v50, %v2099_v48 }
0x2055   :  { %2106 = vrot.lane.b32.xlu0 %v2102_v24, %s6801_s3 }
0x2056   :  { %2108 = vrot.lane.b32.xlu1 %v2103_v63, %s6801_s3 }
0x20c7   :  { %v2107_v45 = vpop.permute.xlu0 %2106 }
0x20c8   :  { %v2109_v47 = vpop.permute.xlu1 %2108  ;;  %v2112_v0 = vadd.f32 %v2107_v45, %v2092_v13 }
0x20c9   :  { %v2113_v14 = vadd.f32 %v2109_v47, %v2093_v25 }
0x20ca   :  { %6302 = vtanh.f32 %v2112_v0  ;;  %v2240_v34 = vrot.slane %v2112_v0, 7 }
0x20cb   :  { %6304 = vtanh.f32 %v2113_v14  ;;  %v2241_v35 = vrot.slane %v2113_v14, 7 }
0x20d4   :  { %v6303_v51 = vpop.eup %6302 }
0x20d5   :  { %v6305_v52 = vpop.eup %6304  ;;  %2118 = vrot.lane.b32.xlu0 %v6303_v51, %s6800_s28 }
0x20d6   :  { %2120 = vrot.lane.b32.xlu1 %v6305_v52, %s6800_s28 }
0x2147   :  { %v2119_v32 = vpop.permute.xlu0 %2118 }
0x2148   :  { %v2121_v54 = vpop.permute.xlu1 %2120  ;;  %v7356_v56 = vmul.f32 %v6299_v11, %v2119_v32 }
0x2149   :  { %v7358_v59 = vmul.f32 %v6301_v50, %v2121_v54 }
0x214a   :  { %v2140_v60 = vrot.slane %v7356_v56, 3 }
0x214b   :  { %v2141_v61 = vrot.slane %v7358_v59, 2 }
0x214d   :  { %v2142_v62 = vsel %vm385_vm2, %v2141_v61, %v2140_v60 }
0x214e   :  { %2143 = vrot.lane.b32.xlu0 %v2142_v62, %s6801_s3 }
0x21c0   :  { %v2144_v3 = vpop.permute.xlu0 %2143 }
0x21c1   :  { %5758 = vmatmul.mubr.msk.f32.vlgmr.msra.gmra.mrb[14].mxu0 %vm241_vm3, %v2144_v3 }
0x21c2   :  { %6024 = vmatpush3.bf16.msra.mxu0 %v7222_v53  ;;  %5779 = vmatprep.mubr.msk.f32.mxu0 %vm6798_vm0, %v6799_v2 }
0x21c3   :  { %6025 = vmatprep.subr.bf16.mxu0 %v6797_v1 }
0x21c6   :  { %6027 = vmatpush3.bf16.msra.mxu0 %v7232_v58 }
0x2294   :  { %v2213_v4 = vpop.f32.mrb[14].mxu0 }
0x2295   :  { %v2218_v5 = vrot.slane %v2213_v4, 4  ;;  %v2219_v7 = vrot.slane %v2213_v4, 5  ;;  %v5759_v8 = vpop.f32.mrb[15].mxu0 }
0x2297   :  { %v2222_v9 = vadd.f32 %v2218_v5, %v7277_v38  ;;  %v2223_v10 = vadd.f32 %v2219_v7, %v7275_v36 }
0x2299   :  { %6306 = vtanh.f32 %v2222_v9  ;;  %v5386_v17 = vmul.f32 -1.442695, %v2222_v9  ;;  %v5387_v18 = vmul.f32 -1.442695, %v2223_v10 }
0x229a   :  { %6308 = vtanh.f32 %v2223_v10 }
0x229b   :  { %6310 = vpow2.f32 %v5386_v17 }
0x229c   :  { %6312 = vpow2.f32 %v5387_v18 }
0x22a3   :  { %v6307_v12 = vpop.eup %6306 }
0x22a4   :  { %v6309_v16 = vpop.eup %6308  ;;  %2248 = vrot.lane.b32.xlu1 %v6307_v12, %s6800_s28 }
0x22a5   :  { %2250 = vrot.lane.b32.xlu0 %v6309_v16, %s6800_s28  ;;  %v6311_v22 = vpop.eup %6310 }
0x22a6   :  { %v6313_v23 = vpop.eup %6312  ;;  %v2230_v26 = vadd.f32 1.0, %v6311_v22 }
0x22a7   :  { %v2231_v19 = vadd.f32 1.0, %v6313_v23 }
0x22a8   :  { %6314 = vrcp.f32 %v2230_v26 }
0x22a9   :  { %6316 = vrcp.f32 %v2231_v19 }
0x22b2   :  { %v6315_v15 = vpop.eup %6314 }
0x22b3   :  { %v6317_v28 = vpop.eup %6316  ;;  %v2244_v37 = vmul.f32 %v6315_v15, %v2240_v34 }
0x22b4   :  { %v2245_v39 = vmul.f32 %v6317_v28, %v2241_v35 }
0x2316   :  { %v2249_v27 = vpop.permute.xlu1 %2248 }
0x2317   :  { %v2251_v29 = vpop.permute.xlu0 %2250  ;;  %v2254_v30 = vmul.f32 %v6315_v15, %v2249_v27 }
0x2318   :  { %v2255_v33 = vmul.f32 %v6317_v28, %v2251_v29 }
0x2319   :  { %2258 = vrot.lane.b32.xlu1 %v2254_v30, %s6801_s3 }
0x231a   :  { %2260 = vrot.lane.b32.xlu0 %v2255_v33, %s6801_s3 }
0x238b   :  { %v2259_v40 = vpop.permute.xlu1 %2258 }
0x238c   :  { %v2261_v41 = vpop.permute.xlu0 %2260  ;;  %v2264_v42 = vadd.f32 %v2259_v40, %v2244_v37 }
0x238d   :  { %v2265_v44 = vadd.f32 %v2261_v41, %v2245_v39 }
0x238e   :  { %6318 = vtanh.f32 %v2264_v42  ;;  %v2392_v12 = vrot.slane %v2264_v42, 7 }
0x238f   :  { %6320 = vtanh.f32 %v2265_v44  ;;  %v2393_v16 = vrot.slane %v2265_v44, 7 }
0x2398   :  { %v6319_v11 = vpop.eup %6318 }
0x2399   :  { %v6321_v49 = vpop.eup %6320  ;;  %2270 = vrot.lane.b32.xlu1 %v6319_v11, %s6800_s28 }
0x239a   :  { %2272 = vrot.lane.b32.xlu0 %v6321_v49, %s6800_s28 }
0x240b   :  { %v2271_v50 = vpop.permute.xlu1 %2270 }
0x240c   :  { %v2273_v48 = vpop.permute.xlu0 %2272  ;;  %v7378_v24 = vmul.f32 %v6315_v15, %v2271_v50 }
0x240d   :  { %v7380_v63 = vmul.f32 %v6317_v28, %v2273_v48 }
0x240e   :  { %v2292_v46 = vrot.slane %v7378_v24, 4 }
0x240f   :  { %v2293_v31 = vrot.slane %v7380_v63, 3 }
0x2411   :  { %v2294_v13 = vsel %vm385_vm2, %v2293_v31, %v2292_v46 }
0x2412   :  { %2295 = vrot.lane.b32.xlu1 %v2294_v13, %s6801_s3 }
0x2484   :  { %v2296_v25 = vpop.permute.xlu1 %2295 }
0x2485   :  { %5769 = vmatmul.mubr.msk.f32.vlgmr.msra.gmra.mrb[14].mxu1 %vm241_vm3, %v2296_v25 }
0x2486   :  { %6030 = vmatpush3.bf16.msra.mxu1 %v7222_v53  ;;  %5790 = vmatprep.mubr.msk.f32.mxu1 %vm6798_vm0, %v6799_v2 }
0x2487   :  { %6031 = vmatprep.subr.bf16.mxu1 %v6797_v1 }
0x248a   :  { %6033 = vmatpush3.bf16.msra.mxu1 %v7232_v58 }
0x248b   :  { %6042 = vmatprep.subr.bf16.mxu1 %v6797_v1 }
0x2558   :  { %v2365_v45 = vpop.f32.mrb[14].mxu1 }
0x2559   :  { %v2370_v47 = vrot.slane %v2365_v45, 3  ;;  %v2371_v0 = vrot.slane %v2365_v45, 4  ;;  %v5770_v14 = vpop.f32.mrb[15].mxu1 }
0x255b   :  { %v2374_v51 = vadd.f32 %v2370_v47, %v7277_v38  ;;  %v2375_v52 = vadd.f32 %v2371_v0, %v7275_v36 }
0x255d   :  { %6322 = vtanh.f32 %v2374_v51  ;;  %v5389_v54 = vmul.f32 -1.442695, %v2374_v51  ;;  %v5390_v58 = vmul.f32 -1.442695, %v2375_v52 }
0x255e   :  { %6324 = vtanh.f32 %v2375_v52 }
0x255f   :  { %6326 = vpow2.f32 %v5389_v54 }
0x2560   :  { %6328 = vpow2.f32 %v5390_v58 }
0x2567   :  { %v6323_v53 = vpop.eup %6322 }
0x2568   :  { %v6325_v32 = vpop.eup %6324  ;;  %2400 = vrot.lane.b32.xlu0 %v6323_v53, %s6800_s28 }
0x2569   :  { %2402 = vrot.lane.b32.xlu1 %v6325_v32, %s6800_s28  ;;  %v6327_v60 = vpop.eup %6326 }
0x256a   :  { %v6329_v61 = vpop.eup %6328  ;;  %v2382_v62 = vadd.f32 1.0, %v6327_v60 }
0x256b   :  { %v2383_v3 = vadd.f32 1.0, %v6329_v61 }
0x256c   :  { %6330 = vrcp.f32 %v2382_v62 }
0x256d   :  { %6332 = vrcp.f32 %v2383_v3 }
0x2576   :  { %v6331_v4 = vpop.eup %6330 }
0x2577   :  { %v6333_v7 = vpop.eup %6332  ;;  %v2396_v17 = vmul.f32 %v6331_v4, %v2392_v12 }
0x2578   :  { %v2397_v18 = vmul.f32 %v6333_v7, %v2393_v16 }
0x25da   :  { %v2401_v5 = vpop.permute.xlu0 %2400 }
0x25db   :  { %v2403_v8 = vpop.permute.xlu1 %2402  ;;  %v2406_v9 = vmul.f32 %v6331_v4, %v2401_v5 }
0x25dc   :  { %v2407_v10 = vmul.f32 %v6333_v7, %v2403_v8 }
0x25dd   :  { %2410 = vrot.lane.b32.xlu0 %v2406_v9, %s6801_s3 }
0x25de   :  { %2412 = vrot.lane.b32.xlu1 %v2407_v10, %s6801_s3 }
0x264f   :  { %v2411_v22 = vpop.permute.xlu0 %2410 }
0x2650   :  { %v2413_v23 = vpop.permute.xlu1 %2412  ;;  %v2416_v26 = vadd.f32 %v2411_v22, %v2396_v17 }
0x2651   :  { %v2417_v19 = vadd.f32 %v2413_v23, %v2397_v18 }
0x2652   :  { %6334 = vtanh.f32 %v2416_v26  ;;  %v2544_v54 = vrot.slane %v2416_v26, 7 }
0x2653   :  { %6336 = vtanh.f32 %v2417_v19  ;;  %v2545_v58 = vrot.slane %v2417_v19, 7 }
0x265c   :  { %v6335_v15 = vpop.eup %6334 }
0x265d   :  { %v6337_v27 = vpop.eup %6336  ;;  %2422 = vrot.lane.b32.xlu0 %v6335_v15, %s6800_s28 }
0x265e   :  { %2424 = vrot.lane.b32.xlu1 %v6337_v27, %s6800_s28 }
0x26cf   :  { %v2423_v28 = vpop.permute.xlu0 %2422 }
0x26d0   :  { %v2425_v29 = vpop.permute.xlu1 %2424  ;;  %v7401_v30 = vmul.f32 %v6331_v4, %v2423_v28 }
0x26d1   :  { %v7403_v33 = vmul.f32 %v6333_v7, %v2425_v29 }
0x26d2   :  { %v2444_v34 = vrot.slane %v7401_v30, 5 }
0x26d3   :  { %v2445_v35 = vrot.slane %v7403_v33, 4 }
0x26d5   :  { %v2446_v37 = vsel %vm385_vm2, %v2445_v35, %v2444_v34 }
0x26d6   :  { %2447 = vrot.lane.b32.xlu0 %v2446_v37, %s6801_s3 }
0x2748   :  { %v2448_v39 = vpop.permute.xlu0 %2447 }
0x2749   :  { %5780 = vmatmul.mubr.msk.f32.vlgmr.msra.gmra.mrb[16].mxu0 %vm241_vm3, %v2448_v39 }
0x281c   :  { %v2517_v40 = vpop.f32.mrb[16].mxu0 }
0x281d   :  { %v2522_v41 = vrot.slane %v2517_v40, 2  ;;  %v2523_v42 = vrot.slane %v2517_v40, 3  ;;  %v5781_v44 = vpop.f32.mrb[17].mxu0 }
0x281f   :  { %v2526_v11 = vadd.f32 %v2522_v41, %v7277_v38  ;;  %v2527_v49 = vadd.f32 %v2523_v42, %v7275_v36 }
0x2821   :  { %6338 = vtanh.f32 %v2526_v11  ;;  %v5392_v46 = vmul.f32 -1.442695, %v2526_v11  ;;  %v5393_v31 = vmul.f32 -1.442695, %v2527_v49 }
0x2822   :  { %6340 = vtanh.f32 %v2527_v49 }
0x2823   :  { %6342 = vpow2.f32 %v5392_v46 }
0x2824   :  { %6344 = vpow2.f32 %v5393_v31 }
0x282b   :  { %v6339_v50 = vpop.eup %6338 }
0x282c   :  { %v6341_v48 = vpop.eup %6340  ;;  %2552 = vrot.lane.b32.xlu1 %v6339_v50, %s6800_s28 }
0x282d   :  { %2554 = vrot.lane.b32.xlu0 %v6341_v48, %s6800_s28  ;;  %v6343_v13 = vpop.eup %6342 }
0x282e   :  { %v6345_v25 = vpop.eup %6344  ;;  %v2534_v45 = vadd.f32 1.0, %v6343_v13 }
0x282f   :  { %v2535_v47 = vadd.f32 1.0, %v6345_v25 }
0x2830   :  { %6346 = vrcp.f32 %v2534_v45 }
0x2831   :  { %6348 = vrcp.f32 %v2535_v47 }
0x283a   :  { %v6347_v0 = vpop.eup %6346 }
0x283b   :  { %v6349_v51 = vpop.eup %6348  ;;  %v2548_v60 = vmul.f32 %v6347_v0, %v2544_v54  ;;  %v1974_v54 = vmax.f32 %v7333_v20, 0.0  ;;  %v1674_v20 = vmax.f32 %v7287_v55, 0.0 }
0x283c   :  { %v2549_v61 = vmul.f32 %v6349_v51, %v2545_v58  ;;  %v2126_v58 = vmax.f32 %v7356_v56, 0.0  ;;  %v2127_v56 = vmax.f32 %v7358_v59, 0.0  ;;  %v2750_v59 = vld [vmem:[#allocation13] sm:$0xff] }
0x289e   :  { %v2553_v14 = vpop.permute.xlu1 %2552 }
0x289f   :  { %v2555_v52 = vpop.permute.xlu0 %2554  ;;  %v2558_v53 = vmul.f32 %v6347_v0, %v2553_v14 }
0x28a0   :  { %v2559_v32 = vmul.f32 %v6349_v51, %v2555_v52 }
0x28a1   :  { %2562 = vrot.lane.b32.xlu1 %v2558_v53, %s6801_s3  ;;  %v1673_v53 = vmax.f32 %v7289_v57, 0.0 }
0x28a2   :  { %2564 = vrot.lane.b32.xlu0 %v2559_v32, %s6801_s3  ;;  %v1823_v32 = vmax.f32 %v7310_v6, 0.0  ;;  %v1824_v6 = vmax.f32 %v7312_v43, 0.0  ;;  %v2279_v43 = vmax.f32 %v7380_v63, 0.0  ;;  %v2749_v63 = vld [vmem:[%s7868_s8 + $0x8] sm:$0xff] }
0x2913   :  { %v2563_v62 = vpop.permute.xlu1 %2562 }
0x2914   :  { %v2565_v3 = vpop.permute.xlu0 %2564  ;;  %v2568_v4 = vadd.f32 %v2563_v62, %v2548_v60  ;;  %v2278_v60 = vmax.f32 %v7378_v24, 0.0  ;;  %v1975_v24 = vmax.f32 %v7335_v21, 0.0  ;;  %v2751_v62 = vld [vmem:[#allocation13 + $0x8] sm:$0xff] }
0x2915   :  { %v2569_v5 = vadd.f32 %v2565_v3, %v2549_v61  ;;  %v2430_v61 = vmax.f32 %v7401_v30, 0.0  ;;  %v2431_v30 = vmax.f32 %v7403_v33, 0.0  ;;  %v6034_v3 = vpack.c.bf16 %v2751_v62, %v2750_v59  ;;  %v2748_v33 = vld [vmem:[%s7868_s8] sm:$0xff] }
0x2916   :  { %6350 = vtanh.f32 %v2568_v4  ;;  %v2696_v46 = vrot.slane %v2568_v4, 7  ;;  %v2752_v4 = vld [vmem:[#allocation13 + $0x10] sm:$0xff] }
0x2917   :  { %6352 = vtanh.f32 %v2569_v5  ;;  %v2697_v31 = vrot.slane %v2569_v5, 7  ;;  %v2753_v5 = vld [vmem:[#allocation13 + $0x18] sm:$0xff]  ;;  %6035 = vmatprep.subr.bf16.mxu0 %v6034_v3 }
0x2918   :  { %v6038_v21 = vpack.c.bf16 %v2753_v5, %v2752_v4  ;;  %6037 = vmatpush3.bf16.msra.mxu0 %v6034_v3 }
0x291a   :  { %6039 = vmatprep.subr.bf16.mxu0 %v6038_v21 }
0x291c   :  { %6041 = vmatpush3.bf16.msra.mxu0 %v6038_v21 }
0x291d   :  { %6045 = vmatprep.subr.bf16.mxu0 %v6797_v1 }
0x2920   :  { %v6351_v7 = vpop.eup %6350 }
0x2921   :  { %v6353_v8 = vpop.eup %6352  ;;  %2574 = vrot.lane.b32.xlu1 %v6351_v7, %s6800_s28  ;;  %v7479_v7 = vpack.c.bf16 %v2749_v63, %v2748_v33 }
0x2922   :  { %2576 = vrot.lane.b32.xlu0 %v6353_v8, %s6800_s28 }
0x2993   :  { %v2575_v9 = vpop.permute.xlu1 %2574 }
0x2994   :  { %v2577_v10 = vpop.permute.xlu0 %2576  ;;  %v7418_v12 = vmul.f32 %v6347_v0, %v2575_v9 }
0x2995   :  { %v7420_v16 = vmul.f32 %v6349_v51, %v2577_v10 }
0x2996   :  { %v2596_v17 = vrot.slane %v7418_v12, 6  ;;  %v2582_v57 = vmax.f32 %v7418_v12, 0.0 }
0x2997   :  { %v2597_v18 = vrot.slane %v7420_v16, 5  ;;  %v2583_v55 = vmax.f32 %v7420_v16, 0.0 }
0x2999   :  { %v2598_v22 = vsel %vm385_vm2, %v2597_v18, %v2596_v17 }
0x299a   :  { %2599 = vrot.lane.b32.xlu1 %v2598_v22, %s6801_s3 }
0x2a0c   :  { %v2600_v23 = vpop.permute.xlu1 %2599 }
0x2a0d   :  { %5791 = vmatmul.mubr.msk.f32.vlgmr.msra.gmra.mrb[16].mxu1 %vm241_vm3, %v2600_v23 }
0x2a0e   :  { %5808 = vmatprep.mubr.msk.f32.mxu1 %vm6798_vm0, %v6799_v2  ;;  %6044 = vmatpush3.bf16.msra.mxu1 %v7479_v7 }
0x2a0f   :  { %6048 = vmatprep.subr.bf16.mxu1 %v6797_v1 }
0x2a11   :  { %5809 = vmatmul.mubr.f32.vlgmr.msra.gmra.mrb[18].mxu1 %v6799_v2 }
0x2a12   :  { %6050 = vmatpush3.bf16.msra.mxu1 %v7479_v7  ;;  %5822 = vmatprep.mubr.msk.f32.mxu1 %vm6798_vm0, %v6799_v2 }
0x2a13   :  { %6054 = vmatprep.subr.bf16.mxu1 %v6797_v1 }
0x2ae0   :  { %v2669_v26 = vpop.f32.mrb[16].mxu1 }
0x2ae1   :  { %v2674_v19 = vrot.slane %v2669_v26, 1  ;;  %v2675_v15 = vrot.slane %v2669_v26, 2  ;;  %v5792_v27 = vpop.f32.mrb[17].mxu1 }
0x2ae3   :  { %v2678_v28 = vadd.f32 %v2674_v19, %v7277_v38  ;;  %v2679_v29 = vadd.f32 %v2675_v15, %v7275_v36 }
0x2ae5   :  { %6354 = vtanh.f32 %v2678_v28  ;;  %v5395_v37 = vmul.f32 -1.442695, %v2678_v28  ;;  %v5396_v39 = vmul.f32 -1.442695, %v2679_v29 }
0x2ae6   :  { %6356 = vtanh.f32 %v2679_v29 }
0x2ae7   :  { %6358 = vpow2.f32 %v5395_v37 }
0x2ae8   :  { %6360 = vpow2.f32 %v5396_v39 }
0x2aef   :  { %v6355_v34 = vpop.eup %6354 }
0x2af0   :  { %v6357_v35 = vpop.eup %6356  ;;  %2704 = vrot.lane.b32.xlu0 %v6355_v34, %s6800_s28 }
0x2af1   :  { %2706 = vrot.lane.b32.xlu1 %v6357_v35, %s6800_s28  ;;  %v6359_v40 = vpop.eup %6358 }
0x2af2   :  { %v6361_v41 = vpop.eup %6360  ;;  %v2686_v42 = vadd.f32 1.0, %v6359_v40 }
0x2af3   :  { %v2687_v44 = vadd.f32 1.0, %v6361_v41 }
0x2af4   :  { %6362 = vrcp.f32 %v2686_v42 }
0x2af5   :  { %6364 = vrcp.f32 %v2687_v44 }
0x2afe   :  { %v7433_v38 = vpop.eup %6362 }
0x2aff   :  { %v7435_v11 = vpop.eup %6364  ;;  %v2700_v13 = vmul.f32 %v7433_v38, %v2696_v46 }
0x2b00   :  { %v2701_v25 = vmul.f32 %v7435_v11, %v2697_v31 }
0x2b62   :  { %v2705_v36 = vpop.permute.xlu0 %2704 }
0x2b63   :  { %v2707_v49 = vpop.permute.xlu1 %2706  ;;  %v2710_v50 = vmul.f32 %v7433_v38, %v2705_v36  ;;  %v2911_v36 = vpop.f32.mrb[18].mxu1 }
0x2b64   :  { %v2711_v48 = vmul.f32 %v7435_v11, %v2707_v49  ;;  %v5397_v49 = vld [vmem:[%s7869_s9] ss:$0 sm:$0xff]  ;;  %s6803_s9 = smov 16  }
0x2b65   :  { %2714 = vrot.lane.b32.xlu0 %v2710_v50, %s6801_s3  ;;  %v2916_v50 = vrot.slane %v2911_v36, 1 }
0x2b66   :  { %2716 = vrot.lane.b32.xlu1 %v2711_v48, %s6801_s3 }
0x2bd7   :  { %v2715_v45 = vpop.permute.xlu0 %2714 }
0x2bd8   :  { %v2717_v47 = vpop.permute.xlu1 %2716  ;;  %v2720_v0 = vadd.f32 %v2715_v45, %v2700_v13 }
0x2bd9   :  { %v2721_v14 = vadd.f32 %v2717_v47, %v2701_v25 }
0x2bda   :  { %6366 = vtanh.f32 %v2720_v0 }
0x2bdb   :  { %6368 = vtanh.f32 %v2721_v14 }
0x2be4   :  { %v6367_v51 = vpop.eup %6366 }
0x2be5   :  { %v6369_v52 = vpop.eup %6368  ;;  %2726 = vrot.lane.b32.xlu0 %v6367_v51, %s6800_s28 }
0x2be6   :  { %2728 = vrot.lane.b32.xlu1 %v6369_v52, %s6800_s28 }
0x2be9   :  { %1677 = vrot.lane.b32.xlu0 %v1673_v53, %s6801_s3 }
0x2bea   :  { %1827 = vrot.lane.b32.xlu1 %v1823_v32, %s6801_s3 }
0x2bed   :  { %1978 = vrot.lane.b32.xlu0 %v1974_v54, %s6801_s3 }
0x2bee   :  { %2130 = vrot.lane.b32.xlu1 %v2126_v58, %s6801_s3 }
0x2bf1   :  { %2282 = vrot.lane.b32.xlu0 %v2278_v60, %s6801_s3 }
0x2bf2   :  { %2434 = vrot.lane.b32.xlu1 %v2430_v61, %s6801_s3 }
0x2bf5   :  { %2586 = vrot.lane.b32.xlu0 %v2582_v57, %s6801_s3 }
0x2bf6   :  { %1829 = vrot.lane.b32.xlu1 %v1824_v6, %s6801_s3 }
0x2bf9   :  { %1679 = vrot.lane.b32.xlu0 %v1674_v20, %s6801_s3 }
0x2bfa   :  { %2132 = vrot.lane.b32.xlu1 %v2127_v56, %s6801_s3 }
0x2bfd   :  { %1980 = vrot.lane.b32.xlu0 %v1975_v24, %s6801_s3 }
0x2bfe   :  { %2436 = vrot.lane.b32.xlu1 %v2431_v30, %s6801_s3 }
0x2c01   :  { %2284 = vrot.lane.b32.xlu0 %v2279_v43, %s6801_s3 }
0x2c05   :  { %2588 = vrot.lane.b32.xlu0 %v2583_v55, %s6801_s3 }
0x2c57   :  { %v2727_v8 = vpop.permute.xlu0 %2726 }
0x2c58   :  { %v2729_v9 = vpop.permute.xlu1 %2728  ;;  %v2732_v10 = vmul.f32 %v7433_v38, %v2727_v8 }
0x2c59   :  { %v2733_v12 = vmul.f32 %v7435_v11, %v2729_v9  ;;  %v5810_v11 = vpop.f32.mrb[19].mxu1 }
0x2c5a   :  { %v2734_v16 = vmax.f32 %v2732_v10, 0.0 }
0x2c5b   :  { %v1678_v17 = vpop.permute.xlu0 %1677  ;;  %v2735_v22 = vmax.f32 %v2733_v12, 0.0 }
0x2c5c   :  { %v1828_v18 = vpop.permute.xlu1 %1827  ;;  %1683 = vst.msk [vmem:[#allocation3] sm:$0x1] %vm379_vm4, %v1678_v17  ;;  %2738 = vrot.lane.b32.xlu1 %v2734_v16, %s6801_s3 }
0x2c5d   :  { %1833 = vst.msk [vmem:[#allocation3] sm:$0x2] %vm531_vm5, %v1828_v18 }
0x2c5f   :  { %v1979_v23 = vpop.permute.xlu0 %1978 }
0x2c60   :  { %v2131_v26 = vpop.permute.xlu1 %2130  ;;  %1984 = vst.msk [vmem:[#allocation3] sm:$0x4] %vm683_vm6, %v1979_v23  ;;  %2740 = vrot.lane.b32.xlu1 %v2735_v22, %s6801_s3 }
0x2c61   :  { %2136 = vst.msk [vmem:[#allocation3] sm:$0x8] %vm836_vm7, %v2131_v26 }
0x2c63   :  { %v2283_v19 = vpop.permute.xlu0 %2282 }
0x2c64   :  { %v2435_v15 = vpop.permute.xlu1 %2434  ;;  %2288 = vst.msk [vmem:[#allocation3] sm:$0x10] %vm989_vm8, %v2283_v19 }
0x2c65   :  { %2440 = vst.msk [vmem:[#allocation3] sm:$0x20] %vm1142_vm9, %v2435_v15 }
0x2c67   :  { %v2587_v27 = vpop.permute.xlu0 %2586 }
0x2c68   :  { %v1830_v28 = vpop.permute.xlu1 %1829  ;;  %2592 = vst.msk [vmem:[#allocation3] sm:$0x40] %vm1295_vm10, %v2587_v27 }
0x2c69   :  { %1834 = vst.msk [vmem:[#allocation3 + $0x8] sm:$0x2] %vm531_vm5, %v1830_v28  ;;  %vm3894_vm5 = vcmask 129030  }
0x2c6b   :  { %v1680_v29 = vpop.permute.xlu0 %1679 }
0x2c6c   :  { %v2133_v34 = vpop.permute.xlu1 %2132  ;;  %1684 = vst.msk [vmem:[#allocation3 + $0x8] sm:$0x1] %vm379_vm4, %v1680_v29  ;;  %vm3741_vm4 = vcmask 128005  }
0x2c6d   :  { %2137 = vst.msk [vmem:[#allocation3 + $0x8] sm:$0x8] %vm836_vm7, %v2133_v34 }
0x2c6f   :  { %v1981_v35 = vpop.permute.xlu0 %1980 }
0x2c70   :  { %v2437_v37 = vpop.permute.xlu1 %2436  ;;  %1985 = vst.msk [vmem:[#allocation3 + $0x8] sm:$0x4] %vm683_vm6, %v1981_v35  ;;  %vm4047_vm6 = vcmask 130055  }
0x2c71   :  { %2441 = vst.msk [vmem:[#allocation3 + $0x8] sm:$0x20] %vm1142_vm9, %v2437_v37 }
0x2c73   :  { %v2285_v39 = vpop.permute.xlu0 %2284 }
0x2c74   :  { %2289 = vst.msk [vmem:[#allocation3 + $0x8] sm:$0x10] %vm989_vm8, %v2285_v39 }
0x2c77   :  { %v2589_v40 = vpop.permute.xlu0 %2588 }
0x2c78   :  { %2593 = vst.msk [vmem:[#allocation3 + $0x8] sm:$0x40] %vm1295_vm10, %v2589_v40 }
0x2cce   :  { %v2739_v41 = vpop.permute.xlu1 %2738 }
0x2ccf   :  { %2744 = vst.msk [vmem:[#allocation3] sm:$0x80] %vm1448_vm11, %v2739_v41 }
0x2cd2   :  { %v2741_v42 = vpop.permute.xlu1 %2740 }
0x2cd3   :  { %2745 = vst.msk [vmem:[#allocation3 + $0x8] sm:$0x80] %vm1448_vm11, %v2741_v42 }
0x2cd6   :  { %v2746_v44 = vld [vmem:[#allocation3] sm:$0xff] }
0x2cd7   :  { %5801 = vmatprep.mubr.msk.f32.mxu0 %vm241_vm3, %v2746_v44 }
0x2cda   :  { %v2747_v38 = vld [vmem:[#allocation3 + $0x8] sm:$0xff] }
0x2cdb   :  { %5802 = vmatmul.mubr.msk.f32.vlgmr.msra.gmra.mrb[18].mxu0 %vm241_vm3, %v2747_v38  ;;  %vm3588_vm3 = vcmask 126980  }
0x2cdc   :  { %6047 = vmatpush3.bf16.msra.mxu0 %v7479_v7  ;;  %5815 = vmatprep.mubr.msk.f32.mxu0 %vm6798_vm0, %v6799_v2 }
0x2cdd   :  { %6051 = vmatprep.subr.bf16.mxu0 %v6797_v1 }
0x2dae   :  { %v5803_v48 = vpop.f32.mrb[18].mxu0 }
0x2daf   :  { %v7518_v46 = vadd.f32 %v5803_v48, %v5397_v49  ;;  %v2833_v31 = vpop.f32.mrb[19].mxu0 }
0x2db0   :  { %v7520_v13 = vadd.f32 %v5397_v49, %v2833_v31 }
0x2db1   :  { %v2920_v25 = vadd.f32 %v2916_v50, %v7518_v46 }
0x2db2   :  { %v2919_v45 = vadd.f32 %v2911_v36, %v7520_v13 }
0x2db3   :  { %6370 = vtanh.f32 %v2920_v25  ;;  %v5401_v14 = vmul.f32 -1.442695, %v2920_v25 }
0x2db4   :  { %6372 = vtanh.f32 %v2919_v45  ;;  %v5400_v51 = vmul.f32 -1.442695, %v2919_v45 }
0x2db5   :  { %6374 = vpow2.f32 %v5401_v14 }
0x2db6   :  { %6376 = vpow2.f32 %v5400_v51 }
0x2dbd   :  { %v6371_v47 = vpop.eup %6370 }
0x2dbe   :  { %v6373_v0 = vpop.eup %6372  ;;  %2941 = vrot.lane.b32.xlu0 %v6371_v47, %s6802_s0 }
0x2dbf   :  { %2939 = vrot.lane.b32.xlu1 %v6373_v0, %s6802_s0  ;;  %v6375_v52 = vpop.eup %6374 }
0x2dc0   :  { %v6377_v53 = vpop.eup %6376  ;;  %v2928_v32 = vadd.f32 1.0, %v6375_v52 }
0x2dc1   :  { %v2927_v54 = vadd.f32 1.0, %v6377_v53 }
0x2dc2   :  { %6378 = vrcp.f32 %v2928_v32 }
0x2dc3   :  { %6380 = vrcp.f32 %v2927_v54 }
0x2dcc   :  { %v6379_v58 = vpop.eup %6378 }
0x2dcd   :  { %v6381_v61 = vpop.eup %6380  ;;  %v2936_v56 = vmul.f32 0.0, %v6379_v58 }
0x2dce   :  { %v2935_v30 = vmul.f32 0.0, %v6381_v61 }
0x2e30   :  { %v2942_v60 = vpop.permute.xlu0 %2941 }
0x2e31   :  { %v2946_v57 = vmul.f32 %v6379_v58, %v2942_v60  ;;  %v2940_v6 = vpop.permute.xlu1 %2939 }
0x2e32   :  { %v2945_v20 = vmul.f32 %v6381_v61, %v2940_v6 }
0x2e33   :  { %2951 = vrot.lane.b32.xlu0 %v2946_v57, %s6803_s9 }
0x2e34   :  { %2949 = vrot.lane.b32.xlu1 %v2945_v20, %s6803_s9 }
0x2ea5   :  { %v2952_v24 = vpop.permute.xlu0 %2951 }
0x2ea6   :  { %v2956_v43 = vadd.f32 %v2952_v24, %v2936_v56  ;;  %v2950_v55 = vpop.permute.xlu1 %2949 }
0x2ea7   :  { %v2955_v59 = vadd.f32 %v2950_v55, %v2935_v30 }
0x2ea8   :  { %6382 = vtanh.f32 %v2956_v43  ;;  %v3083_v42 = vrot.slane %v2956_v43, 7 }
0x2ea9   :  { %6384 = vtanh.f32 %v2955_v59  ;;  %v3082_v38 = vrot.slane %v2955_v59, 7 }
0x2eb2   :  { %v6383_v62 = vpop.eup %6382 }
0x2eb3   :  { %v6385_v3 = vpop.eup %6384  ;;  %2963 = vrot.lane.b32.xlu0 %v6383_v62, %s6801_s3 }
0x2eb4   :  { %2961 = vrot.lane.b32.xlu1 %v6385_v3, %s6801_s3 }
0x2f25   :  { %v2964_v4 = vpop.permute.xlu0 %2963 }
0x2f26   :  { %v7530_v5 = vmul.f32 %v6379_v58, %v2964_v4  ;;  %v2962_v21 = vpop.permute.xlu1 %2961 }
0x2f27   :  { %v7532_v33 = vmul.f32 %v6381_v61, %v2962_v21 }
0x2f28   :  { %v2984_v63 = vrot.slane %v7530_v5, 7 }
0x2f2a   :  { %v2985_v8 = vsel %vm385_vm2, %v2984_v63, %v7532_v33 }
0x2f2b   :  { %2986 = vrot.lane.b32.xlu0 %v2985_v8, %s6804_s27 }
0x2f9d   :  { %v2987_v9 = vpop.permute.xlu0 %2986 }
0x2f9e   :  { %5816 = vmatmul.mubr.msk.f32.vlgmr.msra.gmra.mrb[20].mxu0 %vm2842_vm12, %v2987_v9 }
0x2f9f   :  { %6053 = vmatpush3.bf16.msra.mxu0 %v7479_v7  ;;  %5829 = vmatprep.mubr.msk.f32.mxu0 %vm6798_vm0, %v6799_v2 }
0x2fa0   :  { %6057 = vmatprep.subr.bf16.mxu0 %v6797_v1 }
0x3071   :  { %v3056_v10 = vpop.f32.mrb[20].mxu0 }
0x3072   :  { %v3061_v12 = vrot.slane %v3056_v10, 7  ;;  %v3065_v16 = vadd.f32 %v3056_v10, %v7518_v46  ;;  %v5817_v17 = vpop.f32.mrb[21].mxu0 }
0x3074   :  { %v3064_v18 = vadd.f32 %v3061_v12, %v7520_v13  ;;  %6386 = vtanh.f32 %v3065_v16  ;;  %v5404_v26 = vmul.f32 -1.442695, %v3065_v16 }
0x3076   :  { %6388 = vtanh.f32 %v3064_v18  ;;  %v5403_v19 = vmul.f32 -1.442695, %v3064_v18 }
0x3077   :  { %6390 = vpow2.f32 %v5404_v26 }
0x3078   :  { %6392 = vpow2.f32 %v5403_v19 }
0x307e   :  { %v6387_v22 = vpop.eup %6386 }
0x307f   :  { %3092 = vrot.lane.b32.xlu0 %v6387_v22, %s6802_s0 }
0x3080   :  { %v6389_v23 = vpop.eup %6388 }
0x3081   :  { %3090 = vrot.lane.b32.xlu1 %v6389_v23, %s6802_s0  ;;  %v6391_v15 = vpop.eup %6390 }
0x3082   :  { %v6393_v27 = vpop.eup %6392  ;;  %v3073_v28 = vadd.f32 1.0, %v6391_v15 }
0x3083   :  { %v3072_v29 = vadd.f32 1.0, %v6393_v27 }
0x3084   :  { %6394 = vrcp.f32 %v3073_v28 }
0x3085   :  { %6396 = vrcp.f32 %v3072_v29 }
0x308e   :  { %v6395_v34 = vpop.eup %6394 }
0x308f   :  { %v6397_v39 = vpop.eup %6396  ;;  %v3087_v44 = vmul.f32 %v6395_v34, %v3083_v42 }
0x3090   :  { %v3086_v49 = vmul.f32 %v6397_v39, %v3082_v38 }
0x30f1   :  { %v3093_v35 = vpop.permute.xlu0 %3092 }
0x30f2   :  { %v3097_v37 = vmul.f32 %v6395_v34, %v3093_v35 }
0x30f3   :  { %v3091_v40 = vpop.permute.xlu1 %3090 }
0x30f4   :  { %3102 = vrot.lane.b32.xlu0 %v3097_v37, %s6803_s9  ;;  %v3096_v41 = vmul.f32 %v6397_v39, %v3091_v40 }
0x30f6   :  { %3100 = vrot.lane.b32.xlu1 %v3096_v41, %s6803_s9 }
0x3166   :  { %v3103_v36 = vpop.permute.xlu0 %3102 }
0x3167   :  { %v3107_v11 = vadd.f32 %v3103_v36, %v3087_v44 }
0x3168   :  { %v3101_v50 = vpop.permute.xlu1 %3100 }
0x3169   :  { %6398 = vtanh.f32 %v3107_v11  ;;  %v3106_v48 = vadd.f32 %v3101_v50, %v3086_v49  ;;  %v3235_v10 = vrot.slane %v3107_v11, 7 }
0x316b   :  { %6400 = vtanh.f32 %v3106_v48  ;;  %v3234_v9 = vrot.slane %v3106_v48, 7 }
0x3173   :  { %v6399_v31 = vpop.eup %6398 }
0x3174   :  { %3114 = vrot.lane.b32.xlu0 %v6399_v31, %s6801_s3 }
0x3175   :  { %v6401_v25 = vpop.eup %6400 }
0x3176   :  { %3112 = vrot.lane.b32.xlu1 %v6401_v25, %s6801_s3 }
0x31e6   :  { %v3115_v45 = vpop.permute.xlu0 %3114 }
0x31e7   :  { %v7553_v14 = vmul.f32 %v6395_v34, %v3115_v45 }
0x31e8   :  { %v3113_v47 = vpop.permute.xlu1 %3112 }
0x31e9   :  { %v7551_v0 = vmul.f32 %v6397_v39, %v3113_v47 }
0x31eb   :  { %v3135_v51 = vrot.slane %v7551_v0, 1 }
0x31ed   :  { %v3136_v52 = vsel %vm385_vm2, %v7553_v14, %v3135_v51 }
0x31ee   :  { %3137 = vrot.lane.b32.xlu1 %v3136_v52, %s6804_s27 }
0x3260   :  { %v3138_v53 = vpop.permute.xlu1 %3137 }
0x3261   :  { %5823 = vmatmul.mubr.msk.f32.vlgmr.msra.gmra.mrb[20].mxu1 %vm2842_vm12, %v3138_v53 }
0x3262   :  { %6056 = vmatpush3.bf16.msra.mxu1 %v7479_v7  ;;  %5836 = vmatprep.mubr.msk.f32.mxu1 %vm6798_vm0, %v6799_v2 }
0x3263   :  { %6060 = vmatprep.subr.bf16.mxu1 %v6797_v1 }
0x3334   :  { %v3207_v32 = vpop.f32.mrb[20].mxu1 }
0x3335   :  { %v3212_v54 = vrot.slane %v3207_v32, 6  ;;  %v3213_v58 = vrot.slane %v3207_v32, 7  ;;  %v5824_v60 = vpop.f32.mrb[21].mxu1 }
0x3337   :  { %v3216_v61 = vadd.f32 %v3212_v54, %v7520_v13  ;;  %v3217_v57 = vadd.f32 %v3213_v58, %v7518_v46 }
0x3339   :  { %6402 = vtanh.f32 %v3216_v61  ;;  %v5406_v56 = vmul.f32 -1.442695, %v3216_v61  ;;  %v5407_v24 = vmul.f32 -1.442695, %v3217_v57 }
0x333a   :  { %6404 = vtanh.f32 %v3217_v57 }
0x333b   :  { %6406 = vpow2.f32 %v5406_v56 }
0x333c   :  { %6408 = vpow2.f32 %v5407_v24 }
0x3343   :  { %v6403_v6 = vpop.eup %6402 }
0x3344   :  { %v6405_v20 = vpop.eup %6404  ;;  %3242 = vrot.lane.b32.xlu0 %v6403_v6, %s6802_s0 }
0x3345   :  { %3244 = vrot.lane.b32.xlu1 %v6405_v20, %s6802_s0  ;;  %v6407_v30 = vpop.eup %6406 }
0x3346   :  { %v6409_v43 = vpop.eup %6408  ;;  %v3224_v55 = vadd.f32 1.0, %v6407_v30 }
0x3347   :  { %v3225_v59 = vadd.f32 1.0, %v6409_v43 }
0x3348   :  { %6410 = vrcp.f32 %v3224_v55 }
0x3349   :  { %6412 = vrcp.f32 %v3225_v59 }
0x3352   :  { %v6411_v62 = vpop.eup %6410 }
0x3353   :  { %v6413_v4 = vpop.eup %6412  ;;  %v3238_v12 = vmul.f32 %v6411_v62, %v3234_v9 }
0x3354   :  { %v3239_v16 = vmul.f32 %v6413_v4, %v3235_v10 }
0x33b6   :  { %v3243_v3 = vpop.permute.xlu0 %3242 }
0x33b7   :  { %v3245_v21 = vpop.permute.xlu1 %3244  ;;  %v3248_v63 = vmul.f32 %v6411_v62, %v3243_v3 }
0x33b8   :  { %v3249_v8 = vmul.f32 %v6413_v4, %v3245_v21 }
0x33b9   :  { %3252 = vrot.lane.b32.xlu0 %v3248_v63, %s6803_s9 }
0x33ba   :  { %3254 = vrot.lane.b32.xlu1 %v3249_v8, %s6803_s9 }
0x342b   :  { %v3253_v17 = vpop.permute.xlu0 %3252 }
0x342c   :  { %v3255_v18 = vpop.permute.xlu1 %3254  ;;  %v3258_v22 = vadd.f32 %v3253_v17, %v3238_v12 }
0x342d   :  { %v3259_v23 = vadd.f32 %v3255_v18, %v3239_v16 }
0x342e   :  { %6414 = vtanh.f32 %v3258_v22  ;;  %v3387_v60 = vrot.slane %v3258_v22, 7 }
0x342f   :  { %6416 = vtanh.f32 %v3259_v23  ;;  %v3388_v61 = vrot.slane %v3259_v23, 7 }
0x3438   :  { %v6415_v26 = vpop.eup %6414 }
0x3439   :  { %v6417_v19 = vpop.eup %6416  ;;  %3264 = vrot.lane.b32.xlu0 %v6415_v26, %s6801_s3 }
0x343a   :  { %3266 = vrot.lane.b32.xlu1 %v6417_v19, %s6801_s3 }
0x34ab   :  { %v3265_v15 = vpop.permute.xlu0 %3264 }
0x34ac   :  { %v3267_v27 = vpop.permute.xlu1 %3266  ;;  %v7572_v28 = vmul.f32 %v6411_v62, %v3265_v15 }
0x34ad   :  { %v7574_v29 = vmul.f32 %v6413_v4, %v3267_v27 }
0x34ae   :  { %v3287_v34 = vrot.slane %v7572_v28, 2 }
0x34af   :  { %v3288_v35 = vrot.slane %v7574_v29, 1 }
0x34b1   :  { %v3289_v37 = vsel %vm385_vm2, %v3288_v35, %v3287_v34 }
0x34b2   :  { %3290 = vrot.lane.b32.xlu0 %v3289_v37, %s6804_s27 }
0x3524   :  { %v3291_v39 = vpop.permute.xlu0 %3290 }
0x3525   :  { %5830 = vmatmul.mubr.msk.f32.vlgmr.msra.gmra.mrb[22].mxu0 %vm2842_vm12, %v3291_v39 }
0x3526   :  { %6059 = vmatpush3.bf16.msra.mxu0 %v7479_v7  ;;  %5843 = vmatprep.mubr.msk.f32.mxu0 %vm6798_vm0, %v6799_v2 }
0x3527   :  { %6063 = vmatprep.subr.bf16.mxu0 %v6797_v1 }
0x35f8   :  { %v3360_v40 = vpop.f32.mrb[22].mxu0 }
0x35f9   :  { %v3365_v41 = vrot.slane %v3360_v40, 5  ;;  %v3366_v42 = vrot.slane %v3360_v40, 6  ;;  %v5831_v44 = vpop.f32.mrb[23].mxu0 }
0x35fb   :  { %v3369_v38 = vadd.f32 %v3365_v41, %v7520_v13  ;;  %v3370_v36 = vadd.f32 %v3366_v42, %v7518_v46 }
0x35fd   :  { %6418 = vtanh.f32 %v3369_v38  ;;  %v5409_v50 = vmul.f32 -1.442695, %v3369_v38  ;;  %v5410_v48 = vmul.f32 -1.442695, %v3370_v36 }
0x35fe   :  { %6420 = vtanh.f32 %v3370_v36 }
0x35ff   :  { %6422 = vpow2.f32 %v5409_v50 }
0x3600   :  { %6424 = vpow2.f32 %v5410_v48 }
0x3607   :  { %v6419_v11 = vpop.eup %6418 }
0x3608   :  { %v6421_v49 = vpop.eup %6420  ;;  %3395 = vrot.lane.b32.xlu1 %v6419_v11, %s6802_s0 }
0x3609   :  { %3397 = vrot.lane.b32.xlu0 %v6421_v49, %s6802_s0  ;;  %v6423_v31 = vpop.eup %6422 }
0x360a   :  { %v6425_v25 = vpop.eup %6424  ;;  %v3377_v45 = vadd.f32 1.0, %v6423_v31 }
0x360b   :  { %v3378_v47 = vadd.f32 1.0, %v6425_v25 }
0x360c   :  { %6426 = vrcp.f32 %v3377_v45 }
0x360d   :  { %6428 = vrcp.f32 %v3378_v47 }
0x3616   :  { %v6427_v51 = vpop.eup %6426 }
0x3617   :  { %v6429_v53 = vpop.eup %6428  ;;  %v3391_v57 = vmul.f32 %v6427_v51, %v3387_v60 }
0x3618   :  { %v3392_v6 = vmul.f32 %v6429_v53, %v3388_v61 }
0x367a   :  { %v3396_v52 = vpop.permute.xlu1 %3395 }
0x367b   :  { %v3398_v32 = vpop.permute.xlu0 %3397  ;;  %v3401_v54 = vmul.f32 %v6427_v51, %v3396_v52 }
0x367c   :  { %v3402_v58 = vmul.f32 %v6429_v53, %v3398_v32 }
0x367d   :  { %3405 = vrot.lane.b32.xlu1 %v3401_v54, %s6803_s9 }
0x367e   :  { %3407 = vrot.lane.b32.xlu0 %v3402_v58, %s6803_s9 }
0x36ef   :  { %v3406_v20 = vpop.permute.xlu1 %3405 }
0x36f0   :  { %v3408_v56 = vpop.permute.xlu0 %3407  ;;  %v3411_v24 = vadd.f32 %v3406_v20, %v3391_v57 }
0x36f1   :  { %v3412_v30 = vadd.f32 %v3408_v56, %v3392_v6 }
0x36f2   :  { %6430 = vtanh.f32 %v3411_v24  ;;  %v3540_v36 = vrot.slane %v3411_v24, 7 }
0x36f3   :  { %6432 = vtanh.f32 %v3412_v30  ;;  %v3541_v11 = vrot.slane %v3412_v30, 7 }
0x36fc   :  { %v6431_v43 = vpop.eup %6430 }
0x36fd   :  { %v6433_v55 = vpop.eup %6432  ;;  %3417 = vrot.lane.b32.xlu1 %v6431_v43, %s6801_s3 }
0x36fe   :  { %3419 = vrot.lane.b32.xlu0 %v6433_v55, %s6801_s3 }
0x376f   :  { %v3418_v59 = vpop.permute.xlu1 %3417 }
0x3770   :  { %v3420_v62 = vpop.permute.xlu0 %3419  ;;  %v7593_v3 = vmul.f32 %v6427_v51, %v3418_v59 }
0x3771   :  { %v7595_v4 = vmul.f32 %v6429_v53, %v3420_v62 }
0x3772   :  { %v3440_v21 = vrot.slane %v7593_v3, 3 }
0x3773   :  { %v3441_v63 = vrot.slane %v7595_v4, 2 }
0x3775   :  { %v3442_v8 = vsel %vm385_vm2, %v3441_v63, %v3440_v21 }
0x3776   :  { %3443 = vrot.lane.b32.xlu1 %v3442_v8, %s6804_s27 }
0x37e8   :  { %v3444_v9 = vpop.permute.xlu1 %3443 }
0x37e9   :  { %5837 = vmatmul.mubr.msk.f32.vlgmr.msra.gmra.mrb[22].mxu1 %vm2842_vm12, %v3444_v9 }
0x37ea   :  { %6062 = vmatpush3.bf16.msra.mxu1 %v7479_v7  ;;  %5850 = vmatprep.mubr.msk.f32.mxu1 %vm6798_vm0, %v6799_v2 }
0x38bc   :  { %v3513_v10 = vpop.f32.mrb[22].mxu1 }
0x38bd   :  { %v3518_v12 = vrot.slane %v3513_v10, 4  ;;  %v3519_v16 = vrot.slane %v3513_v10, 5  ;;  %v5838_v17 = vpop.f32.mrb[23].mxu1 }
0x38bf   :  { %v3522_v18 = vadd.f32 %v3518_v12, %v7520_v13  ;;  %v3523_v22 = vadd.f32 %v3519_v16, %v7518_v46 }
0x38c1   :  { %6434 = vtanh.f32 %v3522_v18  ;;  %v5412_v19 = vmul.f32 -1.442695, %v3522_v18  ;;  %v5413_v15 = vmul.f32 -1.442695, %v3523_v22 }
0x38c2   :  { %6436 = vtanh.f32 %v3523_v22 }
0x38c3   :  { %6438 = vpow2.f32 %v5412_v19 }
0x38c4   :  { %6440 = vpow2.f32 %v5413_v15 }
0x38cb   :  { %v6435_v23 = vpop.eup %6434 }
0x38cc   :  { %v6437_v26 = vpop.eup %6436  ;;  %3548 = vrot.lane.b32.xlu0 %v6435_v23, %s6802_s0 }
0x38cd   :  { %3550 = vrot.lane.b32.xlu1 %v6437_v26, %s6802_s0  ;;  %v6439_v27 = vpop.eup %6438 }
0x38ce   :  { %v6441_v34 = vpop.eup %6440  ;;  %v3530_v35 = vadd.f32 1.0, %v6439_v27 }
0x38cf   :  { %v3531_v37 = vadd.f32 1.0, %v6441_v34 }
0x38d0   :  { %6442 = vrcp.f32 %v3530_v35 }
0x38d1   :  { %6444 = vrcp.f32 %v3531_v37 }
0x38da   :  { %v6443_v39 = vpop.eup %6442 }
0x38db   :  { %v6445_v41 = vpop.eup %6444  ;;  %v3544_v49 = vmul.f32 %v6443_v39, %v3540_v36 }
0x38dc   :  { %v3545_v50 = vmul.f32 %v6445_v41, %v3541_v11 }
0x393e   :  { %v3549_v40 = vpop.permute.xlu0 %3548 }
0x393f   :  { %v3551_v42 = vpop.permute.xlu1 %3550  ;;  %v3554_v44 = vmul.f32 %v6443_v39, %v3549_v40 }
0x3940   :  { %v3555_v38 = vmul.f32 %v6445_v41, %v3551_v42 }
0x3941   :  { %3558 = vrot.lane.b32.xlu0 %v3554_v44, %s6803_s9 }
0x3942   :  { %3560 = vrot.lane.b32.xlu1 %v3555_v38, %s6803_s9 }
0x39b3   :  { %v3559_v48 = vpop.permute.xlu0 %3558 }
0x39b4   :  { %v3561_v31 = vpop.permute.xlu1 %3560  ;;  %v3564_v25 = vadd.f32 %v3559_v48, %v3544_v49 }
0x39b5   :  { %v3565_v45 = vadd.f32 %v3561_v31, %v3545_v50 }
0x39b6   :  { %6446 = vtanh.f32 %v3564_v25  ;;  %v3693_v23 = vrot.slane %v3564_v25, 7 }
0x39b7   :  { %6448 = vtanh.f32 %v3565_v45  ;;  %v3694_v26 = vrot.slane %v3565_v45, 7 }
0x39c0   :  { %v6447_v47 = vpop.eup %6446 }
0x39c1   :  { %v6449_v51 = vpop.eup %6448  ;;  %3570 = vrot.lane.b32.xlu0 %v6447_v47, %s6801_s3 }
0x39c2   :  { %3572 = vrot.lane.b32.xlu1 %v6449_v51, %s6801_s3 }
0x3a33   :  { %v3571_v52 = vpop.permute.xlu0 %3570 }
0x3a34   :  { %v3573_v53 = vpop.permute.xlu1 %3572  ;;  %v7613_v32 = vmul.f32 %v6443_v39, %v3571_v52 }
0x3a35   :  { %v7615_v54 = vmul.f32 %v6445_v41, %v3573_v53 }
0x3a36   :  { %v3593_v58 = vrot.slane %v7613_v32, 4 }
0x3a37   :  { %v3594_v60 = vrot.slane %v7615_v54, 3 }
0x3a39   :  { %v3595_v61 = vsel %vm385_vm2, %v3594_v60, %v3593_v58 }
0x3a3a   :  { %3596 = vrot.lane.b32.xlu0 %v3595_v61, %s6804_s27 }
0x3aac   :  { %v3597_v57 = vpop.permute.xlu0 %3596 }
0x3aad   :  { %5844 = vmatmul.mubr.msk.f32.vlgmr.msra.gmra.mrb[24].mxu0 %vm2842_vm12, %v3597_v57 }
0x3aae   :  { %6065 = vmatpush3.bf16.msra.mxu0 %v7479_v7  ;;  %5857 = vmatprep.mubr.msk.f32.mxu0 %vm6798_vm0, %v6799_v2 }
0x3aaf   :  { %6070 = vmatprep.subr.bf16.mxu0 %v6797_v1 }
0x3b80   :  { %v3666_v6 = vpop.f32.mrb[24].mxu0 }
0x3b81   :  { %v3671_v20 = vrot.slane %v3666_v6, 3  ;;  %v3672_v56 = vrot.slane %v3666_v6, 4  ;;  %v5845_v24 = vpop.f32.mrb[25].mxu0 }
0x3b83   :  { %v3675_v30 = vadd.f32 %v3671_v20, %v7520_v13  ;;  %v3676_v43 = vadd.f32 %v3672_v56, %v7518_v46 }
0x3b85   :  { %6450 = vtanh.f32 %v3675_v30  ;;  %v5415_v7 = vmul.f32 -1.442695, %v3675_v30  ;;  %v5416_v62 = vmul.f32 -1.442695, %v3676_v43 }
0x3b86   :  { %6452 = vtanh.f32 %v3676_v43 }
0x3b87   :  { %6454 = vpow2.f32 %v5415_v7 }
0x3b88   :  { %6456 = vpow2.f32 %v5416_v62 }
0x3b8f   :  { %v6451_v55 = vpop.eup %6450 }
0x3b90   :  { %v6453_v59 = vpop.eup %6452  ;;  %3701 = vrot.lane.b32.xlu1 %v6451_v55, %s6802_s0 }
0x3b91   :  { %3703 = vrot.lane.b32.xlu0 %v6453_v59, %s6802_s0  ;;  %v6455_v21 = vpop.eup %6454 }
0x3b92   :  { %v6457_v63 = vpop.eup %6456  ;;  %v3683_v8 = vadd.f32 1.0, %v6455_v21 }
0x3b93   :  { %v3684_v9 = vadd.f32 1.0, %v6457_v63 }
0x3b94   :  { %6458 = vrcp.f32 %v3683_v8 }
0x3b95   :  { %6460 = vrcp.f32 %v3684_v9 }
0x3b9e   :  { %v6459_v10 = vpop.eup %6458 }
0x3b9f   :  { %v6461_v16 = vpop.eup %6460  ;;  %v3697_v19 = vmul.f32 %v6459_v10, %v3693_v23 }
0x3ba0   :  { %v3698_v15 = vmul.f32 %v6461_v16, %v3694_v26 }
0x3c02   :  { %v3702_v12 = vpop.permute.xlu1 %3701 }
0x3c03   :  { %v3704_v17 = vpop.permute.xlu0 %3703  ;;  %v3707_v18 = vmul.f32 %v6459_v10, %v3702_v12 }
0x3c04   :  { %v3708_v22 = vmul.f32 %v6461_v16, %v3704_v17 }
0x3c05   :  { %3711 = vrot.lane.b32.xlu1 %v3707_v18, %s6803_s9 }
0x3c06   :  { %3713 = vrot.lane.b32.xlu0 %v3708_v22, %s6803_s9 }
0x3c77   :  { %v3712_v27 = vpop.permute.xlu1 %3711 }
0x3c78   :  { %v3714_v34 = vpop.permute.xlu0 %3713  ;;  %v3717_v35 = vadd.f32 %v3712_v27, %v3697_v19 }
0x3c79   :  { %v3718_v37 = vadd.f32 %v3714_v34, %v3698_v15 }
0x3c7a   :  { %6462 = vtanh.f32 %v3717_v35  ;;  %v3846_v7 = vrot.slane %v3717_v35, 7 }
0x3c7b   :  { %6464 = vtanh.f32 %v3718_v37  ;;  %v3847_v62 = vrot.slane %v3718_v37, 7 }
0x3c84   :  { %v6463_v39 = vpop.eup %6462 }
0x3c85   :  { %v6465_v40 = vpop.eup %6464  ;;  %3723 = vrot.lane.b32.xlu1 %v6463_v39, %s6801_s3 }
0x3c86   :  { %3725 = vrot.lane.b32.xlu0 %v6465_v40, %s6801_s3 }
0x3cf7   :  { %v3724_v41 = vpop.permute.xlu1 %3723 }
0x3cf8   :  { %v3726_v42 = vpop.permute.xlu0 %3725  ;;  %v7634_v44 = vmul.f32 %v6459_v10, %v3724_v41 }
0x3cf9   :  { %v7636_v38 = vmul.f32 %v6461_v16, %v3726_v42 }
0x3cfa   :  { %v3746_v36 = vrot.slane %v7634_v44, 5 }
0x3cfb   :  { %v3747_v11 = vrot.slane %v7636_v38, 4 }
0x3cfd   :  { %v3748_v49 = vsel %vm385_vm2, %v3747_v11, %v3746_v36 }
0x3cfe   :  { %3749 = vrot.lane.b32.xlu1 %v3748_v49, %s6804_s27 }
0x3d70   :  { %v3750_v50 = vpop.permute.xlu1 %3749 }
0x3d71   :  { %5851 = vmatmul.mubr.msk.f32.vlgmr.msra.gmra.mrb[24].mxu1 %vm2842_vm12, %v3750_v50 }
0x3e44   :  { %v3819_v48 = vpop.f32.mrb[24].mxu1 }
0x3e45   :  { %v3824_v31 = vrot.slane %v3819_v48, 2  ;;  %v3825_v25 = vrot.slane %v3819_v48, 3  ;;  %v5852_v45 = vpop.f32.mrb[25].mxu1 }
0x3e47   :  { %v3828_v47 = vadd.f32 %v3824_v31, %v7520_v13  ;;  %v3829_v51 = vadd.f32 %v3825_v25, %v7518_v46 }
0x3e49   :  { %6466 = vtanh.f32 %v3828_v47  ;;  %v5418_v58 = vmul.f32 -1.442695, %v3828_v47  ;;  %v5419_v60 = vmul.f32 -1.442695, %v3829_v51 }
0x3e4a   :  { %6468 = vtanh.f32 %v3829_v51 }
0x3e4b   :  { %6470 = vpow2.f32 %v5418_v58 }
0x3e4c   :  { %6472 = vpow2.f32 %v5419_v60 }
0x3e53   :  { %v6467_v52 = vpop.eup %6466 }
0x3e54   :  { %v6469_v53 = vpop.eup %6468  ;;  %3854 = vrot.lane.b32.xlu0 %v6467_v52, %s6802_s0 }
0x3e55   :  { %3856 = vrot.lane.b32.xlu1 %v6469_v53, %s6802_s0  ;;  %v6471_v61 = vpop.eup %6470 }
0x3e56   :  { %v6473_v57 = vpop.eup %6472  ;;  %v3836_v6 = vadd.f32 1.0, %v6471_v61 }
0x3e57   :  { %v3837_v20 = vadd.f32 1.0, %v6473_v57 }
0x3e58   :  { %6474 = vrcp.f32 %v3836_v6 }
0x3e59   :  { %6476 = vrcp.f32 %v3837_v20 }
0x3e62   :  { %v6475_v56 = vpop.eup %6474 }
0x3e63   :  { %v6477_v30 = vpop.eup %6476  ;;  %v3850_v21 = vmul.f32 %v6475_v56, %v3846_v7  ;;  %v3272_v7 = vmax.f32 %v7572_v28, 0.0  ;;  %v2970_v28 = vmax.f32 %v7530_v5, 0.0 }
0x3e64   :  { %v3851_v63 = vmul.f32 %v6477_v30, %v3847_v62  ;;  %v3425_v62 = vmax.f32 %v7593_v3, 0.0  ;;  %v3426_v3 = vmax.f32 %v7595_v4, 0.0  ;;  %v4054_v4 = vld [vmem:[#allocation14] sm:$0xff] }
0x3ec6   :  { %v3855_v24 = vpop.permute.xlu0 %3854 }
0x3ec7   :  { %v3857_v43 = vpop.permute.xlu1 %3856  ;;  %v3860_v55 = vmul.f32 %v6475_v56, %v3855_v24 }
0x3ec8   :  { %v3861_v59 = vmul.f32 %v6477_v30, %v3857_v43 }
0x3ec9   :  { %3864 = vrot.lane.b32.xlu0 %v3860_v55, %s6803_s9  ;;  %v2969_v55 = vmax.f32 %v7532_v33, 0.0 }
0x3eca   :  { %3866 = vrot.lane.b32.xlu1 %v3861_v59, %s6803_s9  ;;  %v3120_v59 = vmax.f32 %v7551_v0, 0.0  ;;  %v3121_v0 = vmax.f32 %v7553_v14, 0.0  ;;  %v3579_v14 = vmax.f32 %v7615_v54, 0.0 }
0x3f3b   :  { %v3865_v8 = vpop.permute.xlu0 %3864 }
0x3f3c   :  { %v3867_v9 = vpop.permute.xlu1 %3866  ;;  %v3870_v10 = vadd.f32 %v3865_v8, %v3850_v21  ;;  %v3578_v21 = vmax.f32 %v7613_v32, 0.0  ;;  %v3273_v32 = vmax.f32 %v7574_v29, 0.0  ;;  %v4055_v8 = vld [vmem:[#allocation14 + $0x8] sm:$0xff] }
0x3f3d   :  { %v3871_v12 = vadd.f32 %v3867_v9, %v3851_v63  ;;  %v3731_v63 = vmax.f32 %v7634_v44, 0.0  ;;  %v3732_v44 = vmax.f32 %v7636_v38, 0.0  ;;  %v6066_v9 = vpack.c.bf16 %v4055_v8, %v4054_v4 }
0x3f3e   :  { %6478 = vtanh.f32 %v3870_v10  ;;  %v3999_v58 = vrot.slane %v3870_v10, 7  ;;  %v4052_v10 = vld [vmem:[#allocation16] sm:$0xff] }
0x3f3f   :  { %6480 = vtanh.f32 %v3871_v12  ;;  %v4000_v60 = vrot.slane %v3871_v12, 7  ;;  %v4053_v12 = vld [vmem:[#allocation16 + $0x8] sm:$0xff]  ;;  %6067 = vmatprep.subr.bf16.mxu1 %v6066_v9 }
0x3f40   :  { %v7702_v29 = vpack.c.bf16 %v4053_v12, %v4052_v10  ;;  %6069 = vmatpush3.bf16.msra.mxu1 %v6066_v9 }
0x3f41   :  { %6073 = vmatprep.subr.bf16.mxu1 %v6797_v1 }
0x3f48   :  { %v6479_v16 = vpop.eup %6478 }
0x3f49   :  { %v6481_v17 = vpop.eup %6480  ;;  %3876 = vrot.lane.b32.xlu0 %v6479_v16, %s6801_s3 }
0x3f4a   :  { %3878 = vrot.lane.b32.xlu1 %v6481_v17, %s6801_s3 }
0x3fbb   :  { %v3877_v18 = vpop.permute.xlu0 %3876 }
0x3fbc   :  { %v3879_v22 = vpop.permute.xlu1 %3878  ;;  %v7651_v23 = vmul.f32 %v6475_v56, %v3877_v18 }
0x3fbd   :  { %v7653_v26 = vmul.f32 %v6477_v30, %v3879_v22 }
0x3fbe   :  { %v3899_v19 = vrot.slane %v7651_v23, 6  ;;  %v3884_v33 = vmax.f32 %v7651_v23, 0.0 }
0x3fbf   :  { %v3900_v15 = vrot.slane %v7653_v26, 5  ;;  %v3885_v5 = vmax.f32 %v7653_v26, 0.0 }
0x3fc1   :  { %v3901_v27 = vsel %vm385_vm2, %v3900_v15, %v3899_v19 }
0x3fc2   :  { %3902 = vrot.lane.b32.xlu0 %v3901_v27, %s6804_s27 }
0x4034   :  { %v3903_v34 = vpop.permute.xlu0 %3902 }
0x4035   :  { %5858 = vmatmul.mubr.msk.f32.vlgmr.msra.gmra.mrb[26].mxu0 %vm2842_vm12, %v3903_v34 }
0x4036   :  { %5871 = vmatprep.mubr.msk.f32.mxu0 %vm6798_vm0, %v6799_v2  ;;  %6072 = vmatpush3.bf16.msra.mxu0 %v7702_v29 }
0x4037   :  { %6076 = vmatprep.subr.bf16.mxu0 %v6797_v1 }
0x4039   :  { %5872 = vmatmul.mubr.f32.vlgmr.msra.gmra.mrb[28].mxu0 %v6799_v2 }
0x403a   :  { %6078 = vmatpush3.bf16.msra.mxu0 %v7702_v29  ;;  %5885 = vmatprep.mubr.msk.f32.mxu0 %vm6798_vm0, %v6799_v2 }
0x403b   :  { %6082 = vmatprep.subr.bf16.mxu0 %v6797_v1 }
0x4108   :  { %v3972_v35 = vpop.f32.mrb[26].mxu0 }
0x4109   :  { %v3977_v37 = vrot.slane %v3972_v35, 1  ;;  %v3978_v39 = vrot.slane %v3972_v35, 2  ;;  %v5859_v40 = vpop.f32.mrb[27].mxu0 }
0x410b   :  { %v3981_v41 = vadd.f32 %v3977_v37, %v7520_v13  ;;  %v3982_v42 = vadd.f32 %v3978_v39, %v7518_v46 }
0x410d   :  { %6482 = vtanh.f32 %v3981_v41  ;;  %v5421_v49 = vmul.f32 -1.442695, %v3981_v41  ;;  %v5422_v50 = vmul.f32 -1.442695, %v3982_v42 }
0x410e   :  { %6484 = vtanh.f32 %v3982_v42 }
0x410f   :  { %6486 = vpow2.f32 %v5421_v49 }
0x4110   :  { %6488 = vpow2.f32 %v5422_v50 }
0x4117   :  { %v6483_v36 = vpop.eup %6482 }
0x4118   :  { %v6485_v11 = vpop.eup %6484  ;;  %4007 = vrot.lane.b32.xlu1 %v6483_v36, %s6802_s0 }
0x4119   :  { %4009 = vrot.lane.b32.xlu0 %v6485_v11, %s6802_s0  ;;  %v6487_v48 = vpop.eup %6486 }
0x411a   :  { %v6489_v31 = vpop.eup %6488  ;;  %v3989_v25 = vadd.f32 1.0, %v6487_v48 }
0x411b   :  { %v3990_v45 = vadd.f32 1.0, %v6489_v31 }
0x411c   :  { %6490 = vrcp.f32 %v3989_v25  ;;  %v4210_v25 = vpop.f32.mrb[28].mxu0 }
0x411d   :  { %6492 = vrcp.f32 %v3990_v45  ;;  %v5873_v45 = vpop.f32.mrb[29].mxu0 }
0x4126   :  { %v6491_v13 = vpop.eup %6490 }
0x4127   :  { %v7666_v47 = vpop.eup %6492  ;;  %v4003_v61 = vmul.f32 %v6491_v13, %v3999_v58 }
0x4128   :  { %v4004_v57 = vmul.f32 %v7666_v47, %v4000_v60 }
0x418a   :  { %v4008_v46 = vpop.permute.xlu1 %4007 }
0x418b   :  { %v4010_v51 = vpop.permute.xlu0 %4009  ;;  %v4013_v52 = vmul.f32 %v6491_v13, %v4008_v46  ;;  %v4215_v46 = vrot.slane %v4210_v25, 1 }
0x418c   :  { %v4014_v53 = vmul.f32 %v7666_v47, %v4010_v51 }
0x418d   :  { %4017 = vrot.lane.b32.xlu1 %v4013_v52, %s6803_s9 }
0x418e   :  { %4019 = vrot.lane.b32.xlu0 %v4014_v53, %s6803_s9 }
0x41ff   :  { %v4018_v6 = vpop.permute.xlu1 %4017 }
0x4200   :  { %v4020_v20 = vpop.permute.xlu0 %4019  ;;  %v4023_v56 = vadd.f32 %v4018_v6, %v4003_v61 }
0x4201   :  { %v4024_v24 = vadd.f32 %v4020_v20, %v4004_v57 }
0x4202   :  { %6494 = vtanh.f32 %v4023_v56 }
0x4203   :  { %6496 = vtanh.f32 %v4024_v24 }
0x420c   :  { %v6495_v30 = vpop.eup %6494 }
0x420d   :  { %v6497_v43 = vpop.eup %6496  ;;  %4029 = vrot.lane.b32.xlu1 %v6495_v30, %s6801_s3 }
0x420e   :  { %4031 = vrot.lane.b32.xlu0 %v6497_v43, %s6801_s3 }
0x4211   :  { %2973 = vrot.lane.b32.xlu1 %v2969_v55, %s6804_s27 }
0x4212   :  { %3124 = vrot.lane.b32.xlu0 %v3120_v59, %s6804_s27 }
0x4215   :  { %3276 = vrot.lane.b32.xlu1 %v3272_v7, %s6804_s27 }
0x4216   :  { %3429 = vrot.lane.b32.xlu0 %v3425_v62, %s6804_s27 }
0x4219   :  { %3582 = vrot.lane.b32.xlu1 %v3578_v21, %s6804_s27 }
0x421a   :  { %3735 = vrot.lane.b32.xlu0 %v3731_v63, %s6804_s27 }
0x421d   :  { %3888 = vrot.lane.b32.xlu1 %v3884_v33, %s6804_s27 }
0x421e   :  { %3126 = vrot.lane.b32.xlu0 %v3121_v0, %s6804_s27 }
0x4221   :  { %2975 = vrot.lane.b32.xlu1 %v2970_v28, %s6804_s27 }
0x4222   :  { %3431 = vrot.lane.b32.xlu0 %v3426_v3, %s6804_s27 }
0x4225   :  { %3278 = vrot.lane.b32.xlu1 %v3273_v32, %s6804_s27 }
0x4226   :  { %3737 = vrot.lane.b32.xlu0 %v3732_v44, %s6804_s27 }
0x4229   :  { %3584 = vrot.lane.b32.xlu1 %v3579_v14, %s6804_s27 }
0x422d   :  { %3890 = vrot.lane.b32.xlu1 %v3885_v5, %s6804_s27 }
0x427f   :  { %v4030_v38 = vpop.permute.xlu1 %4029 }
0x4280   :  { %v4032_v16 = vpop.permute.xlu0 %4031  ;;  %v4035_v17 = vmul.f32 %v6491_v13, %v4030_v38  ;;  %v5423_v13 = vld [vmem:[%s7872_s12] ss:$0 sm:$0xff] }
0x4281   :  { %v4036_v54 = vmul.f32 %v7666_v47, %v4032_v16 }
0x4282   :  { %v4037_v18 = vmax.f32 %v4035_v17, 0.0 }
0x4283   :  { %v2974_v22 = vpop.permute.xlu1 %2973  ;;  %v4038_v26 = vmax.f32 %v4036_v54, 0.0 }
0x4284   :  { %v3125_v23 = vpop.permute.xlu0 %3124  ;;  %2980 = vst.msk [vmem:[#allocation4] sm:$0x1] %vm2979_vm13, %v2974_v22  ;;  %4041 = vrot.lane.b32.xlu0 %v4037_v18, %s6804_s27 }
0x4285   :  { %3131 = vst.msk [vmem:[#allocation4] sm:$0x2] %vm3130_vm14, %v3125_v23 }
0x4287   :  { %v3277_v19 = vpop.permute.xlu1 %3276 }
0x4288   :  { %v3430_v15 = vpop.permute.xlu0 %3429  ;;  %3283 = vst.msk [vmem:[#allocation4] sm:$0x4] %vm3282_vm15, %v3277_v19  ;;  %4043 = vrot.lane.b32.xlu0 %v4038_v26, %s6804_s27 }
0x4289   :  { %3436 = vst.msk [vmem:[#allocation4] sm:$0x8] %vm3435_vm1, %v3430_v15 }
0x428b   :  { %v3583_v27 = vpop.permute.xlu1 %3582 }
0x428c   :  { %v3736_v34 = vpop.permute.xlu0 %3735  ;;  %3589 = vst.msk [vmem:[#allocation4] sm:$0x10] %vm3588_vm3, %v3583_v27 }
0x428d   :  { %3742 = vst.msk [vmem:[#allocation4] sm:$0x20] %vm3741_vm4, %v3736_v34 }
0x428f   :  { %v3889_v35 = vpop.permute.xlu1 %3888 }
0x4290   :  { %v3127_v37 = vpop.permute.xlu0 %3126  ;;  %3895 = vst.msk [vmem:[#allocation4] sm:$0x40] %vm3894_vm5, %v3889_v35 }
0x4291   :  { %3132 = vst.msk [vmem:[#allocation4 + $0x8] sm:$0x2] %vm3130_vm14, %v3127_v37 }
0x4293   :  { %v2976_v39 = vpop.permute.xlu1 %2975 }
0x4294   :  { %v3432_v40 = vpop.permute.xlu0 %3431  ;;  %2981 = vst.msk [vmem:[#allocation4 + $0x8] sm:$0x1] %vm2979_vm13, %v2976_v39 }
0x4295   :  { %3437 = vst.msk [vmem:[#allocation4 + $0x8] sm:$0x8] %vm3435_vm1, %v3432_v40 }
0x4297   :  { %v3279_v41 = vpop.permute.xlu1 %3278 }
0x4298   :  { %v3738_v42 = vpop.permute.xlu0 %3737  ;;  %3284 = vst.msk [vmem:[#allocation4 + $0x8] sm:$0x4] %vm3282_vm15, %v3279_v41 }
0x4299   :  { %3743 = vst.msk [vmem:[#allocation4 + $0x8] sm:$0x20] %vm3741_vm4, %v3738_v42 }
0x429b   :  { %v3585_v36 = vpop.permute.xlu1 %3584 }
0x429c   :  { %3590 = vst.msk [vmem:[#allocation4 + $0x8] sm:$0x10] %vm3588_vm3, %v3585_v36 }
0x429f   :  { %v3891_v11 = vpop.permute.xlu1 %3890 }
0x42a0   :  { %3896 = vst.msk [vmem:[#allocation4 + $0x8] sm:$0x40] %vm3894_vm5, %v3891_v11 }
0x42f6   :  { %v4042_v49 = vpop.permute.xlu0 %4041 }
0x42f7   :  { %4048 = vst.msk [vmem:[#allocation4] sm:$0x80] %vm4047_vm6, %v4042_v49 }
0x42fa   :  { %v4044_v50 = vpop.permute.xlu0 %4043 }
0x42fb   :  { %4049 = vst.msk [vmem:[#allocation4 + $0x8] sm:$0x80] %vm4047_vm6, %v4044_v50 }
0x42fe   :  { %v4050_v48 = vld [vmem:[#allocation4] sm:$0xff] }
0x42ff   :  { %5864 = vmatprep.mubr.msk.f32.mxu1 %vm2842_vm12, %v4050_v48 }
0x4302   :  { %v4051_v31 = vld [vmem:[#allocation4 + $0x8] sm:$0xff] }
0x4303   :  { %5865 = vmatmul.mubr.msk.f32.vlgmr.msra.gmra.mrb[26].mxu1 %vm2842_vm12, %v4051_v31 }
0x4304   :  { %6075 = vmatpush3.bf16.msra.mxu1 %v7702_v29  ;;  %5878 = vmatprep.mubr.msk.f32.mxu1 %vm6798_vm0, %v6799_v2 }
0x4305   :  { %6079 = vmatprep.subr.bf16.mxu1 %v6797_v1 }
0x43d6   :  { %v5866_v47 = vpop.f32.mrb[26].mxu1 }
0x43d7   :  { %v7738_v51 = vadd.f32 %v5866_v47, %v5423_v13  ;;  %v4135_v52 = vpop.f32.mrb[27].mxu1 }
0x43d8   :  { %v7740_v53 = vadd.f32 %v5423_v13, %v4135_v52 }
0x43d9   :  { %v4219_v58 = vadd.f32 %v4215_v46, %v7738_v51 }
0x43da   :  { %v4218_v60 = vadd.f32 %v4210_v25, %v7740_v53 }
0x43db   :  { %6498 = vtanh.f32 %v4219_v58  ;;  %v5427_v6 = vmul.f32 -1.442695, %v4219_v58 }
0x43dc   :  { %6500 = vtanh.f32 %v4218_v60  ;;  %v5426_v20 = vmul.f32 -1.442695, %v4218_v60 }
0x43dd   :  { %6502 = vpow2.f32 %v5427_v6 }
0x43de   :  { %6504 = vpow2.f32 %v5426_v20 }
0x43e5   :  { %v6499_v61 = vpop.eup %6498 }
0x43e6   :  { %v6501_v57 = vpop.eup %6500  ;;  %4240 = vrot.lane.b32.xlu1 %v6499_v61, %s6802_s0 }
0x43e7   :  { %4238 = vrot.lane.b32.xlu0 %v6501_v57, %s6802_s0  ;;  %v6503_v56 = vpop.eup %6502 }
0x43e8   :  { %v6505_v24 = vpop.eup %6504  ;;  %v4227_v30 = vadd.f32 1.0, %v6503_v56 }
0x43e9   :  { %v4226_v43 = vadd.f32 1.0, %v6505_v24 }
0x43ea   :  { %6506 = vrcp.f32 %v4227_v30 }
0x43eb   :  { %6508 = vrcp.f32 %v4226_v43 }
0x43f4   :  { %v6507_v55 = vpop.eup %6506 }
0x43f5   :  { %v6509_v7 = vpop.eup %6508  ;;  %v4235_v33 = vmul.f32 0.0, %v6507_v55 }
0x43f6   :  { %v4234_v28 = vmul.f32 0.0, %v6509_v7 }
0x4458   :  { %v4241_v59 = vpop.permute.xlu1 %4240 }
0x4459   :  { %v4245_v62 = vmul.f32 %v6507_v55, %v4241_v59  ;;  %v4239_v21 = vpop.permute.xlu0 %4238 }
0x445a   :  { %v4244_v63 = vmul.f32 %v6509_v7, %v4239_v21 }
0x445b   :  { %4250 = vrot.lane.b32.xlu1 %v4245_v62, %s6803_s9 }
0x445c   :  { %4248 = vrot.lane.b32.xlu0 %v4244_v63, %s6803_s9 }
0x44cd   :  { %v4251_v0 = vpop.permute.xlu1 %4250 }
0x44ce   :  { %v4255_v3 = vadd.f32 %v4251_v0, %v4235_v33  ;;  %v4249_v32 = vpop.permute.xlu0 %4248 }
0x44cf   :  { %v4254_v44 = vadd.f32 %v4249_v32, %v4234_v28 }
0x44d0   :  { %6510 = vtanh.f32 %v4255_v3  ;;  %v4369_v50 = vrot.slane %v4255_v3, 7 }
0x44d1   :  { %6512 = vtanh.f32 %v4254_v44  ;;  %v4368_v31 = vrot.slane %v4254_v44, 7 }
0x44da   :  { %v6511_v14 = vpop.eup %6510 }
0x44db   :  { %v6513_v5 = vpop.eup %6512  ;;  %4262 = vrot.lane.b32.xlu1 %v6511_v14, %s6801_s3 }
0x44dc   :  { %4260 = vrot.lane.b32.xlu0 %v6513_v5, %s6801_s3 }
0x454d   :  { %v4263_v4 = vpop.permute.xlu1 %4262 }
0x454e   :  { %v4267_v8 = vmul.f32 %v6507_v55, %v4263_v4  ;;  %v4261_v9 = vpop.permute.xlu0 %4260 }
0x454f   :  { %v4266_v10 = vmul.f32 %v6509_v7, %v4261_v9 }
0x4550   :  { %v4270_v12 = vrot.slane %v4267_v8, 7 }
0x4552   :  { %v4271_v38 = vsel %vm385_vm2, %v4270_v12, %v4266_v10 }
0x4553   :  { %4272 = vrot.lane.b32.xlu1 %v4271_v38, %s6804_s27 }
0x45c5   :  { %v4273_v16 = vpop.permute.xlu1 %4272 }
0x45c6   :  { %5879 = vmatmul.mubr.msk.f32.vlgmr.msra.gmra.mrb[28].mxu1 %vm2842_vm12, %v4273_v16 }
0x45c7   :  { %6081 = vmatpush3.bf16.msra.mxu1 %v7702_v29  ;;  %5892 = vmatprep.mubr.msk.f32.mxu1 %vm6798_vm0, %v6799_v2 }
0x45c8   :  { %6085 = vmatprep.subr.bf16.mxu1 %v6797_v1 }
0x4699   :  { %v4342_v17 = vpop.f32.mrb[28].mxu1 }
0x469a   :  { %v4347_v54 = vrot.slane %v4342_v17, 7  ;;  %v4351_v18 = vadd.f32 %v4342_v17, %v7738_v51  ;;  %v5880_v22 = vpop.f32.mrb[29].mxu1 }
0x469c   :  { %v4350_v23 = vadd.f32 %v4347_v54, %v7740_v53  ;;  %6514 = vtanh.f32 %v4351_v18  ;;  %v5430_v15 = vmul.f32 -1.442695, %v4351_v18 }
0x469e   :  { %6516 = vtanh.f32 %v4350_v23  ;;  %v5429_v27 = vmul.f32 -1.442695, %v4350_v23 }
0x469f   :  { %6518 = vpow2.f32 %v5430_v15 }
0x46a0   :  { %6520 = vpow2.f32 %v5429_v27 }
0x46a6   :  { %v6515_v26 = vpop.eup %6514 }
0x46a7   :  { %4378 = vrot.lane.b32.xlu1 %v6515_v26, %s6802_s0 }
0x46a8   :  { %v6517_v19 = vpop.eup %6516 }
0x46a9   :  { %4376 = vrot.lane.b32.xlu0 %v6517_v19, %s6802_s0  ;;  %v6519_v34 = vpop.eup %6518 }
0x46aa   :  { %v6521_v35 = vpop.eup %6520  ;;  %v4359_v37 = vadd.f32 1.0, %v6519_v34 }
0x46ab   :  { %v4358_v39 = vadd.f32 1.0, %v6521_v35 }
0x46ac   :  { %6522 = vrcp.f32 %v4359_v37 }
0x46ad   :  { %6524 = vrcp.f32 %v4358_v39 }
0x46b6   :  { %v6523_v40 = vpop.eup %6522 }
0x46b7   :  { %v6525_v36 = vpop.eup %6524  ;;  %v4373_v48 = vmul.f32 %v6523_v40, %v4369_v50 }
0x46b8   :  { %v4372_v13 = vmul.f32 %v6525_v36, %v4368_v31 }
0x4719   :  { %v4379_v41 = vpop.permute.xlu1 %4378 }
0x471a   :  { %v4383_v42 = vmul.f32 %v6523_v40, %v4379_v41 }
0x471b   :  { %v4377_v11 = vpop.permute.xlu0 %4376 }
0x471c   :  { %4388 = vrot.lane.b32.xlu1 %v4383_v42, %s6803_s9  ;;  %v4382_v49 = vmul.f32 %v6525_v36, %v4377_v11 }
0x471e   :  { %4386 = vrot.lane.b32.xlu0 %v4382_v49, %s6803_s9 }
0x478e   :  { %v4389_v25 = vpop.permute.xlu1 %4388 }
0x478f   :  { %v4393_v45 = vadd.f32 %v4389_v25, %v4373_v48 }
0x4790   :  { %v4387_v46 = vpop.permute.xlu0 %4386 }
0x4791   :  { %6526 = vtanh.f32 %v4393_v45  ;;  %v4392_v47 = vadd.f32 %v4387_v46, %v4372_v13  ;;  %v4508_v38 = vrot.slane %v4393_v45, 7 }
0x4793   :  { %6528 = vtanh.f32 %v4392_v47  ;;  %v4507_v12 = vrot.slane %v4392_v47, 7 }
0x479b   :  { %v6527_v52 = vpop.eup %6526 }
0x479c   :  { %4400 = vrot.lane.b32.xlu1 %v6527_v52, %s6801_s3 }
0x479d   :  { %v6529_v58 = vpop.eup %6528 }
0x479e   :  { %4398 = vrot.lane.b32.xlu0 %v6529_v58, %s6801_s3 }
0x480e   :  { %v4401_v60 = vpop.permute.xlu1 %4400 }
0x480f   :  { %v4405_v6 = vmul.f32 %v6523_v40, %v4401_v60 }
0x4810   :  { %v4399_v61 = vpop.permute.xlu0 %4398 }
0x4811   :  { %v4404_v57 = vmul.f32 %v6525_v36, %v4399_v61 }
0x4813   :  { %v4408_v20 = vrot.slane %v4404_v57, 1 }
0x4815   :  { %v4409_v56 = vsel %vm385_vm2, %v4405_v6, %v4408_v20 }
0x4816   :  { %4410 = vrot.lane.b32.xlu0 %v4409_v56, %s6804_s27 }
0x4888   :  { %v4411_v24 = vpop.permute.xlu0 %4410 }
0x4889   :  { %5886 = vmatmul.mubr.msk.f32.vlgmr.msra.gmra.mrb[30].mxu0 %vm2842_vm12, %v4411_v24 }
0x488a   :  { %6084 = vmatpush3.bf16.msra.mxu0 %v7702_v29  ;;  %5899 = vmatprep.mubr.msk.f32.mxu0 %vm6798_vm0, %v6799_v2 }
0x488b   :  { %6088 = vmatprep.subr.bf16.mxu0 %v6797_v1 }
0x495c   :  { %v4480_v30 = vpop.f32.mrb[30].mxu0 }
0x495d   :  { %v4485_v43 = vrot.slane %v4480_v30, 6  ;;  %v4486_v55 = vrot.slane %v4480_v30, 7  ;;  %v5887_v59 = vpop.f32.mrb[31].mxu0 }
0x495f   :  { %v4489_v7 = vadd.f32 %v4485_v43, %v7740_v53  ;;  %v4490_v62 = vadd.f32 %v4486_v55, %v7738_v51 }
0x4961   :  { %6530 = vtanh.f32 %v4489_v7  ;;  %v5432_v33 = vmul.f32 -1.442695, %v4489_v7  ;;  %v5433_v0 = vmul.f32 -1.442695, %v4490_v62 }
0x4962   :  { %6532 = vtanh.f32 %v4490_v62 }
0x4963   :  { %6534 = vpow2.f32 %v5432_v33 }
0x4964   :  { %6536 = vpow2.f32 %v5433_v0 }
0x496b   :  { %v6531_v21 = vpop.eup %6530 }
0x496c   :  { %v6533_v63 = vpop.eup %6532  ;;  %4515 = vrot.lane.b32.xlu1 %v6531_v21, %s6802_s0 }
0x496d   :  { %4517 = vrot.lane.b32.xlu0 %v6533_v63, %s6802_s0  ;;  %v6535_v28 = vpop.eup %6534 }
0x496e   :  { %v6537_v3 = vpop.eup %6536  ;;  %v4497_v32 = vadd.f32 1.0, %v6535_v28 }
0x496f   :  { %v4498_v44 = vadd.f32 1.0, %v6537_v3 }
0x4970   :  { %6538 = vrcp.f32 %v4497_v32 }
0x4971   :  { %6540 = vrcp.f32 %v4498_v44 }
0x497a   :  { %v6539_v14 = vpop.eup %6538 }
0x497b   :  { %v6541_v4 = vpop.eup %6540  ;;  %v4511_v16 = vmul.f32 %v6539_v14, %v4507_v12 }
0x497c   :  { %v4512_v17 = vmul.f32 %v6541_v4, %v4508_v38 }
0x49de   :  { %v4516_v5 = vpop.permute.xlu1 %4515 }
0x49df   :  { %v4518_v8 = vpop.permute.xlu0 %4517  ;;  %v4521_v9 = vmul.f32 %v6539_v14, %v4516_v5 }
0x49e0   :  { %v4522_v10 = vmul.f32 %v6541_v4, %v4518_v8 }
0x49e1   :  { %4525 = vrot.lane.b32.xlu1 %v4521_v9, %s6803_s9 }
0x49e2   :  { %4527 = vrot.lane.b32.xlu0 %v4522_v10, %s6803_s9 }
0x4a53   :  { %v4526_v54 = vpop.permute.xlu1 %4525 }
0x4a54   :  { %v4528_v18 = vpop.permute.xlu0 %4527  ;;  %v4531_v22 = vadd.f32 %v4526_v54, %v4511_v16 }
0x4a55   :  { %v4532_v23 = vadd.f32 %v4528_v18, %v4512_v17 }
0x4a56   :  { %6542 = vtanh.f32 %v4531_v22  ;;  %v4647_v24 = vrot.slane %v4531_v22, 7 }
0x4a57   :  { %6544 = vtanh.f32 %v4532_v23  ;;  %v4648_v30 = vrot.slane %v4532_v23, 7 }
0x4a60   :  { %v6543_v26 = vpop.eup %6542 }
0x4a61   :  { %v6545_v19 = vpop.eup %6544  ;;  %4537 = vrot.lane.b32.xlu1 %v6543_v26, %s6801_s3 }
0x4a62   :  { %4539 = vrot.lane.b32.xlu0 %v6545_v19, %s6801_s3 }
0x4ad3   :  { %v4538_v15 = vpop.permute.xlu1 %4537 }
0x4ad4   :  { %v4540_v27 = vpop.permute.xlu0 %4539  ;;  %v4543_v34 = vmul.f32 %v6539_v14, %v4538_v15 }
0x4ad5   :  { %v4544_v35 = vmul.f32 %v6541_v4, %v4540_v27 }
0x4ad6   :  { %v4547_v37 = vrot.slane %v4543_v34, 2 }
0x4ad7   :  { %v4548_v39 = vrot.slane %v4544_v35, 1 }
0x4ad9   :  { %v4549_v40 = vsel %vm385_vm2, %v4548_v39, %v4547_v37 }
0x4ada   :  { %4550 = vrot.lane.b32.xlu1 %v4549_v40, %s6804_s27 }
0x4b4c   :  { %v4551_v41 = vpop.permute.xlu1 %4550 }
0x4b4d   :  { %5893 = vmatmul.mubr.msk.f32.vlgmr.msra.gmra.mrb[30].mxu1 %vm2842_vm12, %v4551_v41 }
0x4b4e   :  { %6087 = vmatpush3.bf16.msra.mxu1 %v7702_v29  ;;  %5906 = vmatprep.mubr.msk.f32.mxu1 %vm6798_vm0, %v6799_v2 }
0x4b4f   :  { %6091 = vmatprep.subr.bf16.mxu1 %v6797_v1 }
0x4c20   :  { %v4620_v42 = vpop.f32.mrb[30].mxu1 }
0x4c21   :  { %v4625_v36 = vrot.slane %v4620_v42, 5  ;;  %v4626_v11 = vrot.slane %v4620_v42, 6  ;;  %v5894_v49 = vpop.f32.mrb[31].mxu1 }
0x4c23   :  { %v4629_v50 = vadd.f32 %v4625_v36, %v7740_v53  ;;  %v4630_v48 = vadd.f32 %v4626_v11, %v7738_v51 }
0x4c25   :  { %6546 = vtanh.f32 %v4629_v50  ;;  %v5435_v45 = vmul.f32 -1.442695, %v4629_v50  ;;  %v5436_v13 = vmul.f32 -1.442695, %v4630_v48 }
0x4c26   :  { %6548 = vtanh.f32 %v4630_v48 }
0x4c27   :  { %6550 = vpow2.f32 %v5435_v45 }
0x4c28   :  { %6552 = vpow2.f32 %v5436_v13 }
0x4c2f   :  { %v6547_v31 = vpop.eup %6546 }
0x4c30   :  { %v6549_v25 = vpop.eup %6548  ;;  %4655 = vrot.lane.b32.xlu0 %v6547_v31, %s6802_s0 }
0x4c31   :  { %4657 = vrot.lane.b32.xlu1 %v6549_v25, %s6802_s0  ;;  %v6551_v46 = vpop.eup %6550 }
0x4c32   :  { %v6553_v47 = vpop.eup %6552  ;;  %v4637_v52 = vadd.f32 1.0, %v6551_v46 }
0x4c33   :  { %v4638_v58 = vadd.f32 1.0, %v6553_v47 }
0x4c34   :  { %6554 = vrcp.f32 %v4637_v52 }
0x4c35   :  { %6556 = vrcp.f32 %v4638_v58 }
0x4c3e   :  { %v6555_v60 = vpop.eup %6554 }
0x4c3f   :  { %v6557_v57 = vpop.eup %6556  ;;  %v4651_v43 = vmul.f32 %v6555_v60, %v4647_v24 }
0x4c40   :  { %v4652_v55 = vmul.f32 %v6557_v57, %v4648_v30 }
0x4ca2   :  { %v4656_v61 = vpop.permute.xlu0 %4655 }
0x4ca3   :  { %v4658_v6 = vpop.permute.xlu1 %4657  ;;  %v4661_v20 = vmul.f32 %v6555_v60, %v4656_v61 }
0x4ca4   :  { %v4662_v56 = vmul.f32 %v6557_v57, %v4658_v6 }
0x4ca5   :  { %4665 = vrot.lane.b32.xlu0 %v4661_v20, %s6803_s9 }
0x4ca6   :  { %4667 = vrot.lane.b32.xlu1 %v4662_v56, %s6803_s9 }
0x4d17   :  { %v4666_v59 = vpop.permute.xlu0 %4665 }
0x4d18   :  { %v4668_v7 = vpop.permute.xlu1 %4667  ;;  %v4671_v62 = vadd.f32 %v4666_v59, %v4651_v43 }
0x4d19   :  { %v4672_v21 = vadd.f32 %v4668_v7, %v4652_v55 }
0x4d1a   :  { %6558 = vtanh.f32 %v4671_v62  ;;  %v4787_v40 = vrot.slane %v4671_v62, 7 }
0x4d1b   :  { %6560 = vtanh.f32 %v4672_v21  ;;  %v4788_v41 = vrot.slane %v4672_v21, 7 }
0x4d24   :  { %v6559_v63 = vpop.eup %6558 }
0x4d25   :  { %v6561_v33 = vpop.eup %6560  ;;  %4677 = vrot.lane.b32.xlu0 %v6559_v63, %s6801_s3 }
0x4d26   :  { %4679 = vrot.lane.b32.xlu1 %v6561_v33, %s6801_s3 }
0x4d97   :  { %v4678_v0 = vpop.permute.xlu0 %4677 }
0x4d98   :  { %v4680_v28 = vpop.permute.xlu1 %4679  ;;  %v4683_v3 = vmul.f32 %v6555_v60, %v4678_v0 }
0x4d99   :  { %v4684_v32 = vmul.f32 %v6557_v57, %v4680_v28 }
0x4d9a   :  { %v4687_v44 = vrot.slane %v4683_v3, 3 }
0x4d9b   :  { %v4688_v14 = vrot.slane %v4684_v32, 2 }
0x4d9d   :  { %v4689_v5 = vsel %vm385_vm2, %v4688_v14, %v4687_v44 }
0x4d9e   :  { %4690 = vrot.lane.b32.xlu0 %v4689_v5, %s6804_s27 }
0x4e10   :  { %v4691_v4 = vpop.permute.xlu0 %4690 }
0x4e11   :  { %5900 = vmatmul.mubr.msk.f32.vlgmr.msra.gmra.mrb[32].mxu0 %vm2842_vm12, %v4691_v4 }
0x4e12   :  { %6090 = vmatpush3.bf16.msra.mxu0 %v7702_v29  ;;  %5913 = vmatprep.mubr.msk.f32.mxu0 %vm6798_vm0, %v6799_v2 }
0x4e13   :  { %6094 = vmatprep.subr.bf16.mxu0 %v6797_v1 }
0x4ee4   :  { %v4760_v8 = vpop.f32.mrb[32].mxu0 }
0x4ee5   :  { %v4765_v9 = vrot.slane %v4760_v8, 4  ;;  %v4766_v10 = vrot.slane %v4760_v8, 5  ;;  %v5901_v12 = vpop.f32.mrb[33].mxu0 }
0x4ee7   :  { %v4769_v38 = vadd.f32 %v4765_v9, %v7740_v53  ;;  %v4770_v16 = vadd.f32 %v4766_v10, %v7738_v51 }
0x4ee9   :  { %6562 = vtanh.f32 %v4769_v38  ;;  %v5438_v18 = vmul.f32 -1.442695, %v4769_v38  ;;  %v5439_v22 = vmul.f32 -1.442695, %v4770_v16 }
0x4eea   :  { %6564 = vtanh.f32 %v4770_v16 }
0x4eeb   :  { %6566 = vpow2.f32 %v5438_v18 }
0x4eec   :  { %6568 = vpow2.f32 %v5439_v22 }
0x4ef3   :  { %v6563_v17 = vpop.eup %6562 }
0x4ef4   :  { %v6565_v54 = vpop.eup %6564  ;;  %4795 = vrot.lane.b32.xlu1 %v6563_v17, %s6802_s0 }
0x4ef5   :  { %4797 = vrot.lane.b32.xlu0 %v6565_v54, %s6802_s0  ;;  %v6567_v1 = vpop.eup %6566 }
0x4ef6   :  { %v6569_v23 = vpop.eup %6568  ;;  %v4777_v26 = vadd.f32 1.0, %v6567_v1 }
0x4ef7   :  { %v4778_v19 = vadd.f32 1.0, %v6569_v23 }
0x4ef8   :  { %6570 = vrcp.f32 %v4777_v26 }
0x4ef9   :  { %6572 = vrcp.f32 %v4778_v19 }
0x4f02   :  { %v6571_v15 = vpop.eup %6570 }
0x4f03   :  { %v6573_v34 = vpop.eup %6572  ;;  %v4791_v42 = vmul.f32 %v6571_v15, %v4787_v40 }
0x4f04   :  { %v4792_v36 = vmul.f32 %v6573_v34, %v4788_v41 }
0x4f66   :  { %v4796_v27 = vpop.permute.xlu1 %4795 }
0x4f67   :  { %v4798_v35 = vpop.permute.xlu0 %4797  ;;  %v4801_v37 = vmul.f32 %v6571_v15, %v4796_v27 }
0x4f68   :  { %v4802_v39 = vmul.f32 %v6573_v34, %v4798_v35 }
0x4f69   :  { %4805 = vrot.lane.b32.xlu1 %v4801_v37, %s6803_s9 }
0x4f6a   :  { %4807 = vrot.lane.b32.xlu0 %v4802_v39, %s6803_s9 }
0x4fdb   :  { %v4806_v11 = vpop.permute.xlu1 %4805 }
0x4fdc   :  { %v4808_v49 = vpop.permute.xlu0 %4807  ;;  %v4811_v50 = vadd.f32 %v4806_v11, %v4791_v42 }
0x4fdd   :  { %v4812_v48 = vadd.f32 %v4808_v49, %v4792_v36 }
0x4fde   :  { %6574 = vtanh.f32 %v4811_v50  ;;  %v4927_v14 = vrot.slane %v4811_v50, 7 }
0x4fdf   :  { %6576 = vtanh.f32 %v4812_v48  ;;  %v4928_v5 = vrot.slane %v4812_v48, 7 }
0x4fe8   :  { %v6575_v31 = vpop.eup %6574 }
0x4fe9   :  { %v6577_v25 = vpop.eup %6576  ;;  %4817 = vrot.lane.b32.xlu1 %v6575_v31, %s6801_s3 }
0x4fea   :  { %4819 = vrot.lane.b32.xlu0 %v6577_v25, %s6801_s3 }
0x505b   :  { %v4818_v45 = vpop.permute.xlu1 %4817 }
0x505c   :  { %v4820_v13 = vpop.permute.xlu0 %4819  ;;  %v4823_v46 = vmul.f32 %v6571_v15, %v4818_v45 }
0x505d   :  { %v4824_v47 = vmul.f32 %v6573_v34, %v4820_v13 }
0x505e   :  { %v4827_v52 = vrot.slane %v4823_v46, 4 }
0x505f   :  { %v4828_v58 = vrot.slane %v4824_v47, 3 }
0x5061   :  { %v4829_v60 = vsel %vm385_vm2, %v4828_v58, %v4827_v52 }
0x5062   :  { %4830 = vrot.lane.b32.xlu1 %v4829_v60, %s6804_s27 }
0x50d4   :  { %v4831_v61 = vpop.permute.xlu1 %4830 }
0x50d5   :  { %5907 = vmatmul.mubr.msk.f32.vlgmr.msra.gmra.mrb[32].mxu1 %vm2842_vm12, %v4831_v61 }
0x50d6   :  { %6093 = vmatpush3.bf16.msra.mxu1 %v7702_v29  ;;  %5920 = vmatprep.mubr.msk.f32.mxu1 %vm6798_vm0, %v6799_v2 }
0x51a8   :  { %v4900_v57 = vpop.f32.mrb[32].mxu1 }
0x51a9   :  { %v4905_v6 = vrot.slane %v4900_v57, 3  ;;  %v4906_v20 = vrot.slane %v4900_v57, 4  ;;  %v5908_v56 = vpop.f32.mrb[33].mxu1 }
0x51ab   :  { %v4909_v24 = vadd.f32 %v4905_v6, %v7740_v53  ;;  %v4910_v30 = vadd.f32 %v4906_v20, %v7738_v51 }
0x51ad   :  { %6578 = vtanh.f32 %v4909_v24  ;;  %v5441_v29 = vmul.f32 -1.442695, %v4909_v24  ;;  %v5442_v59 = vmul.f32 -1.442695, %v4910_v30 }
0x51ae   :  { %6580 = vtanh.f32 %v4910_v30 }
0x51af   :  { %6582 = vpow2.f32 %v5441_v29 }
0x51b0   :  { %6584 = vpow2.f32 %v5442_v59 }
0x51b7   :  { %v6579_v43 = vpop.eup %6578 }
0x51b8   :  { %v6581_v55 = vpop.eup %6580  ;;  %4935 = vrot.lane.b32.xlu0 %v6579_v43, %s6802_s0 }
0x51b9   :  { %4937 = vrot.lane.b32.xlu1 %v6581_v55, %s6802_s0  ;;  %v6583_v7 = vpop.eup %6582 }
0x51ba   :  { %v6585_v62 = vpop.eup %6584  ;;  %v4917_v21 = vadd.f32 1.0, %v6583_v7 }
0x51bb   :  { %v4918_v63 = vadd.f32 1.0, %v6585_v62 }
0x51bc   :  { %6586 = vrcp.f32 %v4917_v21 }
0x51bd   :  { %6588 = vrcp.f32 %v4918_v63 }
0x51c6   :  { %v6587_v33 = vpop.eup %6586 }
0x51c7   :  { %v6589_v28 = vpop.eup %6588  ;;  %v4931_v4 = vmul.f32 %v6587_v33, %v4927_v14 }
0x51c8   :  { %v4932_v8 = vmul.f32 %v6589_v28, %v4928_v5 }
0x522a   :  { %v4936_v0 = vpop.permute.xlu0 %4935 }
0x522b   :  { %v4938_v3 = vpop.permute.xlu1 %4937  ;;  %v4941_v32 = vmul.f32 %v6587_v33, %v4936_v0 }
0x522c   :  { %v4942_v44 = vmul.f32 %v6589_v28, %v4938_v3 }
0x522d   :  { %4945 = vrot.lane.b32.xlu0 %v4941_v32, %s6803_s9 }
0x522e   :  { %4947 = vrot.lane.b32.xlu1 %v4942_v44, %s6803_s9 }
0x529f   :  { %v4946_v9 = vpop.permute.xlu0 %4945 }
0x52a0   :  { %v4948_v10 = vpop.permute.xlu1 %4947  ;;  %v4951_v12 = vadd.f32 %v4946_v9, %v4931_v4 }
0x52a1   :  { %v4952_v38 = vadd.f32 %v4948_v10, %v4932_v8 }
0x52a2   :  { %6590 = vtanh.f32 %v4951_v12  ;;  %v5067_v52 = vrot.slane %v4951_v12, 7 }
0x52a3   :  { %6592 = vtanh.f32 %v4952_v38  ;;  %v5068_v58 = vrot.slane %v4952_v38, 7 }
0x52ac   :  { %v6591_v16 = vpop.eup %6590 }
0x52ad   :  { %v6593_v17 = vpop.eup %6592  ;;  %4957 = vrot.lane.b32.xlu0 %v6591_v16, %s6801_s3 }
0x52ae   :  { %4959 = vrot.lane.b32.xlu1 %v6593_v17, %s6801_s3 }
0x531f   :  { %v4958_v54 = vpop.permute.xlu0 %4957 }
0x5320   :  { %v4960_v18 = vpop.permute.xlu1 %4959  ;;  %v4963_v22 = vmul.f32 %v6587_v33, %v4958_v54 }
0x5321   :  { %v4964_v1 = vmul.f32 %v6589_v28, %v4960_v18 }
0x5322   :  { %v4967_v23 = vrot.slane %v4963_v22, 5 }
0x5323   :  { %v4968_v26 = vrot.slane %v4964_v1, 4 }
0x5325   :  { %v4969_v19 = vsel %vm385_vm2, %v4968_v26, %v4967_v23 }
0x5326   :  { %4970 = vrot.lane.b32.xlu0 %v4969_v19, %s6804_s27 }
0x5398   :  { %v4971_v15 = vpop.permute.xlu0 %4970 }
0x5399   :  { %5914 = vmatmul.mubr.msk.f32.vlgmr.msra.gmra.mrb[34].mxu0 %vm2842_vm12, %v4971_v15 }
0x539a   :  { %5927 = vmatprep.mubr.msk.f32.mxu0 %vm6798_vm0, %v6799_v2  ;;  %vm5335_vm0 = vcmask 1024  }
0x546c   :  { %v5040_v27 = vpop.f32.mrb[34].mxu0 }
0x546d   :  { %v5045_v34 = vrot.slane %v5040_v27, 2  ;;  %v5046_v35 = vrot.slane %v5040_v27, 3  ;;  %v5915_v37 = vpop.f32.mrb[35].mxu0 }
0x546e   :  { %v5248_v37 = vld [vmem:[%s7873_s13 + $0x8] sm:$0xff] }
0x546f   :  { %v5049_v39 = vadd.f32 %v5045_v34, %v7740_v53  ;;  %v5050_v40 = vadd.f32 %v5046_v35, %v7738_v51  ;;  %v5247_v35 = vld [vmem:[%s7873_s13] sm:$0xff] }
0x5471   :  { %6594 = vtanh.f32 %v5049_v39  ;;  %v5444_v36 = vmul.f32 -1.442695, %v5049_v39  ;;  %v5445_v11 = vmul.f32 -1.442695, %v5050_v40  ;;  %v6095_v39 = vpack.c.bf16 %v5248_v37, %v5247_v35 }
0x5472   :  { %6596 = vtanh.f32 %v5050_v40 }
0x5473   :  { %6598 = vpow2.f32 %v5444_v36  ;;  %6096 = vmatpush3.bf16.msra.mxu0 %v6095_v39 }
0x5474   :  { %6600 = vpow2.f32 %v5445_v11 }
0x547b   :  { %v6595_v41 = vpop.eup %6594 }
0x547c   :  { %v6597_v42 = vpop.eup %6596  ;;  %5075 = vrot.lane.b32.xlu1 %v6595_v41, %s6802_s0 }
0x547d   :  { %5077 = vrot.lane.b32.xlu0 %v6597_v42, %s6802_s0  ;;  %v6599_v2 = vpop.eup %6598 }
0x547e   :  { %v6601_v49 = vpop.eup %6600  ;;  %v5057_v50 = vadd.f32 1.0, %v6599_v2 }
0x547f   :  { %v5058_v48 = vadd.f32 1.0, %v6601_v49 }
0x5480   :  { %6602 = vrcp.f32 %v5057_v50 }
0x5481   :  { %6604 = vrcp.f32 %v5058_v48 }
0x548a   :  { %v6603_v31 = vpop.eup %6602 }
0x548b   :  { %v6605_v45 = vpop.eup %6604  ;;  %v5071_v60 = vmul.f32 %v6603_v31, %v5067_v52 }
0x548c   :  { %v5072_v61 = vmul.f32 %v6605_v45, %v5068_v58 }
0x54ee   :  { %v5076_v25 = vpop.permute.xlu1 %5075 }
0x54ef   :  { %v5078_v13 = vpop.permute.xlu0 %5077  ;;  %v5081_v46 = vmul.f32 %v6603_v31, %v5076_v25 }
0x54f0   :  { %v5082_v47 = vmul.f32 %v6605_v45, %v5078_v13  ;;  %v5449_v13 = vld [vmem:[#allocation5] ss:$0 sm:$0xff] }
0x54f1   :  { %5085 = vrot.lane.b32.xlu1 %v5081_v46, %s6803_s9 }
0x54f2   :  { %5087 = vrot.lane.b32.xlu0 %v5082_v47, %s6803_s9 }
0x5563   :  { %v5086_v57 = vpop.permute.xlu1 %5085 }
0x5564   :  { %v5088_v6 = vpop.permute.xlu0 %5087  ;;  %v5091_v20 = vadd.f32 %v5086_v57, %v5071_v60 }
0x5565   :  { %v5092_v56 = vadd.f32 %v5088_v6, %v5072_v61 }
0x5566   :  { %6606 = vtanh.f32 %v5091_v20  ;;  %v5207_v22 = vrot.slane %v5091_v20, 7 }
0x5567   :  { %6608 = vtanh.f32 %v5092_v56  ;;  %v5208_v1 = vrot.slane %v5092_v56, 7 }
0x5570   :  { %v6607_v24 = vpop.eup %6606 }
0x5571   :  { %v6609_v30 = vpop.eup %6608  ;;  %5097 = vrot.lane.b32.xlu1 %v6607_v24, %s6801_s3 }
0x5572   :  { %5099 = vrot.lane.b32.xlu0 %v6609_v30, %s6801_s3 }
0x55e3   :  { %v5098_v43 = vpop.permute.xlu1 %5097 }
0x55e4   :  { %v5100_v55 = vpop.permute.xlu0 %5099  ;;  %v5103_v29 = vmul.f32 %v6603_v31, %v5098_v43 }
0x55e5   :  { %v5104_v59 = vmul.f32 %v6605_v45, %v5100_v55 }
0x55e6   :  { %v5107_v7 = vrot.slane %v5103_v29, 6 }
0x55e7   :  { %v5108_v62 = vrot.slane %v5104_v59, 5 }
0x55e9   :  { %v5109_v21 = vsel %vm385_vm2, %v5108_v62, %v5107_v7 }
0x55ea   :  { %5110 = vrot.lane.b32.xlu1 %v5109_v21, %s6804_s27 }
0x565c   :  { %v5111_v63 = vpop.permute.xlu1 %5110 }
0x565d   :  { %5921 = vmatmul.mubr.msk.f32.vlgmr.msra.gmra.mrb[34].mxu1 %vm2842_vm12, %v5111_v63 }
0x5730   :  { %v5180_v33 = vpop.f32.mrb[34].mxu1 }
0x5731   :  { %v5185_v0 = vrot.slane %v5180_v33, 1  ;;  %v5186_v28 = vrot.slane %v5180_v33, 2  ;;  %v5922_v3 = vpop.f32.mrb[35].mxu1 }
0x5733   :  { %v5189_v32 = vadd.f32 %v5185_v0, %v7740_v53  ;;  %v5190_v44 = vadd.f32 %v5186_v28, %v7738_v51 }
0x5735   :  { %6610 = vtanh.f32 %v5189_v32  ;;  %v5447_v4 = vmul.f32 -1.442695, %v5189_v32  ;;  %v5448_v8 = vmul.f32 -1.442695, %v5190_v44 }
0x5736   :  { %6612 = vtanh.f32 %v5190_v44 }
0x5737   :  { %6614 = vpow2.f32 %v5447_v4 }
0x5738   :  { %6616 = vpow2.f32 %v5448_v8 }
0x573f   :  { %v6611_v14 = vpop.eup %6610 }
0x5740   :  { %v6613_v5 = vpop.eup %6612  ;;  %5215 = vrot.lane.b32.xlu0 %v6611_v14, %s6802_s0 }
0x5741   :  { %5217 = vrot.lane.b32.xlu1 %v6613_v5, %s6802_s0  ;;  %v6615_v9 = vpop.eup %6614 }
0x5742   :  { %v6617_v10 = vpop.eup %6616  ;;  %v5197_v12 = vadd.f32 1.0, %v6615_v9 }
0x5743   :  { %v5198_v38 = vadd.f32 1.0, %v6617_v10 }
0x5744   :  { %6618 = vrcp.f32 %v5197_v12 }
0x5745   :  { %6620 = vrcp.f32 %v5198_v38 }
0x574e   :  { %v6619_v53 = vpop.eup %6618 }
0x574f   :  { %v6621_v16 = vpop.eup %6620  ;;  %v5211_v23 = vmul.f32 %v6619_v53, %v5207_v22 }
0x5750   :  { %v5212_v26 = vmul.f32 %v6621_v16, %v5208_v1 }
0x57b2   :  { %v5216_v51 = vpop.permute.xlu0 %5215 }
0x57b3   :  { %v5218_v17 = vpop.permute.xlu1 %5217  ;;  %v5221_v54 = vmul.f32 %v6619_v53, %v5216_v51 }
0x57b4   :  { %v5222_v18 = vmul.f32 %v6621_v16, %v5218_v17 }
0x57b5   :  { %5225 = vrot.lane.b32.xlu0 %v5221_v54, %s6803_s9 }
0x57b6   :  { %5227 = vrot.lane.b32.xlu1 %v5222_v18, %s6803_s9 }
0x5827   :  { %v5226_v19 = vpop.permute.xlu0 %5225 }
0x5828   :  { %v5228_v15 = vpop.permute.xlu1 %5227  ;;  %v5231_v27 = vadd.f32 %v5226_v19, %v5211_v23 }
0x5829   :  { %v5232_v34 = vadd.f32 %v5228_v15, %v5212_v26 }
0x582a   :  { %6622 = vtanh.f32 %v5231_v27 }
0x582b   :  { %6624 = vtanh.f32 %v5232_v34 }
0x5834   :  { %v6623_v40 = vpop.eup %6622 }
0x5835   :  { %v6625_v41 = vpop.eup %6624  ;;  %5237 = vrot.lane.b32.xlu0 %v6623_v40, %s6801_s3 }
0x5836   :  { %5239 = vrot.lane.b32.xlu1 %v6625_v41, %s6801_s3 }
0x58a7   :  { %v5238_v42 = vpop.permute.xlu0 %5237 }
0x58a8   :  { %v5240_v36 = vpop.permute.xlu1 %5239  ;;  %v5243_v11 = vmul.f32 %v6619_v53, %v5238_v42 }
0x58a9   :  { %v5244_v2 = vmul.f32 %v6621_v16, %v5240_v36 }
0x58aa   :  { %v5245_v49 = vmax.f32 %v5243_v11, 0.0 }
0x58ab   :  { %v5246_v50 = vmax.f32 %v5244_v2, 0.0 }
0x58ac   :  { %v5258_v48 = vrot.slane %v5245_v49, 7 }
0x58ad   :  { %v5259_v31 = vrot.slane %v5246_v50, 6 }
0x58af   :  { %v5260_v25 = vsel %vm385_vm2, %v5259_v31, %v5258_v48 }
0x58b0   :  { %5261 = vrot.lane.b32.xlu0 %v5260_v25, %s6804_s27 }
0x5922   :  { %v5262_v45 = vpop.permute.xlu0 %5261 }
0x5923   :  { %5928 = vmatmul.mubr.msk.f32.vlgmr.msra.gmra.mrb[36].mxu0 %vm2842_vm12, %v5262_v45 }
0x59f6   :  { %v5331_v46 = vpop.f32.mrb[36].mxu0 }
0x59f7   :  { %v5332_v47 = vadd.f32 %v5449_v13, %v5331_v46  ;;  %v5929_v52 = vpop.f32.mrb[37].mxu0 }
0x59f9   :  { %5336 = vst.msk [vmem:[%s7875_s15] sm:$0x3] %vm5335_vm0, %v5332_v47 }
0x59fa   :  { %5341 = vsyncpa [#allocation7], 1 }
0x59fb   :  { %5342 = vsyncpa [#allocation9], 1 }
0x59fc   :  { %5343 = vsyncpa [#allocation12], 1 }
0x59fd   :  { %5344 = vsyncpa [#allocation15], 1 }

</bundles_post_ra>
